<compile_context>
chip_gen: v7x
topology: tpu7x:2x2x1
jax: 0.10.0
libtpu: 0.0.40
codegen_flags: <defaults>
</compile_context>

<pallas_src>
import functools

import jax
import jax.numpy as jnp
from jax.experimental import pallas as pl
from jax.experimental.pallas import tpu as pltpu


# ----------------------------------------------------------------------------
# Fused EOPA kernel: (BN pre-folded) GRU over mailbox + fused output projection
# ----------------------------------------------------------------------------
def eopa_kernel(feat_ref, mbox_ref, len_ref,
                w_ihT_ref, w_hhT_ref, b_i_ref, b_hhn_ref,
                w_out_ref, ob_ref, out_ref, *, seq_len, t_chunk):
    TN, D = feat_ref.shape
    lengths = len_ref[...]                 # [TN, 1] int32
    w_ihT = w_ihT_ref[...]                 # [D, 3D] bf16  (BN scale folded in)
    w_hhT = w_hhT_ref[...]                 # [D, 3D] bf16
    b_i = b_i_ref[...]                     # [1, 3D] f32   (b_ih + shift@W_ih^T + b_hh[r,z])
    b_hh_n = b_hhn_ref[...]                # [1, D]  f32   (n-gate hidden bias)

    h = jnp.zeros((TN, D), jnp.float32)

    # PyTorch GRU gate order: r, z, n.  The input-to-hidden projection is
    # hoisted out of the recurrence and computed one time-chunk at a time:
    # keeps the big MXU matmul while bounding gi scratch to [t_chunk*TN, 3D].
    for t0 in range(0, seq_len, t_chunk):
        tc = min(t_chunk, seq_len - t0)
        mbox_chunk = mbox_ref[pl.ds(t0, tc), :, :].reshape(tc * TN, D)   # bf16
        gi_chunk = (jnp.dot(mbox_chunk, w_ihT,
                            preferred_element_type=jnp.float32) + b_i)  # [tc*TN, 3D] f32
        for dt in range(tc):
            t = t0 + dt
            gi = gi_chunk[dt * TN:(dt + 1) * TN, :]      # static, sublane-aligned slice
            gh = jnp.dot(h.astype(jnp.bfloat16), w_hhT,
                         preferred_element_type=jnp.float32)
            r = jax.nn.sigmoid(gi[:, 0:D] + gh[:, 0:D])
            z = jax.nn.sigmoid(gi[:, D:2 * D] + gh[:, D:2 * D])
            n = jnp.tanh(gi[:, 2 * D:3 * D] + r * (gh[:, 2 * D:3 * D] + b_hh_n))
            h_new = (1.0 - z) * n + z * h
            # Padded message slots / zero in-degree nodes keep the previous h.
            h = jnp.where(t < lengths, h_new, h)

    # Fused output projection:
    #   out = feat @ (scale*W_self^T) + (shift @ W_self^T) + h @ W_neigh^T
    cat = jnp.concatenate([feat_ref[...], h.astype(jnp.bfloat16)], axis=-1)  # [TN, 2D] bf16
    out_ref[...] = (jnp.dot(cat, w_out_ref[...],
                            preferred_element_type=jnp.float32)
                    + ob_ref[...]).astype(out_ref.dtype)


# ----------------------------------------------------------------------------
# Wrapper: BN stats + weight folding + mailbox gather in XLA, one pallas_call
# ----------------------------------------------------------------------------
def eopa_forward(feat, mbox_idx, lengths, gamma, beta,
                 w_ih, w_hh, b_ih, b_hh, w_self, w_neigh,
                 *, tile_n=128, t_chunk=8):
    N, D = feat.shape
    L = mbox_idx.shape[1]
    Dout = w_self.shape[0]

    # BatchNorm1d statistics (training mode, biased variance) over the REAL
    # nodes only; folded into a per-feature scale/shift, then into the weights.
    feat = feat.astype(jnp.float32)
    mean = jnp.mean(feat, axis=0, keepdims=True)
    var = jnp.mean((feat - mean) ** 2, axis=0, keepdims=True)
    inv = jax.lax.rsqrt(var + 1e-5)
    scale = (gamma.reshape(1, D) * inv).astype(jnp.float32)          # [1, D]
    shift = (beta.reshape(1, D) - mean * scale).astype(jnp.float32)  # [1, D]

    if L == 0:  # no edges: rst = fc_self(feat_n)   (module's else-branch)
        return (feat * scale + shift) @ jnp.transpose(w_self)

    # --- Fold BN into the GRU input weights and the output projection -------
    w_ihT = jnp.transpose(w_ih).astype(jnp.float32)        # [D, 3D]
    w_hhT = jnp.transpose(w_hh).astype(jnp.float32)        # [D, 3D]
    w_selfT = jnp.transpose(w_self).astype(jnp.float32)    # [D, Dout]
    w_neighT = jnp.transpose(w_neigh).astype(jnp.float32)  # [D, Dout]

    w_ihT_s = scale.reshape(D, 1) * w_ihT                  # BN scale folded
    # gi bias: b_ih + shift@W_ih^T, plus the r/z thirds of b_hh pre-summed
    # (only the n-gate b_hh term must stay inside the r* multiply).
    b_i = (b_ih.reshape(1, 3 * D).astype(jnp.float32)
           + shift @ w_ihT
           + jnp.concatenate([b_hh[:2 * D].astype(jnp.float32),
                              jnp.zeros((D,), jnp.float32)]).reshape(1, 3 * D))
    b_hh_n = b_hh[2 * D:].reshape(1, D).astype(jnp.float32)

    w_out = jnp.concatenate([scale.reshape(D, 1) * w_selfT, w_neighT], axis=0)  # [2D, Dout]
    out_bias = shift @ w_selfT                                                  # [1, Dout]

    # --- Pad the node axis up to a multiple of the tile ----------------------
    # Padded rows get in-degree 0 and are sliced off; BN stats exclude them.
    tile_n = max(8, min(tile_n, pl.cdiv(N, 8) * 8))
    n_pad = pl.cdiv(N, tile_n) * tile_n - N
    Np = N + n_pad
    feat_p = jnp.pad(feat, ((0, n_pad), (0, 0))).astype(jnp.bfloat16)
    len_p = jnp.pad(lengths.astype(jnp.int32), (0, n_pad))[:, None]      # [Np, 1]
    idx_p = jnp.pad(mbox_idx.astype(jnp.int32), ((0, n_pad), (0, 0)))    # [Np, L]

    # Mailbox of RAW features (BN folded into weights), time-major [L, Np, D],
    # stored in HBM as bf16 (halves the dominant HBM stream + VMEM block).
    # NOTE: assumes lengths <= L; in-neighbors beyond the mailbox width are truncated.
    mbox = jnp.take(feat, idx_p.T, axis=0).astype(jnp.bfloat16)          # [L, Np, D]

    t_chunk = max(1, min(t_chunk, L))
    kernel = functools.partial(eopa_kernel, seq_len=L, t_chunk=t_chunk)
    out = pl.pallas_call(
        kernel,
        out_shape=jax.ShapeDtypeStruct((Np, Dout), jnp.float32),
        grid_spec=pltpu.PrefetchScalarGridSpec(
            num_scalar_prefetch=0,
            grid=(Np // tile_n,),
            in_specs=[
                pl.BlockSpec((tile_n, D), lambda i: (i, 0)),             # feat tile (bf16)
                pl.BlockSpec((L, tile_n, D), lambda i: (0, i, 0)),       # mailbox tile (bf16)
                pl.BlockSpec((tile_n, 1), lambda i: (i, 0)),             # lengths tile
                pl.BlockSpec((D, 3 * D), lambda i: (0, 0)),              # scale*W_ih^T (bf16)
                pl.BlockSpec((D, 3 * D), lambda i: (0, 0)),              # W_hh^T (bf16)
                pl.BlockSpec((1, 3 * D), lambda i: (0, 0)),              # fused gi bias (f32)
                pl.BlockSpec((1, D), lambda i: (0, 0)),                  # b_hh n-gate (f32)
                pl.BlockSpec((2 * D, Dout), lambda i: (0, 0)),           # [scale*W_self^T; W_neigh^T]
                pl.BlockSpec((1, Dout), lambda i: (0, 0)),               # output bias (f32)
            ],
            out_specs=pl.BlockSpec((tile_n, Dout), lambda i: (i, 0)),
        ),
        compiler_params=pltpu.CompilerParams(
            dimension_semantics=("parallel",),   # node tiles shard over v7x's 2 TCs
            vmem_limit_bytes=32 * 1024 * 1024,
        ),
    )(feat_p, mbox, len_p,
      w_ihT_s.astype(jnp.bfloat16), w_hhT.astype(jnp.bfloat16),
      b_i, b_hh_n, w_out.astype(jnp.bfloat16), out_bias)
    return out[:N]


# ----------------------------------------------------------------------------
# Pure-JAX reference (same math, f32) for verification
# ----------------------------------------------------------------------------
def ref_forward(feat, mbox_idx, lengths, gamma, beta,
                w_ih, w_hh, b_ih, b_hh, w_self, w_neigh):
    mean = feat.mean(0, keepdims=True)
    var = ((feat - mean) ** 2).mean(0, keepdims=True)
    fn = (feat - mean) / jnp.sqrt(var + 1e-5) * gamma + beta
    mbox = fn[mbox_idx]                            # [N, L, D]
    N, L, D = mbox.shape
    h = jnp.zeros((N, D), jnp.float32)
    for t in range(L):
        x_t = mbox[:, t, :]
        gi = x_t @ w_ih.T + b_ih
        gh = h @ w_hh.T + b_hh
        r = jax.nn.sigmoid(gi[:, :D] + gh[:, :D])
        z = jax.nn.sigmoid(gi[:, D:2 * D] + gh[:, D:2 * D])
        n = jnp.tanh(gi[:, 2 * D:] + r * gh[:, 2 * D:])
        h_new = (1.0 - z) * n + z * h
        h = jnp.where((t < lengths)[:, None], h_new, h)
    return fn @ w_self.T + h @ w_neigh.T


if __name__ == "__main__":
    # nodes, input_dim, output_dim, max in-degree (lane-aligned D / Dout).
    N, D, Dout, L = 500, 128, 128, 4

    key = jax.random.PRNGKey(0)
    ks = jax.random.split(key, 9)
    feat = jax.random.normal(ks[0], (N, D), jnp.float32)

    # Module parameters (BatchNorm1d / GRU / Linear shapes).
    gamma = 1.0 + 0.1 * jax.random.normal(ks[1], (1, D), jnp.float32)   # BN weight
    beta = 0.1 * jax.random.normal(ks[2], (1, D), jnp.float32)          # BN bias
    w_ih = 0.1 * jax.random.normal(ks[3], (3 * D, D), jnp.float32)      # GRU weight_ih_l0
    w_hh = 0.1 * jax.random.normal(ks[4], (3 * D, D), jnp.float32)      # GRU weight_hh_l0
    b_ih = 0.1 * jax.random.normal(ks[5], (3 * D,), jnp.float32)        # GRU bias_ih_l0
    b_hh = 0.1 * jax.random.normal(ks[6], (3 * D,), jnp.float32)        # GRU bias_hh_l0
    w_self = 0.1 * jax.random.normal(ks[7], (Dout, D), jnp.float32)     # fc_self.weight
    w_neigh = 0.1 * jax.random.normal(ks[8], (Dout, D), jnp.float32)    # fc_neigh.weight

    # Deterministic synthetic multigraph: node i has (i % (L+1)) in-neighbors
    # (includes zero-degree nodes); mailbox indices point at nearby nodes.
    lengths = jnp.arange(N, dtype=jnp.int32) % (L + 1)
    mbox_idx = (jnp.arange(N)[:, None] + jnp.arange(1, L + 1)[None, :]) % N   # [N, L]

    out = eopa_forward(feat, mbox_idx, lengths, gamma, beta,
                       w_ih, w_hh, b_ih, b_hh, w_self, w_neigh,
                       tile_n=128, t_chunk=8)
    out = jax.block_until_ready(out)

    with jax.default_matmul_precision("highest"):
        ref = ref_forward(feat, mbox_idx, lengths, gamma, beta,
                          w_ih, w_hh, b_ih, b_hh, w_self, w_neigh)
        ref = jax.block_until_ready(ref)

    assert out.shape == (N, Dout)
    err = float(jnp.max(jnp.abs(out - ref)))
    # bf16 matmul operands vs. the 'highest'-precision f32 reference: expected
    # quantization error, not a bug (accumulation stays f32).
    assert err < 1e-1, err

    print("KERNEL_OK")
</pallas_src>

<mosaic_0001>
module attributes {stable_mosaic.version = 11 : i64} {
  func.func @eopa_kernel(%arg0: i32, %arg1: memref<128x128xbf16, #tpu.memory_space<vmem>>, %arg2: memref<4x128x128xbf16, #tpu.memory_space<vmem>>, %arg3: memref<128x1xi32, #tpu.memory_space<vmem>>, %arg4: memref<128x384xbf16, #tpu.memory_space<vmem>>, %arg5: memref<128x384xbf16, #tpu.memory_space<vmem>>, %arg6: memref<1x384xf32, #tpu.memory_space<vmem>>, %arg7: memref<1x128xf32, #tpu.memory_space<vmem>>, %arg8: memref<256x128xbf16, #tpu.memory_space<vmem>>, %arg9: memref<1x128xf32, #tpu.memory_space<vmem>>, %arg10: memref<128x128xf32, #tpu.memory_space<vmem>>) attributes {dimension_semantics = [#tpu.dimension_semantics<parallel>], iteration_bounds = array<i64: 4>, scalar_prefetch = 0 : i64, scratch_operands = 0 : i64, tpu.core_type = #tpu.core_type<tc>, window_params = [{transform_indices = @transform_0, window_bounds = array<i64: 128, 128>}, {transform_indices = @transform_1, window_bounds = array<i64: 4, 128, 128>}, {transform_indices = @transform_2, window_bounds = array<i64: 128, 1>}, {pipeline_mode = #tpu.pipeline_mode<synchronous>, transform_indices = @transform_3, window_bounds = array<i64: 128, 384>}, {pipeline_mode = #tpu.pipeline_mode<synchronous>, transform_indices = @transform_4, window_bounds = array<i64: 128, 384>}, {pipeline_mode = #tpu.pipeline_mode<synchronous>, transform_indices = @transform_5, window_bounds = array<i64: 1, 384>}, {pipeline_mode = #tpu.pipeline_mode<synchronous>, transform_indices = @transform_6, window_bounds = array<i64: 1, 128>}, {pipeline_mode = #tpu.pipeline_mode<synchronous>, transform_indices = @transform_7, window_bounds = array<i64: 256, 128>}, {pipeline_mode = #tpu.pipeline_mode<synchronous>, transform_indices = @transform_8, window_bounds = array<i64: 1, 128>}, {transform_indices = @transform_9, window_bounds = array<i64: 128, 128>}]} {
    %c0 = arith.constant 0 : index
    %c0_0 = arith.constant 0 : index
    %0 = vector.load %arg3[%c0, %c0_0] : memref<128x1xi32, #tpu.memory_space<vmem>>, vector<128x1xi32>
    %c0_1 = arith.constant 0 : index
    %c0_2 = arith.constant 0 : index
    %1 = vector.load %arg4[%c0_1, %c0_2] : memref<128x384xbf16, #tpu.memory_space<vmem>>, vector<128x384xbf16>
    %c0_3 = arith.constant 0 : index
    %c0_4 = arith.constant 0 : index
    %2 = vector.load %arg5[%c0_3, %c0_4] : memref<128x384xbf16, #tpu.memory_space<vmem>>, vector<128x384xbf16>
    %c0_5 = arith.constant 0 : index
    %c0_6 = arith.constant 0 : index
    %3 = vector.load %arg6[%c0_5, %c0_6] : memref<1x384xf32, #tpu.memory_space<vmem>>, vector<1x384xf32>
    %c0_7 = arith.constant 0 : index
    %c0_8 = arith.constant 0 : index
    %4 = vector.load %arg7[%c0_7, %c0_8] : memref<1x128xf32, #tpu.memory_space<vmem>>, vector<1x128xf32>
    %cst = arith.constant 0.000000e+00 : f32
    %5 = vector.broadcast %cst : f32 to vector<128x128xf32>
    %c0_9 = arith.constant 0 : index
    %c0_10 = arith.constant 0 : index
    %c0_11 = arith.constant 0 : index
    %6 = vector.load %arg2[%c0_9, %c0_10, %c0_11] : memref<4x128x128xbf16, #tpu.memory_space<vmem>>, vector<4x128x128xbf16>
    %7 = vector.shape_cast %6 : vector<4x128x128xbf16> to vector<512x128xbf16>
    %cst_12 = arith.constant dense<0.000000e+00> : vector<512x384xf32>
    %8 = tpu.matmul %7, %1, %cst_12 {dimension_numbers = #tpu.dot_dimension_numbers<[1], [0], [0], [1], [0, 0, 1, 1], [], []>} : vector<512x128xbf16>, vector<128x384xbf16>, vector<512x384xf32> -> vector<512x384xf32>
    %9 = vector.broadcast %3 : vector<1x384xf32> to vector<512x384xf32>
    %10 = arith.addf %8, %9 : vector<512x384xf32>
    %11 = vector.extract_strided_slice %10 {offsets = [0, 0], sizes = [128, 384], strides = [1, 1]} : vector<512x384xf32> to vector<128x384xf32>
    %12 = arith.truncf %5 : vector<128x128xf32> to vector<128x128xbf16>
    %cst_13 = arith.constant dense<0.000000e+00> : vector<128x384xf32>
    %13 = tpu.matmul %12, %2, %cst_13 {dimension_numbers = #tpu.dot_dimension_numbers<[1], [0], [0], [1], [0, 0, 1, 1], [], []>} : vector<128x128xbf16>, vector<128x384xbf16>, vector<128x384xf32> -> vector<128x384xf32>
    %14 = vector.extract_strided_slice %11 {offsets = [0, 0], sizes = [128, 128], strides = [1, 1]} : vector<128x384xf32> to vector<128x128xf32>
    %15 = vector.extract_strided_slice %13 {offsets = [0, 0], sizes = [128, 128], strides = [1, 1]} : vector<128x384xf32> to vector<128x128xf32>
    %16 = arith.addf %14, %15 : vector<128x128xf32>
    %17 = arith.negf %16 : vector<128x128xf32>
    %18 = math.exp %17 : vector<128x128xf32>
    %cst_14 = arith.constant 1.000000e+00 : f32
    %19 = vector.broadcast %cst_14 : f32 to vector<128x128xf32>
    %20 = arith.addf %19, %18 : vector<128x128xf32>
    %21 = arith.divf %19, %20 : vector<128x128xf32>
    %22 = vector.extract_strided_slice %11 {offsets = [0, 128], sizes = [128, 128], strides = [1, 1]} : vector<128x384xf32> to vector<128x128xf32>
    %23 = vector.extract_strided_slice %13 {offsets = [0, 128], sizes = [128, 128], strides = [1, 1]} : vector<128x384xf32> to vector<128x128xf32>
    %24 = arith.addf %22, %23 : vector<128x128xf32>
    %25 = arith.negf %24 : vector<128x128xf32>
    %26 = math.exp %25 : vector<128x128xf32>
    %cst_15 = arith.constant 1.000000e+00 : f32
    %27 = vector.broadcast %cst_15 : f32 to vector<128x128xf32>
    %28 = arith.addf %27, %26 : vector<128x128xf32>
    %29 = arith.divf %27, %28 : vector<128x128xf32>
    %30 = vector.extract_strided_slice %11 {offsets = [0, 256], sizes = [128, 128], strides = [1, 1]} : vector<128x384xf32> to vector<128x128xf32>
    %31 = vector.extract_strided_slice %13 {offsets = [0, 256], sizes = [128, 128], strides = [1, 1]} : vector<128x384xf32> to vector<128x128xf32>
    %32 = vector.broadcast %4 : vector<1x128xf32> to vector<128x128xf32>
    %33 = arith.addf %31, %32 : vector<128x128xf32>
    %34 = arith.mulf %21, %33 : vector<128x128xf32>
    %35 = arith.addf %30, %34 : vector<128x128xf32>
    %36 = math.tanh %35 : vector<128x128xf32>
    %cst_16 = arith.constant 1.000000e+00 : f32
    %37 = vector.broadcast %cst_16 : f32 to vector<128x128xf32>
    %38 = arith.subf %37, %29 : vector<128x128xf32>
    %39 = arith.mulf %38, %36 : vector<128x128xf32>
    %40 = arith.mulf %29, %5 : vector<128x128xf32>
    %41 = arith.addf %39, %40 : vector<128x128xf32>
    %c0_i32 = arith.constant 0 : i32
    %42 = vector.broadcast %c0_i32 : i32 to vector<128x1xi32>
    %43 = arith.cmpi sgt, %0, %42 : vector<128x1xi32>
    %44 = vector.shape_cast %43 : vector<128x1xi1> to vector<128x1xi1>
    %45 = vector.broadcast %44 : vector<128x1xi1> to vector<128x128xi1>
    %46 = arith.select %45, %41, %5 : vector<128x128xi1>, vector<128x128xf32>
    %47 = vector.extract_strided_slice %10 {offsets = [128, 0], sizes = [128, 384], strides = [1, 1]} : vector<512x384xf32> to vector<128x384xf32>
    %48 = arith.truncf %46 : vector<128x128xf32> to vector<128x128xbf16>
    %cst_17 = arith.constant dense<0.000000e+00> : vector<128x384xf32>
    %49 = tpu.matmul %48, %2, %cst_17 {dimension_numbers = #tpu.dot_dimension_numbers<[1], [0], [0], [1], [0, 0, 1, 1], [], []>} : vector<128x128xbf16>, vector<128x384xbf16>, vector<128x384xf32> -> vector<128x384xf32>
    %50 = vector.extract_strided_slice %47 {offsets = [0, 0], sizes = [128, 128], strides = [1, 1]} : vector<128x384xf32> to vector<128x128xf32>
    %51 = vector.extract_strided_slice %49 {offsets = [0, 0], sizes = [128, 128], strides = [1, 1]} : vector<128x384xf32> to vector<128x128xf32>
    %52 = arith.addf %50, %51 : vector<128x128xf32>
    %53 = arith.negf %52 : vector<128x128xf32>
    %54 = math.exp %53 : vector<128x128xf32>
    %cst_18 = arith.constant 1.000000e+00 : f32
    %55 = vector.broadcast %cst_18 : f32 to vector<128x128xf32>
    %56 = arith.addf %55, %54 : vector<128x128xf32>
    %57 = arith.divf %55, %56 : vector<128x128xf32>
    %58 = vector.extract_strided_slice %47 {offsets = [0, 128], sizes = [128, 128], strides = [1, 1]} : vector<128x384xf32> to vector<128x128xf32>
    %59 = vector.extract_strided_slice %49 {offsets = [0, 128], sizes = [128, 128], strides = [1, 1]} : vector<128x384xf32> to vector<128x128xf32>
    %60 = arith.addf %58, %59 : vector<128x128xf32>
    %61 = arith.negf %60 : vector<128x128xf32>
    %62 = math.exp %61 : vector<128x128xf32>
    %cst_19 = arith.constant 1.000000e+00 : f32
    %63 = vector.broadcast %cst_19 : f32 to vector<128x128xf32>
    %64 = arith.addf %63, %62 : vector<128x128xf32>
    %65 = arith.divf %63, %64 : vector<128x128xf32>
    %66 = vector.extract_strided_slice %47 {offsets = [0, 256], sizes = [128, 128], strides = [1, 1]} : vector<128x384xf32> to vector<128x128xf32>
    %67 = vector.extract_strided_slice %49 {offsets = [0, 256], sizes = [128, 128], strides = [1, 1]} : vector<128x384xf32> to vector<128x128xf32>
    %68 = vector.broadcast %4 : vector<1x128xf32> to vector<128x128xf32>
    %69 = arith.addf %67, %68 : vector<128x128xf32>
    %70 = arith.mulf %57, %69 : vector<128x128xf32>
    %71 = arith.addf %66, %70 : vector<128x128xf32>
    %72 = math.tanh %71 : vector<128x128xf32>
    %cst_20 = arith.constant 1.000000e+00 : f32
    %73 = vector.broadcast %cst_20 : f32 to vector<128x128xf32>
    %74 = arith.subf %73, %65 : vector<128x128xf32>
    %75 = arith.mulf %74, %72 : vector<128x128xf32>
    %76 = arith.mulf %65, %46 : vector<128x128xf32>
    %77 = arith.addf %75, %76 : vector<128x128xf32>
    %c1_i32 = arith.constant 1 : i32
    %78 = vector.broadcast %c1_i32 : i32 to vector<128x1xi32>
    %79 = arith.cmpi sgt, %0, %78 : vector<128x1xi32>
    %80 = vector.shape_cast %79 : vector<128x1xi1> to vector<128x1xi1>
    %81 = vector.broadcast %80 : vector<128x1xi1> to vector<128x128xi1>
    %82 = arith.select %81, %77, %46 : vector<128x128xi1>, vector<128x128xf32>
    %83 = vector.extract_strided_slice %10 {offsets = [256, 0], sizes = [128, 384], strides = [1, 1]} : vector<512x384xf32> to vector<128x384xf32>
    %84 = arith.truncf %82 : vector<128x128xf32> to vector<128x128xbf16>
    %cst_21 = arith.constant dense<0.000000e+00> : vector<128x384xf32>
    %85 = tpu.matmul %84, %2, %cst_21 {dimension_numbers = #tpu.dot_dimension_numbers<[1], [0], [0], [1], [0, 0, 1, 1], [], []>} : vector<128x128xbf16>, vector<128x384xbf16>, vector<128x384xf32> -> vector<128x384xf32>
    %86 = vector.extract_strided_slice %83 {offsets = [0, 0], sizes = [128, 128], strides = [1, 1]} : vector<128x384xf32> to vector<128x128xf32>
    %87 = vector.extract_strided_slice %85 {offsets = [0, 0], sizes = [128, 128], strides = [1, 1]} : vector<128x384xf32> to vector<128x128xf32>
    %88 = arith.addf %86, %87 : vector<128x128xf32>
    %89 = arith.negf %88 : vector<128x128xf32>
    %90 = math.exp %89 : vector<128x128xf32>
    %cst_22 = arith.constant 1.000000e+00 : f32
    %91 = vector.broadcast %cst_22 : f32 to vector<128x128xf32>
    %92 = arith.addf %91, %90 : vector<128x128xf32>
    %93 = arith.divf %91, %92 : vector<128x128xf32>
    %94 = vector.extract_strided_slice %83 {offsets = [0, 128], sizes = [128, 128], strides = [1, 1]} : vector<128x384xf32> to vector<128x128xf32>
    %95 = vector.extract_strided_slice %85 {offsets = [0, 128], sizes = [128, 128], strides = [1, 1]} : vector<128x384xf32> to vector<128x128xf32>
    %96 = arith.addf %94, %95 : vector<128x128xf32>
    %97 = arith.negf %96 : vector<128x128xf32>
    %98 = math.exp %97 : vector<128x128xf32>
    %cst_23 = arith.constant 1.000000e+00 : f32
    %99 = vector.broadcast %cst_23 : f32 to vector<128x128xf32>
    %100 = arith.addf %99, %98 : vector<128x128xf32>
    %101 = arith.divf %99, %100 : vector<128x128xf32>
    %102 = vector.extract_strided_slice %83 {offsets = [0, 256], sizes = [128, 128], strides = [1, 1]} : vector<128x384xf32> to vector<128x128xf32>
    %103 = vector.extract_strided_slice %85 {offsets = [0, 256], sizes = [128, 128], strides = [1, 1]} : vector<128x384xf32> to vector<128x128xf32>
    %104 = vector.broadcast %4 : vector<1x128xf32> to vector<128x128xf32>
    %105 = arith.addf %103, %104 : vector<128x128xf32>
    %106 = arith.mulf %93, %105 : vector<128x128xf32>
    %107 = arith.addf %102, %106 : vector<128x128xf32>
    %108 = math.tanh %107 : vector<128x128xf32>
    %cst_24 = arith.constant 1.000000e+00 : f32
    %109 = vector.broadcast %cst_24 : f32 to vector<128x128xf32>
    %110 = arith.subf %109, %101 : vector<128x128xf32>
    %111 = arith.mulf %110, %108 : vector<128x128xf32>
    %112 = arith.mulf %101, %82 : vector<128x128xf32>
    %113 = arith.addf %111, %112 : vector<128x128xf32>
    %c2_i32 = arith.constant 2 : i32
    %114 = vector.broadcast %c2_i32 : i32 to vector<128x1xi32>
    %115 = arith.cmpi sgt, %0, %114 : vector<128x1xi32>
    %116 = vector.shape_cast %115 : vector<128x1xi1> to vector<128x1xi1>
    %117 = vector.broadcast %116 : vector<128x1xi1> to vector<128x128xi1>
    %118 = arith.select %117, %113, %82 : vector<128x128xi1>, vector<128x128xf32>
    %119 = vector.extract_strided_slice %10 {offsets = [384, 0], sizes = [128, 384], strides = [1, 1]} : vector<512x384xf32> to vector<128x384xf32>
    %120 = arith.truncf %118 : vector<128x128xf32> to vector<128x128xbf16>
    %cst_25 = arith.constant dense<0.000000e+00> : vector<128x384xf32>
    %121 = tpu.matmul %120, %2, %cst_25 {dimension_numbers = #tpu.dot_dimension_numbers<[1], [0], [0], [1], [0, 0, 1, 1], [], []>} : vector<128x128xbf16>, vector<128x384xbf16>, vector<128x384xf32> -> vector<128x384xf32>
    %122 = vector.extract_strided_slice %119 {offsets = [0, 0], sizes = [128, 128], strides = [1, 1]} : vector<128x384xf32> to vector<128x128xf32>
    %123 = vector.extract_strided_slice %121 {offsets = [0, 0], sizes = [128, 128], strides = [1, 1]} : vector<128x384xf32> to vector<128x128xf32>
    %124 = arith.addf %122, %123 : vector<128x128xf32>
    %125 = arith.negf %124 : vector<128x128xf32>
    %126 = math.exp %125 : vector<128x128xf32>
    %cst_26 = arith.constant 1.000000e+00 : f32
    %127 = vector.broadcast %cst_26 : f32 to vector<128x128xf32>
    %128 = arith.addf %127, %126 : vector<128x128xf32>
    %129 = arith.divf %127, %128 : vector<128x128xf32>
    %130 = vector.extract_strided_slice %119 {offsets = [0, 128], sizes = [128, 128], strides = [1, 1]} : vector<128x384xf32> to vector<128x128xf32>
    %131 = vector.extract_strided_slice %121 {offsets = [0, 128], sizes = [128, 128], strides = [1, 1]} : vector<128x384xf32> to vector<128x128xf32>
    %132 = arith.addf %130, %131 : vector<128x128xf32>
    %133 = arith.negf %132 : vector<128x128xf32>
    %134 = math.exp %133 : vector<128x128xf32>
    %cst_27 = arith.constant 1.000000e+00 : f32
    %135 = vector.broadcast %cst_27 : f32 to vector<128x128xf32>
    %136 = arith.addf %135, %134 : vector<128x128xf32>
    %137 = arith.divf %135, %136 : vector<128x128xf32>
    %138 = vector.extract_strided_slice %119 {offsets = [0, 256], sizes = [128, 128], strides = [1, 1]} : vector<128x384xf32> to vector<128x128xf32>
    %139 = vector.extract_strided_slice %121 {offsets = [0, 256], sizes = [128, 128], strides = [1, 1]} : vector<128x384xf32> to vector<128x128xf32>
    %140 = vector.broadcast %4 : vector<1x128xf32> to vector<128x128xf32>
    %141 = arith.addf %139, %140 : vector<128x128xf32>
    %142 = arith.mulf %129, %141 : vector<128x128xf32>
    %143 = arith.addf %138, %142 : vector<128x128xf32>
    %144 = math.tanh %143 : vector<128x128xf32>
    %cst_28 = arith.constant 1.000000e+00 : f32
    %145 = vector.broadcast %cst_28 : f32 to vector<128x128xf32>
    %146 = arith.subf %145, %137 : vector<128x128xf32>
    %147 = arith.mulf %146, %144 : vector<128x128xf32>
    %148 = arith.mulf %137, %118 : vector<128x128xf32>
    %149 = arith.addf %147, %148 : vector<128x128xf32>
    %c3_i32 = arith.constant 3 : i32
    %150 = vector.broadcast %c3_i32 : i32 to vector<128x1xi32>
    %151 = arith.cmpi sgt, %0, %150 : vector<128x1xi32>
    %152 = vector.shape_cast %151 : vector<128x1xi1> to vector<128x1xi1>
    %153 = vector.broadcast %152 : vector<128x1xi1> to vector<128x128xi1>
    %154 = arith.select %153, %149, %118 : vector<128x128xi1>, vector<128x128xf32>
    %c0_29 = arith.constant 0 : index
    %c0_30 = arith.constant 0 : index
    %155 = vector.load %arg1[%c0_29, %c0_30] : memref<128x128xbf16, #tpu.memory_space<vmem>>, vector<128x128xbf16>
    %156 = arith.truncf %154 : vector<128x128xf32> to vector<128x128xbf16>
    %157 = tpu.concatenate %155, %156 in 1 : vector<128x128xbf16>, vector<128x128xbf16> -> vector<128x256xbf16>
    %c0_31 = arith.constant 0 : index
    %c0_32 = arith.constant 0 : index
    %158 = vector.load %arg8[%c0_31, %c0_32] : memref<256x128xbf16, #tpu.memory_space<vmem>>, vector<256x128xbf16>
    %cst_33 = arith.constant dense<0.000000e+00> : vector<128x128xf32>
    %159 = tpu.matmul %157, %158, %cst_33 {dimension_numbers = #tpu.dot_dimension_numbers<[1], [0], [0], [1], [0, 0, 1, 1], [], []>} : vector<128x256xbf16>, vector<256x128xbf16>, vector<128x128xf32> -> vector<128x128xf32>
    %c0_34 = arith.constant 0 : index
    %c0_35 = arith.constant 0 : index
    %160 = vector.load %arg9[%c0_34, %c0_35] : memref<1x128xf32, #tpu.memory_space<vmem>>, vector<1x128xf32>
    %161 = vector.broadcast %160 : vector<1x128xf32> to vector<128x128xf32>
    %162 = arith.addf %159, %161 : vector<128x128xf32>
    %c0_36 = arith.constant 0 : index
    %c0_37 = arith.constant 0 : index
    %163 = vector.load %arg10[%c0_36, %c0_37] : memref<128x128xf32, #tpu.memory_space<vmem>>, vector<128x128xf32>
    tpu.vector_store %arg10[%c0_36, %c0_37], %162 {strides = array<i32>} : memref<128x128xf32, #tpu.memory_space<vmem>>, vector<128x128xf32>,
    return
  }
  func.func @transform_0(%arg0: i32) -> (i32, i32) {
    %c0_i32 = arith.constant 0 : i32
    %c0_i32_0 = arith.constant 0 : i32
    return %arg0, %c0_i32 : i32, i32
  }
  func.func @transform_1(%arg0: i32) -> (i32, i32, i32) {
    %c0_i32 = arith.constant 0 : i32
    %c0_i32_0 = arith.constant 0 : i32
    %c0_i32_1 = arith.constant 0 : i32
    return %c0_i32, %arg0, %c0_i32_0 : i32, i32, i32
  }
  func.func @transform_2(%arg0: i32) -> (i32, i32) {
    %c0_i32 = arith.constant 0 : i32
    %c0_i32_0 = arith.constant 0 : i32
    return %arg0, %c0_i32 : i32, i32
  }
  func.func @transform_3(%arg0: i32) -> (i32, i32) {
    %c0_i32 = arith.constant 0 : i32
    %c0_i32_0 = arith.constant 0 : i32
    %c0_i32_1 = arith.constant 0 : i32
    return %c0_i32, %c0_i32_0 : i32, i32
  }
  func.func @transform_4(%arg0: i32) -> (i32, i32) {
    %c0_i32 = arith.constant 0 : i32
    %c0_i32_0 = arith.constant 0 : i32
    %c0_i32_1 = arith.constant 0 : i32
    return %c0_i32, %c0_i32_0 : i32, i32
  }
  func.func @transform_5(%arg0: i32) -> (i32, i32) {
    %c0_i32 = arith.constant 0 : i32
    %c0_i32_0 = arith.constant 0 : i32
    %c0_i32_1 = arith.constant 0 : i32
    return %c0_i32, %c0_i32_0 : i32, i32
  }
  func.func @transform_6(%arg0: i32) -> (i32, i32) {
    %c0_i32 = arith.constant 0 : i32
    %c0_i32_0 = arith.constant 0 : i32
    %c0_i32_1 = arith.constant 0 : i32
    return %c0_i32, %c0_i32_0 : i32, i32
  }
  func.func @transform_7(%arg0: i32) -> (i32, i32) {
    %c0_i32 = arith.constant 0 : i32
    %c0_i32_0 = arith.constant 0 : i32
    %c0_i32_1 = arith.constant 0 : i32
    return %c0_i32, %c0_i32_0 : i32, i32
  }
  func.func @transform_8(%arg0: i32) -> (i32, i32) {
    %c0_i32 = arith.constant 0 : i32
    %c0_i32_0 = arith.constant 0 : i32
    %c0_i32_1 = arith.constant 0 : i32
    return %c0_i32, %c0_i32_0 : i32, i32
  }
  func.func @transform_9(%arg0: i32) -> (i32, i32) {
    %c0_i32 = arith.constant 0 : i32
    %c0_i32_0 = arith.constant 0 : i32
    return %arg0, %c0_i32 : i32, i32
  }
}

</mosaic_0001>

<bundles_post_ra>
// kernel: tpu_custom_call.1
= control target key start
LH: loop header
LB: loop body
LE: loop exit
PB: predicated region body
PF: predicated region fallthrough
CT: control target
= control target key end

     0   :  { %s9618_s0 = inlined_call_operand.vmem [shape: bf16[512,128], index: 0, kind: input, shape index: {}]   ;;  %s9619_s1 = inlined_call_operand.hbm [shape: bf16[4,512,128], index: 1, kind: input, shape index: {}]   ;;  %s9620_s2 = inlined_call_operand.vmem [shape: s32[512,1], index: 2, kind: input, shape index: {}]   ;;  %s9621_s3 = inlined_call_operand.vmem [shape: bf16[128,384], index: 3, kind: input, shape index: {}]   ;;  %s9622_s4 = inlined_call_operand.hbm [shape: bf16[128,384], index: 4, kind: input, shape index: {}]   ;;  %s9623_s5 = inlined_call_operand.vmem [shape: f32[1,384], index: 5, kind: input, shape index: {}]   ;;  %s9624_s6 = inlined_call_operand.vmem [shape: f32[1,128], index: 6, kind: input, shape index: {}]   ;;  %s9625_s7 = inlined_call_operand.hbm [shape: bf16[256,128], index: 7, kind: input, shape index: {}]   ;;  %s9626_s8 = inlined_call_operand.vmem [shape: f32[1,128], index: 8, kind: input, shape index: {}]   ;;  %s9627_s9 = inlined_call_operand.hbm [shape: f32[512,128], index: 9, kind: output, shape index: {}]  }
   0x1   :  { %9688 = sst [smem:[#allocation148_spill]] %s9627_s9 }
   0x2   :  { %14 = vsyncpa [#allocation3], 0 }
   0x3   :  { %16 = vsyncpa [#allocation3 + $0x1], 0 }
   0x4   :  { %17 = vsyncpa [#allocation6], 0 }
   0x5   :  { %18 = vsyncpa [#allocation4], 0 }
   0x6   :  { %20 = vsyncpa [#allocation4 + $0x1], 0  ;;  %s6902_s30 = smov 0   ;;  %s6904_s10 = smov 0  }
   0x7   :  { %s6906_s11 = smov 0   ;;  %s6908_s12 = smov 0  }
   0x8 LB: > { %9689 = sst [smem:[#allocation15_spill]] %s6822_s30  ;;  %s6923_s13 = sadd.s32 4294967295, %s6834_s12   ;;  %s6834_s12 = sphi %s6908_s12, %s10009_s12   ;;  %s6830_s11 = sphi %s6906_s11, %s10013_s11   ;;  %s6826_s10 = sphi %s6904_s10, %s10012_s10   ;;  %s6822_s30 = sphi %s6902_s30, %s10011_s30  }
   0x9   : > { %s4880_s14 = sadd.s32 4294967294, %s6834_s12   ;;  %s6927_s15 = sadd.s32 1, %s6834_s12  }
   0xa   : > { %9690 = sst [smem:[#allocation16_spill]] %s6927_s15  ;;  %s59_s16 = sadd.s32 1, %s6830_s11 }
   0xb   : > { %s56_s17 = ssub.s32 %s6834_s12, %s6927_s15  ;;  %p66_p0 = scmp.ne.s32.totalorder %s6830_s11, %s6826_s10 }
   0xc   : > { %p57_p1 = scmp.eq.s32.totalorder %s56_s17, 0  ;;  %p67_p2 = scmp.eq.s32.totalorder %s6834_s12, 0 }
   0xd   : > { %p72_p3 = scmp.ne.s32.totalorder %s6826_s10, %s6822_s30  ;;  %p9630_p4 = scmp.eq.s32.totalorder %s6923_s13, 0 }
   0xe   : > { %s6939_s18 = scalar_select %p57_p1, %s6830_s11, %s59_s16  }
   0xf   : > { %p6941_p5 = por %p67_p2, %p66_p0  ;;  %p6947_p6 = por %p9630_p4, %p72_p3 }
  0x10   : > { %9691 = sst [smem:[#allocation17_spill]] %s6939_s18  ;;  %p248_p7 = scmp.eq.s32.totalorder %s6923_s13, 3 }
  0x11   : > { %s9692_s19 = scalar_select %p6941_p5, 1, 0 }
  0x12   : > { %s9693_s20 = scalar_select %p6947_p6, 1, 0 }
  0x13   : > { %p254_p8 = scmp.eq.s32.totalorder %s4880_s14, 3  ;;  %p4881_p9 = scmp.ge.s32.totalorder %s6834_s12, 1 }
  0x14   : > { %p261_p10 = scmp.lt.s32.totalorder %s6834_s12, 5  ;;  %p6954_p11 = por %p248_p7, %p66_p0 }
  0x15   : > { %p6958_p12 = por %p254_p8, %p72_p3  ;;  %s6836_s24 = smov [#allocation5]  }
  0x16   : > { %s9694_s21 = scalar_select %p6954_p11, 1, 0 }
  0x17   : > { %s9695_s22 = scalar_select %p6958_p12, 1, 0 }
  0x18   : > { %p6962_p13 = pnand %p4881_p9, %p261_p10  ;;  %s276_s25 = sshll.u32 %s6836_s24, 4  ;;  %s277_s25 = int_to_ptr.vmem [resolvable:$true] %s276_s25 }
  0x19   : > { %9696 = sst [smem:[#allocation18_spill]] %s9695_s22  ;;  %s6837_s27 = smov [#allocation7]  }
  0x1a   : > { %s9697_s23 = scalar_select %p6962_p13, 1, 0 }
  0x1b   : > { %p5855_p1 = pneg %p6962_p13  ;;  %s295_s28 = sshll.u32 %s6837_s27, 4  ;;  %s6974_s28 = int_to_ptr.vmem [resolvable:$true] %s295_s28 }
  0x1c   : > { %s6708_s16 = scalar_lea.hbm %s9622_s4, 3072 }
  0x1d   : > { %p6970_p2 = pnand %p5855_p1, %p9630_p4  ;;  %p6709_p0 = scmp.ne.s32.totalorder %s9622_s4, %s6708_s16 }
  0x1e   : > { %p6715_p9 = scmp.lt.u32.totalorder %s6708_s16, %s9622_s4 }
  0x1f   : > { %p6710_p3 = pneg %p6970_p2 }
  0x21   : > { %p6711_p7 = pnand %p6710_p3, %p6709_p0 }
  0x23   : > { %p6712_p8 = pneg %p6711_p7 }
  0x25   : > { %p6717_p10 = pnand %p6715_p9, %p6712_p8 }
  0x27   : > { %6720 = shalt.err (!%p6717_p10)
}
  0x28   : > { %s6721_s27 = scalar_lea.vmem %s277_s25, 3072  ;;  %p6729_p11 = scmp.lt.s32.totalorder %s277_s25, %s277_s25 }
  0x29   : > { %p6722_p1 = scmp.ne.s32.totalorder %s277_s25, %s6721_s27  ;;  %p6730_p6 = scmp.lt.s32.totalorder %s6721_s27, %s6721_s27 }
  0x2b   : > { %p6724_p4 = pnand %p6722_p1, %p6710_p3  ;;  %p6731_p13 = por %p6730_p6, %p6729_p11 }
  0x2d   : > { %p6725_p12 = pneg %p6724_p4 }
  0x2f   : > { %p6732_p5 = pnand %p6731_p13, %p6725_p12 }
  0x31   : > { %6735 = shalt.err (!%p6732_p5)
}
  0x32   : > { %s6838_s18 = smov 192   ;;  %s6839_s29 = smov 12  }
  0x33   : > { %5858 = dma.hbm_to_vmem [thread:$0]  (!%p6970_p2), %s9622_s4, 3072, %s277_s25, [#allocation6], %s6838_s18, %s6838_s18, %s6839_s29  }
  0x34   : > { %s6736_s24 = scalar_lea.hbm %s9625_s7, 2048 }
  0x35   : > { %p6737_p4 = scmp.ne.s32.totalorder %s9625_s7, %s6736_s24  ;;  %p6743_p11 = scmp.lt.u32.totalorder %s6736_s24, %s9625_s7 }
  0x37   : > { %p6739_p5 = pnand %p6737_p4, %p6710_p3 }
  0x39   : > { %p6740_p6 = pneg %p6739_p5 }
  0x3b   : > { %p6745_p12 = pnand %p6743_p11, %p6740_p6 }
  0x3d   : > { %6748 = shalt.err (!%p6745_p12)
}
  0x3e   : > { %s6749_s25 = scalar_lea.vmem %s6974_s28, 2048  ;;  %p6757_p8 = scmp.lt.s32.totalorder %s6974_s28, %s6974_s28 }
  0x3f   : > { %p6750_p13 = scmp.ne.s32.totalorder %s6974_s28, %s6749_s25  ;;  %p6758_p9 = scmp.lt.s32.totalorder %s6749_s25, %s6749_s25 }
  0x41   : > { %p6752_p0 = pnand %p6750_p13, %p6710_p3  ;;  %p6759_p10 = por %p6758_p9, %p6757_p8 }
  0x43   : > { %p6753_p7 = pneg %p6752_p0 }
  0x45   : > { %p6760_p1 = pnand %p6759_p10, %p6753_p7 }
  0x47   : > { %6763 = shalt.err (!%p6760_p1)
}
  0x48   : > { %s6840_s9 = smov 64   ;;  %s6841_s30 = smov 4  }
  0x49   : > { %5861 = dma.hbm_to_vmem [thread:$0]  (!%p6970_p2), %s9625_s7, 2048, %s6974_s28, [#allocation6], %s6840_s9, %s6840_s9, %s6841_s30  }
  0x4a   : > { %p4884_p4 = scmp.ge.s32.totalorder %s6834_s12, 4 }
  0x4c   : > { %308 = sbr.rel (%p4884_p4) target bundleno = 98 (0x62), region = 40 }
  0x53   : > { %s321_s29 = sand.u32 1, %s6830_s11   ;;  %s5186_s15 = sshll.u32 %s6834_s12, 10 }
  0x54   : > { %s4885_s14 = sshll.u32 %s321_s29, 8  ;;  %s331_s17 = scalar_lea.hbm %s9619_s1, %s5186_s15 }
  0x55   : > { %p9699_p3 = scmp.ne.s32.totalorder %s9692_s19, 0  ;;  %s325_s24 = scalar_lea.vmem [#allocation2], %s4885_s14 }
  0x56   : > { %s344_s27 = sshll.u32 %s325_s24, 4  ;;  %s6842_s9 = smov 4096   ;;  %s345_s27 = int_to_ptr.vmem [resolvable:$true] %s344_s27 }
  0x57   : > { %s5840_s28 = scalar_select %p9699_p3, [#allocation0], [#allocation11] }
  0x58   : > { %5841 = sst [smem:[#allocation10]] (%p9699_p3), %s6842_s9  ;;  %s6843_s30 = smov 1024  }
  0x59   : > { %s336_s25 = sld [smem:[%s5840_s28]]   ;;  %s6844_s22 = smov 16  }
  0x5a   : > { %5842 = sst [smem:[#allocation10 + $0x1]] (%p9699_p3), %s6843_s30  ;;  %s6845_s18 = smov 64  }
  0x5b   : > { %5843 = sst [smem:[#allocation10 + $0x2]] (%p9699_p3), %s6844_s22  ;;  %s6846_s14 = smov 4  }
  0x5c   : > { %5844 = sst [smem:[#allocation10 + $0x3]] (%p9699_p3), %s6845_s18  ;;  %s322_s26 = scalar_lea.sflag [#allocation3], %s321_s29 }
  0x5d   : > { %5845 = sst [smem:[#allocation10 + $0x4]] (%p9699_p3), %s6845_s18  ;;  %s6847_s28 = smov [#allocation9]  }
  0x5e   : > { %5846 = sst [smem:[#allocation10 + $0x5]] (%p9699_p3), %s6846_s14 }
  0x5f   : > { %s4888_s15 = sshll.u32 %s336_s25, 26 }
  0x60   : > { %s4889_s16 = sadd.s32 134217728, %s4888_s15 }
  0x61   : > { %5847 = dma.general (%p9699_p3), %s331_s17, 4096, %s345_s27, %s322_s26, %s6847_s28, [#allocation10], %s4889_s16, 0  }
  0x62 PF: > { %p9700_p2 = scmp.ne.s32.totalorder %s9697_s23, 0 }
  0x64   : > { %378 = sbr.rel (%p9700_p2) target bundleno = 1728 (0x6c0), region = 56 }
  0x6b   : > { %s7048_s24 = sand.u32 1, %s6826_s10   ;;  %p9701_p5 = scmp.ne.s32.totalorder %s9693_s20, 0 }
  0x6c   : > { %s4891_s9 = sshll.u32 %s7048_s24, 8  ;;  %s381_s25 = scalar_lea.sflag [#allocation3], %s7048_s24 }
  0x6d   : > { %s7052_s30 = scalar_lea.vmem [#allocation2], %s4891_s9 }
  0x6e   : > { %6809 = dma.done.wait (%p9701_p5), %s381_s25, 4096  }
  0x6f   : > { %6811 = vsyncadd (%p9701_p5), %s381_s25, 4294963200  ;;  %p9702_p6 = scmp.eq.s32.totalorder %s6923_s13, 0 }
  0x71   : > { %6813 = dma.done.wait (%p9702_p6), [#allocation6], 5120   ;;  %p9703_p11 = pmov %p9702_p6 }
  0x72   : > { %v9640_v0 = vmov 0   ;;  %v5920_v1 = vld [vmem:[%s9621_s3 + $0x4] ss:$12 sps:$4 sm:$0xff]   ;;  %v5922_v2 = vld [vmem:[%s9621_s3] ss:$12 sps:$4 sm:$0xff]   ;;  %v7185_v37 = vld [vmem:[%s7052_s30 + $0x18] sm:$0xff]  }
  0x73   : > { %6815 = vsyncadd (%p9703_p11), [#allocation6], 4294962176  ;;  %966 = vmatprep.mubr.bf16.mxu0 %v9640_v0  ;;  %1166 = vmatprep.mubr.bf16.mxu1 %v9640_v0  ;;  %v5923_v3 = vld [vmem:[%s9621_s3 + $0x1c] ss:$12 sps:$4 sm:$0xff]   ;;  %v5925_v4 = vld [vmem:[%s9621_s3 + $0x18] ss:$12 sps:$4 sm:$0xff]  }
  0x74   : > { %5918 = vset.pattern.permute.xlu0 %v9640_v0  ;;  %5919 = vset.pattern.permute.xlu1 %v9640_v0  ;;  %v5926_v5 = vld [vmem:[%s9621_s3 + $0x34] ss:$12 sps:$4 sm:$0xff]   ;;  %v5928_v6 = vld [vmem:[%s9621_s3 + $0x30] ss:$12 sps:$4 sm:$0xff]   ;;  %v5929_v7 = vld [vmem:[%s9621_s3 + $0x4c] ss:$12 sps:$4 sm:$0xff]  }
  0x75   : > { %934 = vmatprep.subr.bf16.mxu0 %v5920_v1  ;;  %5564 = vmatprep.subr.bf16.mxu1 %v5920_v1  ;;  %v5931_v8 = vld [vmem:[%s9621_s3 + $0x48] ss:$12 sps:$4 sm:$0xff]   ;;  %v5932_v9 = vld [vmem:[%s9621_s3 + $0x64] ss:$12 sps:$4 sm:$0xff]   ;;  %v5934_v10 = vld [vmem:[%s9621_s3 + $0x60] ss:$12 sps:$4 sm:$0xff]  }
  0x76   : > { %935 = vmatpush1.bf16.msra.mxu0 %v5922_v2  ;;  %5572 = vmatpush1.bf16.msra.mxu1 %v5922_v2  ;;  %v5935_v11 = vld [vmem:[%s9621_s3 + $0x7c] ss:$12 sps:$4 sm:$0xff]   ;;  %v5937_v12 = vld [vmem:[%s9621_s3 + $0x78] ss:$12 sps:$4 sm:$0xff]   ;;  %v5938_v13 = vld [vmem:[%s9621_s3 + $0x94] ss:$12 sps:$4 sm:$0xff]  }
  0x77   : > { %936 = vmatprep.subr.bf16.mxu0 %v5923_v3  ;;  %5565 = vmatprep.subr.bf16.mxu1 %v5923_v3  ;;  %v5940_v14 = vld [vmem:[%s9621_s3 + $0x90] ss:$12 sps:$4 sm:$0xff]   ;;  %v5941_v15 = vld [vmem:[%s9621_s3 + $0xac] ss:$12 sps:$4 sm:$0xff]   ;;  %v5943_v16 = vld [vmem:[%s9621_s3 + $0xa8] ss:$12 sps:$4 sm:$0xff]  }
  0x78   : > { %v5946_v17 = vld [vmem:[%s9621_s3 + $0x8] ss:$12 sps:$4 sm:$0xff]   ;;  %v7117_v18 = vld [vmem:[#allocation5 + $0x4] ss:$12 sps:$4 sm:$0xff]   ;;  %v5949_v21 = vld [vmem:[%s9621_s3 + $0x20] ss:$12 sps:$4 sm:$0xff]  }
  0x79   : > { %v7120_v19 = vld [vmem:[%s7052_s30] sm:$0xff]   ;;  %v7133_v23 = vld [vmem:[#allocation5 + $0x1c] ss:$12 sps:$4 sm:$0xff]   ;;  %v7163_v31 = vld [vmem:[%s7052_s30 + $0x10] sm:$0xff]   ;;  %s4895_s29 = sshll.u32 %s6923_s13, 4  ;;  %s4894_s22 = sshll.u32 %s7048_s24, 7 }
  0x7a   : > { %937 = vmatpush1.bf16.msra.mxu0 %v5925_v4  ;;  %5573 = vmatpush1.bf16.msra.mxu1 %v5925_v4  ;;  %v7123_v20 = vld [vmem:[%s7052_s30 + $0xa0] sm:$0xff]   ;;  %v7138_v24 = vld [vmem:[%s7052_s30 + $0x8] sm:$0xff]   ;;  %v5957_v28 = vld [vmem:[%s9621_s3 + $0x50] ss:$12 sps:$4 sm:$0xff]   ;;  %p438_p12 = scmp.lt.s32.totalorder %s4895_s29, 63  ;;  %s9535_s14 = scalar_lea.vmem [#allocation8], %s4894_s22 }
  0x7b   : > { %938 = vmatprep.subr.bf16.mxu0 %v5926_v5  ;;  %5566 = vmatprep.subr.bf16.mxu1 %v5926_v5  ;;  %v7129_v22 = vld [vmem:[#allocation5] ss:$12 sps:$4 sm:$0xff]   ;;  %v5954_v25 = vld [vmem:[%s9621_s3 + $0x38] ss:$12 sps:$4 sm:$0xff]   ;;  %v7160_v30 = vld [vmem:[#allocation5 + $0x30] ss:$12 sps:$4 sm:$0xff]  }
  0x7c   : > { %v7144_v26 = vld [vmem:[#allocation5 + $0x18] ss:$12 sps:$4 sm:$0xff]   ;;  %v7147_v27 = vld [vmem:[%s7052_s30 + $0xa8] sm:$0xff]   ;;  %v7154_v29 = vld [vmem:[#allocation5 + $0x34] ss:$12 sps:$4 sm:$0xff]   ;;  %s10015_s29 = smov (!%p438_p12, %s4895_s29), 63 }
  0x7d   : > { %v5965_v32 = vld [vmem:[%s9621_s3 + $0x68] ss:$12 sps:$4 sm:$0xff]   ;;  %v5970_v34 = vld [vmem:[%s9621_s3 + $0x80] ss:$12 sps:$4 sm:$0xff]   ;;  %v5976_v38 = vld [vmem:[%s9621_s3 + $0x98] ss:$12 sps:$4 sm:$0xff]  }
  0x7e   : > { %939 = vmatpush1.bf16.msra.mxu0 %v5928_v6  ;;  %5574 = vmatpush1.bf16.msra.mxu1 %v5928_v6  ;;  %v7171_v33 = vld [vmem:[%s7052_s30 + $0xb0] sm:$0xff]   ;;  %v7176_v35 = vld [vmem:[#allocation5 + $0x4c] ss:$12 sps:$4 sm:$0xff]   ;;  %v7208_v43 = vld [vmem:[#allocation5 + $0x7c] ss:$12 sps:$4 sm:$0xff]   ;;  %s4898_s17 = sshll.u32 %s10015_s29, 3 }
  0x7f   : > { %940 = vmatprep.subr.bf16.mxu0 %v5929_v7  ;;  %5567 = vmatprep.subr.bf16.mxu1 %v5929_v7  ;;  %v7178_v36 = vld [vmem:[#allocation5 + $0x48] ss:$12 sps:$4 sm:$0xff]   ;;  %v7192_v39 = vld [vmem:[#allocation5 + $0x64] ss:$12 sps:$4 sm:$0xff]   ;;  %v7195_v40 = vld [vmem:[%s7052_s30 + $0xb8] sm:$0xff]   ;;  %s4896_s27 = sshll.u32 %s10015_s29, 2  ;;  %s7292_s15 = scalar_lea.vmem %s9620_s2, %s4898_s17 }
  0x80   : > { %v7198_v41 = vld [vmem:[#allocation5 + $0x60] ss:$12 sps:$4 sm:$0xff]   ;;  %v5982_v42 = vld [vmem:[%s9621_s3 + $0xb0] ss:$12 sps:$4 sm:$0xff]   ;;  %v7210_v44 = vld [vmem:[#allocation5 + $0x78] ss:$12 sps:$4 sm:$0xff]   ;;  %s7299_s26 = scalar_lea.vmem %s9618_s0, %s4896_s27 }
  0x81   : > { %v7213_v45 = vld [vmem:[%s7052_s30 + $0x20] sm:$0xff]   ;;  %v7215_v46 = vld [vmem:[#allocation5 + $0x8] ss:$12 sps:$4 sm:$0xff]   ;;  %v7224_v49 = vld [vmem:[#allocation5 + $0x90] ss:$12 sps:$4 sm:$0xff]   ;;  %s5187_s16 = sshll.u32 %s6923_s13, 11 }
  0x82   : > { %941 = vmatpush1.bf16.msra.mxu0 %v5931_v8  ;;  %5575 = vmatpush1.bf16.msra.mxu1 %v5931_v8  ;;  %v7219_v47 = vld [vmem:[%s7052_s30 + $0xc0] sm:$0xff]   ;;  %v7228_v50 = vld [vmem:[#allocation5 + $0xac] ss:$12 sps:$4 sm:$0xff]   ;;  %v7232_v51 = vld [vmem:[#allocation5 + $0xa8] ss:$12 sps:$4 sm:$0xff]   ;;  %s10004_s9 = sld [smem:[#allocation148_spill]] }
  0x83   : > { %942 = vmatprep.subr.bf16.mxu0 %v5932_v9  ;;  %5568 = vmatprep.subr.bf16.mxu1 %v5932_v9  ;;  %v7222_v48 = vld [vmem:[#allocation5 + $0x94] ss:$12 sps:$4 sm:$0xff]   ;;  %v7237_v52 = vld [vmem:[%s7052_s30 + $0x28] sm:$0xff]   ;;  %v7261_v56 = vld [vmem:[%s7052_s30 + $0x38] sm:$0xff]   ;;  %s4751_s13 = scalar_lea.sflag [#allocation4], %s7048_s24  ;;  %p10005_p0 = scmp.ne.s32.totalorder %s9694_s21, 0 }
  0x84   : > { %v7240_v53 = vld [vmem:[%s7052_s30 + $0xc8] sm:$0xff]   ;;  %v7251_v54 = vld [vmem:[%s7052_s30 + $0x30] sm:$0xff]   ;;  %v7264_v57 = vld [vmem:[%s7052_s30 + $0xd8] sm:$0xff]   ;;  %s6849_s23 = smov [#allocation8]  }
  0x85   : > { %v7254_v55 = vld [vmem:[%s7052_s30 + $0xd0] sm:$0xff]   ;;  %v7271_v58 = vld [vmem:[%s7052_s30 + $0x40] sm:$0xff]   ;;  %v7282_v60 = vld [vmem:[%s7052_s30 + $0x48] sm:$0xff]   ;;  %s6768_s20 = sshll.u32 %s6849_s23, 4  ;;  %s6769_s20 = int_to_ptr.vmem [resolvable:$false] %s6768_s20 }
  0x86   : > { %943 = vmatpush1.bf16.msra.mxu0 %v5934_v10  ;;  %5576 = vmatpush1.bf16.msra.mxu1 %v5934_v10  ;;  %v7274_v59 = vld [vmem:[%s7052_s30 + $0xe0] sm:$0xff]   ;;  %v7285_v61 = vld [vmem:[%s7052_s30 + $0xe8] sm:$0xff]   ;;  %v7305_v63 = vld [vmem:[%s7052_s30 + $0x50] sm:$0xff]   ;;  %s6770_s29 = scalar_lea.vmem %s6769_s20, 4096 }
  0x87   : > { %944 = vmatprep.subr.bf16.mxu0 %v5935_v11  ;;  %5569 = vmatprep.subr.bf16.mxu1 %v5935_v11  ;;  %v7302_v62 = vld [vmem:[%s7292_s15] sm:$0xff]  ;;  %v7309_v1 = vld [vmem:[%s7052_s30 + $0xf0] sm:$0xff]   ;;  %v7313_v3 = vld [vmem:[%s7292_s15 + $0x8] sm:$0xff] }
  0x88   : > { %vm2272_vm0 = vcmp.gt.s32.totalorder %v7302_v62, 0  ;;  %vm2273_vm1 = vcmp.gt.s32.totalorder %v7313_v3, 0  ;;  %v7322_v5 = vld [vmem:[%s7292_s15 + $0x10] sm:$0xff]  ;;  %v7325_v6 = vld [vmem:[%s7292_s15 + $0x20] sm:$0xff]  ;;  %v7332_v9 = vld [vmem:[%s7052_s30 + $0x58] sm:$0xff]   ;;  %vm2954_vm15 = vcmp.gt.s32.totalorder %v7302_v62, 1  ;;  %s9570_s25 = scalar_lea.hbm %s10004_s9, %s5187_s16 }
  0x89   : > { %v2288_v2 = vsel %vm2272_vm0, 1, %v9640_v0  ;;  %v2289_v4 = vsel %vm2273_vm1, 1, %v9640_v0  ;;  %vm2274_vm2 = vcmp.gt.s32.totalorder %v7322_v5, 0  ;;  %vm2276_vm3 = vcmp.gt.s32.totalorder %v7325_v6, 0  ;;  %v7335_v10 = vld [vmem:[%s7052_s30 + $0xf8] sm:$0xff]  }
  0x8a   : > { %945 = vmatpush1.bf16.msra.mxu0 %v5937_v12  ;;  %5577 = vmatpush1.bf16.msra.mxu1 %v5937_v12  ;;  %v2290_v7 = vsel %vm2274_vm2, 1, %v9640_v0  ;;  %v2292_v8 = vsel %vm2276_vm3, 1, %v9640_v0  ;;  %v7338_v11 = vld [vmem:[%s7292_s15 + $0x18] sm:$0xff]  ;;  %v7341_v12 = vld [vmem:[%s7292_s15 + $0x30] sm:$0xff]  ;;  %vm2956_vm1 = vcmp.gt.s32.totalorder %v7322_v5, 1  ;;  %vm2955_vm2 = vcmp.gt.s32.totalorder %v7313_v3, 1 }
  0x8b   : > { %946 = vmatprep.subr.bf16.mxu0 %v5938_v13  ;;  %5570 = vmatprep.subr.bf16.mxu1 %v5938_v13  ;;  %vm2275_vm4 = vcmp.gt.s32.totalorder %v7338_v11, 0  ;;  %vm2278_vm5 = vcmp.gt.s32.totalorder %v7341_v12, 0  ;;  %vm2958_vm3 = vcmp.gt.s32.totalorder %v7325_v6, 1 }
  0x8c   : > { %2305 = vperm.xlu0 %5918, %v2288_v2   ;;  %2311 = vperm.xlu1 %5919, %v2290_v7   ;;  %v2291_v13 = vsel %vm2275_vm4, 1, %v9640_v0  ;;  %v7388_v2 = vld [vmem:[#allocation5 + $0x38] ss:$12 sps:$4 sm:$0xff]   ;;  %vm2957_vm4 = vcmp.gt.s32.totalorder %v7338_v11, 1 }
  0x8e   : > { %947 = vmatpush1.bf16.msra.mxu0 %v5940_v14  ;;  %5578 = vmatpush1.bf16.msra.mxu1 %v5940_v14  ;;  %v2294_v14 = vsel %vm2278_vm5, 1, %v9640_v0  ;;  %vm2960_vm5 = vcmp.gt.s32.totalorder %v7341_v12, 1 }
  0x8f   : > { %948 = vmatprep.subr.bf16.mxu0 %v5941_v15  ;;  %5571 = vmatprep.subr.bf16.mxu1 %v5941_v15  ;;  %v7352_v15 = vld [vmem:[%s7292_s15 + $0x28] sm:$0xff] }
  0x90   : > { %2308 = vperm.xlu0 %5918, %v2289_v4   ;;  %2314 = vperm.xlu1 %5919, %v2291_v13   ;;  %vm2277_vm6 = vcmp.gt.s32.totalorder %v7352_v15, 0  ;;  %v7407_v13 = vld [vmem:[#allocation5 + $0x50] ss:$12 sps:$4 sm:$0xff]  }
  0x91   : > { %9704 = vst [vmem:[#allocation19_spill] sm:$0xff] %v7407_v13 }
  0x92   : > { %949 = vmatpush1.bf16.msra.mxu0 %v5943_v16  ;;  %5579 = vmatpush1.bf16.msra.mxu1 %v5943_v16  ;;  %v7355_v16 = vld [vmem:[%s7292_s15 + $0x40] sm:$0xff] }
  0x93   : > { %5356 = vmatprep.subr.bf16.mxu1 %v5946_v17  ;;  %1704 = vmatprep.subr.bf16.mxu0 %v7117_v18  ;;  %vm2280_vm7 = vcmp.gt.s32.totalorder %v7355_v16, 0 }
  0x94   : > { %2317 = vperm.xlu0 %5918, %v2292_v8   ;;  %v7402_v8 = vld [vmem:[%s7292_s15 + $0x70] sm:$0xff] }
  0x95   : > { %967 = vmatmul.mubr.bf16.vlgmr.msra.gmra.mrb[0].mxu0 %v7120_v19  ;;  %1167 = vmatmul.mubr.bf16.vlgmr.msra.gmra.mrb[0].mxu1 %v7123_v20  ;;  %vm2286_vm13 = vcmp.gt.s32.totalorder %v7402_v8, 0 }
  0x96   : > { %5357 = vmatpush3.bf16.msra.mxu1 %v5946_v17  ;;  %976 = vmatprep.mubr.bf16.mxu0 %v9640_v0  ;;  %v2293_v17 = vsel %vm2277_vm6, 1, %v9640_v0  ;;  %vm2959_vm6 = vcmp.gt.s32.totalorder %v7352_v15, 1 }
  0x97   : > { %1176 = vmatprep.mubr.bf16.mxu1 %v9640_v0  ;;  %5358 = vmatprep.subr.bf16.mxu1 %v5949_v21 }
  0x98   : > { %1705 = vmatpush1.bf16.msra.mxu0 %v7129_v22  ;;  %2323 = vperm.xlu0 %5918, %v2294_v14  }
  0x99   : > { %1706 = vmatprep.subr.bf16.mxu0 %v7133_v23  ;;  %2320 = vperm.xlu1 %5919, %v2293_v17   ;;  %v2302_v17 = vsel %vm2286_vm13, 1, %v9640_v0  ;;  %vm2968_vm13 = vcmp.gt.s32.totalorder %v7402_v8, 1 }
  0x9a   : > { %5359 = vmatpush3.bf16.msra.mxu1 %v5949_v21  ;;  %v7362_v21 = vld [vmem:[%s7052_s30 + $0x60] sm:$0xff]  }
  0x9b   : > { %5360 = vmatprep.subr.bf16.mxu1 %v5954_v25 }
  0x9c   : > { %1707 = vmatpush1.bf16.msra.mxu0 %v7144_v26 }
  0x9d   : > { %977 = vmatmul.mubr.bf16.gmra.mrb[4].mxu0 %v7138_v24  ;;  %1177 = vmatmul.mubr.bf16.gmra.mrb[4].mxu1 %v7147_v27 }
  0x9e   : > { %986 = vmatprep.mubr.bf16.mxu0 %v9640_v0  ;;  %1186 = vmatprep.mubr.bf16.mxu1 %v9640_v0 }
  0x9f   : > { %5361 = vmatpush3.bf16.msra.mxu1 %v5954_v25  ;;  %1708 = vmatprep.subr.bf16.mxu0 %v7154_v29  ;;  %v7365_v25 = vld [vmem:[%s7292_s15 + $0x38] sm:$0xff] }
  0xa0   : > { %5362 = vmatprep.subr.bf16.mxu1 %v5957_v28  ;;  %1709 = vmatpush1.bf16.msra.mxu0 %v7160_v30  ;;  %vm2279_vm8 = vcmp.gt.s32.totalorder %v7365_v25, 0 }
  0xa1   : > { %1710 = vmatprep.subr.bf16.mxu0 %v7176_v35 }
  0xa3   : > { %5363 = vmatpush3.bf16.msra.mxu1 %v5957_v28  ;;  %v7370_v28 = vld [vmem:[#allocation5 + $0x20] ss:$12 sps:$4 sm:$0xff]  }
  0xa4   : > { %5364 = vmatprep.subr.bf16.mxu1 %v5965_v32  ;;  %1711 = vmatpush1.bf16.msra.mxu0 %v7178_v36 }
  0xa5   : > { %987 = vmatmul.mubr.bf16.gmra.mrb[8].mxu0 %v7163_v31  ;;  %1187 = vmatmul.mubr.bf16.gmra.mrb[8].mxu1 %v7171_v33 }
  0xa6   : > { %996 = vmatprep.mubr.bf16.mxu0 %v9640_v0  ;;  %1196 = vmatprep.mubr.bf16.mxu1 %v9640_v0 }
  0xa7   : > { %5365 = vmatpush3.bf16.msra.mxu1 %v5965_v32  ;;  %1712 = vmatprep.subr.bf16.mxu0 %v7192_v39  ;;  %v2295_v32 = vsel %vm2279_vm8, 1, %v9640_v0  ;;  %vm2961_vm8 = vcmp.gt.s32.totalorder %v7365_v25, 1 }
  0xa8   : > { %5366 = vmatprep.subr.bf16.mxu1 %v5970_v34  ;;  %1713 = vmatpush1.bf16.msra.mxu0 %v7198_v41 }
  0xa9   : > { %1714 = vmatprep.subr.bf16.mxu0 %v7208_v43  ;;  %2326 = vperm.xlu1 %5919, %v2295_v32   ;;  %v7421_v32 = vld [vmem:[#allocation5 + $0x68] ss:$12 sps:$4 sm:$0xff]  }
  0xab   : > { %5367 = vmatpush3.bf16.msra.mxu1 %v5970_v34 }
  0xac   : > { %5368 = vmatprep.subr.bf16.mxu1 %v5976_v38  ;;  %1715 = vmatpush1.bf16.msra.mxu0 %v7210_v44 }
  0xad   : > { %997 = vmatmul.mubr.bf16.gmra.mrb[12].mxu0 %v7185_v37  ;;  %1197 = vmatmul.mubr.bf16.gmra.mrb[12].mxu1 %v7195_v40 }
  0xae   : > { %1006 = vmatprep.mubr.bf16.mxu0 %v9640_v0  ;;  %1206 = vmatprep.mubr.bf16.mxu1 %v9640_v0 }
  0xaf   : > { %5369 = vmatpush3.bf16.msra.mxu1 %v5976_v38  ;;  %1716 = vmatprep.subr.bf16.mxu0 %v7222_v48  ;;  %v7381_v38 = vld [vmem:[%s7292_s15 + $0x48] sm:$0xff] }
  0xb0   : > { %5370 = vmatprep.subr.bf16.mxu1 %v5982_v42  ;;  %1717 = vmatpush1.bf16.msra.mxu0 %v7224_v49  ;;  %vm2281_vm10 = vcmp.gt.s32.totalorder %v7381_v38, 0 }
  0xb1   : > { %1718 = vmatprep.subr.bf16.mxu0 %v7228_v50  ;;  %v2297_v4 = vsel %vm2281_vm10, 1, %v9640_v0  ;;  %vm2963_vm10 = vcmp.gt.s32.totalorder %v7381_v38, 1 }
  0xb2   : > { %2332 = vperm.xlu1 %5919, %v2297_v4   ;;  %v7434_v4 = vld [vmem:[#allocation5 + $0x80] ss:$12 sps:$4 sm:$0xff]  }
  0xb3   : > { %5371 = vmatpush3.bf16.msra.mxu1 %v5982_v42  ;;  %v7384_v42 = vld [vmem:[%s7292_s15 + $0x60] sm:$0xff] }
  0xb4   : > { %5436 = vmatprep.subr.bf16.mxu1 %v7215_v46  ;;  %1719 = vmatpush1.bf16.msra.mxu0 %v7232_v51  ;;  %vm2284_vm11 = vcmp.gt.s32.totalorder %v7384_v42, 0 }
  0xb5   : > { %1007 = vmatmul.mubr.bf16.gmra.mrb[16].mxu0 %v7213_v45  ;;  %1207 = vmatmul.mubr.bf16.gmra.mrb[16].mxu1 %v7219_v47  ;;  %v2300_v7 = vsel %vm2284_vm11, 1, %v9640_v0  ;;  %vm2966_vm11 = vcmp.gt.s32.totalorder %v7384_v42, 1 }
  0xb6   : > { %1016 = vmatprep.mubr.bf16.mxu0 %v9640_v0  ;;  %1216 = vmatprep.mubr.bf16.mxu1 %v9640_v0 }
  0xb7   : > { %2392 = vmatprep.subr.bf16.mxu0 %v7117_v18  ;;  %v2296_v18 = vsel %vm2280_vm7, 1, %v9640_v0  ;;  %vm2962_vm7 = vcmp.gt.s32.totalorder %v7355_v16, 1 }
  0xb8   : > { %2329 = vperm.xlu0 %5918, %v2296_v18   ;;  %v7416_v18 = vld [vmem:[%s7292_s15 + $0x68] sm:$0xff] }
  0xb9   : > { %vm2285_vm14 = vcmp.gt.s32.totalorder %v7416_v18, 0 }
  0xbd   : > { %1017 = vmatmul.mubr.bf16.gmra.mrb[20].mxu0 %v7237_v52  ;;  %1217 = vmatmul.mubr.bf16.gmra.mrb[20].mxu1 %v7240_v53 }
  0xbe   : > { %1026 = vmatprep.mubr.bf16.mxu0 %v9640_v0  ;;  %1226 = vmatprep.mubr.bf16.mxu1 %v9640_v0 }
  0xc5   : > { %1027 = vmatmul.mubr.bf16.gmra.mrb[24].mxu0 %v7251_v54  ;;  %1227 = vmatmul.mubr.bf16.gmra.mrb[24].mxu1 %v7254_v55 }
  0xc6   : > { %1036 = vmatprep.mubr.bf16.mxu0 %v9640_v0  ;;  %1236 = vmatprep.mubr.bf16.mxu1 %v9640_v0 }
  0xcd   : > { %1037 = vmatmul.mubr.bf16.gmra.mrb[28].mxu0 %v7261_v56  ;;  %1237 = vmatmul.mubr.bf16.gmra.mrb[28].mxu1 %v7264_v57 }
  0xce   : > { %1046 = vmatprep.mubr.bf16.mxu0 %v9640_v0  ;;  %1246 = vmatprep.mubr.bf16.mxu1 %v9640_v0 }
  0xd5   : > { %1047 = vmatmul.mubr.bf16.gmra.mrb[32].mxu0 %v7271_v58  ;;  %1247 = vmatmul.mubr.bf16.gmra.mrb[32].mxu1 %v7274_v59 }
  0xd6   : > { %1056 = vmatprep.mubr.bf16.mxu0 %v9640_v0  ;;  %1256 = vmatprep.mubr.bf16.mxu1 %v9640_v0 }
  0xdd   : > { %1057 = vmatmul.mubr.bf16.gmra.mrb[36].mxu0 %v7282_v60  ;;  %1257 = vmatmul.mubr.bf16.gmra.mrb[36].mxu1 %v7285_v61 }
  0xde   : > { %1066 = vmatprep.mubr.bf16.mxu0 %v9640_v0  ;;  %1266 = vmatprep.mubr.bf16.mxu1 %v9640_v0 }
  0xe5   : > { %1067 = vmatmul.mubr.bf16.gmra.mrb[40].mxu0 %v7305_v63  ;;  %1267 = vmatmul.mubr.bf16.gmra.mrb[40].mxu1 %v7309_v1 }
  0xe6   : > { %1076 = vmatprep.mubr.bf16.mxu0 %v9640_v0  ;;  %1276 = vmatprep.mubr.bf16.mxu1 %v9640_v0 }
  0xed   : > { %1077 = vmatmul.mubr.bf16.gmra.mrb[44].mxu0 %v7332_v9  ;;  %1277 = vmatmul.mubr.bf16.gmra.mrb[44].mxu1 %v7335_v10 }
  0xee   : > { %1086 = vmatprep.mubr.bf16.mxu0 %v9640_v0  ;;  %5372 = vmatprep.mubr.bf16.mxu1 %v7120_v19  ;;  %v7368_v19 = vld [vmem:[%s7292_s15 + $0x50] sm:$0xff] }
  0xef   : > { %vm2282_vm9 = vcmp.gt.s32.totalorder %v7368_v19, 0 }
  0xf0   : > { %v2298_v34 = vsel %vm2282_vm9, 1, %v9640_v0  ;;  %vm2964_vm9 = vcmp.gt.s32.totalorder %v7368_v19, 1 }
  0xf1   : > { %2335 = vperm.xlu0 %5918, %v2298_v34   ;;  %v2301_v34 = vsel %vm2285_vm14, 1, %v9640_v0  ;;  %vm2967_vm14 = vcmp.gt.s32.totalorder %v7416_v18, 1 }
  0xf5   : > { %1087 = vmatmul.mubr.bf16.gmra.mrb[48].mxu0 %v7362_v21  ;;  %5373 = vmatmul.mubr.bf16.vlgmr.msra.gmra.mrb[48].mxu1 %v7138_v24  ;;  %v7393_v24 = vld [vmem:[%s7052_s30 + $0x68] sm:$0xff]  }
  0xf6   : > { %5437 = vmatpush3.bf16.msra.mxu1 %v7215_v46  ;;  %1096 = vmatprep.mubr.bf16.mxu0 %v9640_v0 }
  0xf7   : > { %5376 = vmatprep.mubr.bf16.mxu1 %v7163_v31  ;;  %5438 = vmatprep.subr.bf16.mxu1 %v7370_v28  ;;  %v7399_v31 = vld [vmem:[%s7292_s15 + $0x58] sm:$0xff] }
  0xf8   : > { %vm2283_vm12 = vcmp.gt.s32.totalorder %v7399_v31, 0  ;;  %2341 = vperm.xlu0 %5918, %v2300_v7   ;;  %v2970_v7 = vsel %vm2954_vm15, 1, %v9640_v0  ;;  %vm3636_vm15 = vcmp.gt.s32.totalorder %v7302_v62, 2 }
  0xf9   : > { %v2299_v14 = vsel %vm2283_vm12, 1, %v9640_v0  ;;  %vm2965_vm12 = vcmp.gt.s32.totalorder %v7399_v31, 1 }
  0xfa   : > { %5439 = vmatpush3.bf16.msra.mxu1 %v7370_v28  ;;  %2338 = vperm.xlu1 %5919, %v2299_v14  }
  0xfb   : > { %5440 = vmatprep.subr.bf16.mxu1 %v7388_v2 }
  0xfc   : > { %2347 = vperm.xlu0 %5918, %v2302_v17   ;;  %v7446_v17 = vld [vmem:[#allocation5 + $0x98] ss:$12 sps:$4 sm:$0xff]  }
  0xfd   : > { %1097 = vmatmul.mubr.bf16.gmra.mrb[52].mxu0 %v7393_v24  ;;  %5377 = vmatmul.mubr.bf16.gmra.mrb[52].mxu1 %v7185_v37  ;;  %v7424_v37 = vld [vmem:[%s7052_s30 + $0x70] sm:$0xff]  }
  0xfe   : > { %1106 = vmatprep.mubr.bf16.mxu0 %v9640_v0  ;;  %5380 = vmatprep.mubr.bf16.mxu1 %v7213_v45  ;;  %v7429_v45 = vld [vmem:[%s7292_s15 + $0x78] sm:$0xff] }
  0xff   : > { %5441 = vmatpush3.bf16.msra.mxu1 %v7388_v2  ;;  %vm2287_vm0 = vcmp.gt.s32.totalorder %v7429_v45, 0  ;;  %2344 = vperm.xlu1 %5919, %v2301_v34   ;;  %v7450_v34 = vld [vmem:[%s7052_s30 + $0x78] sm:$0xff]  }
 0x100   : > { %5442 = vmatprep.subr.bf16.mxu1 %v7407_v13  ;;  %v2303_v14 = vsel %vm2287_vm0, 1, %v9640_v0  ;;  %2987 = vperm.xlu0 %5918, %v2970_v7   ;;  %v2974_v7 = vsel %vm2958_vm3, 1, %v9640_v0  ;;  %vm2969_vm0 = vcmp.gt.s32.totalorder %v7429_v45, 1  ;;  %vm3640_vm3 = vcmp.gt.s32.totalorder %v7325_v6, 2 }
 0x103   : > { %5443 = vmatpush3.bf16.msra.mxu1 %v7407_v13  ;;  %2350 = vperm.xlu1 %5919, %v2303_v14   ;;  %v2971_v13 = vsel %vm2955_vm2, 1, %v9640_v0  ;;  %v2973_v14 = vsel %vm2957_vm4, 1, %v9640_v0  ;;  %vm3637_vm2 = vcmp.gt.s32.totalorder %v7313_v3, 2  ;;  %vm3639_vm4 = vcmp.gt.s32.totalorder %v7338_v11, 2 }
 0x104   : > { %5444 = vmatprep.subr.bf16.mxu1 %v7421_v32 }
 0x105   : > { %1107 = vmatmul.mubr.bf16.gmra.mrb[56].mxu0 %v7424_v37  ;;  %5381 = vmatmul.mubr.bf16.gmra.mrb[56].mxu1 %v7237_v52  ;;  %v2972_v52 = vsel %vm2956_vm1, 1, %v9640_v0  ;;  %vm3638_vm1 = vcmp.gt.s32.totalorder %v7322_v5, 2 }
 0x106   : > { %1116 = vmatprep.mubr.bf16.mxu0 %v9640_v0  ;;  %5384 = vmatprep.mubr.bf16.mxu1 %v7251_v54  ;;  %v7457_v54 = vld [vmem:[#allocation5 + $0xb0] ss:$12 sps:$4 sm:$0xff]  }
 0x107   : > { %5445 = vmatpush3.bf16.msra.mxu1 %v7421_v32  ;;  %2993 = vperm.xlu0 %5918, %v2972_v52   ;;  %v7471_v52 = vld [vmem:[%s7052_s30 + $0x80] sm:$0xff]  }
 0x108   : > { %5446 = vmatprep.subr.bf16.mxu1 %v7434_v4  ;;  %2990 = vperm.xlu1 %5919, %v2971_v13   ;;  %v2976_v13 = vsel %vm2960_vm5, 1, %v9640_v0  ;;  %vm3642_vm5 = vcmp.gt.s32.totalorder %v7341_v12, 2 }
 0x10b   : > { %5447 = vmatpush3.bf16.msra.mxu1 %v7434_v4  ;;  %2999 = vperm.xlu0 %5918, %v2974_v7   ;;  %v2977_v7 = vsel %vm2961_vm8, 1, %v9640_v0  ;;  %vm3643_vm8 = vcmp.gt.s32.totalorder %v7365_v25, 2 }
 0x10c   : > { %5448 = vmatprep.subr.bf16.mxu1 %v7446_v17  ;;  %2996 = vperm.xlu1 %5919, %v2973_v14   ;;  %v2980_v14 = vsel %vm2964_vm9, 1, %v9640_v0  ;;  %vm3646_vm9 = vcmp.gt.s32.totalorder %v7368_v19, 2 }
 0x10d   : > { %1117 = vmatmul.mubr.bf16.gmra.mrb[60].mxu0 %v7450_v34  ;;  %5385 = vmatmul.mubr.bf16.gmra.mrb[60].mxu1 %v7261_v56  ;;  %v2975_v56 = vsel %vm2959_vm6, 1, %v9640_v0  ;;  %vm3641_vm6 = vcmp.gt.s32.totalorder %v7352_v15, 2 }
 0x10e   : > { %1126 = vmatprep.mubr.bf16.mxu0 %v9640_v0  ;;  %5388 = vmatprep.mubr.bf16.mxu1 %v7271_v58  ;;  %v2978_v58 = vsel %vm2962_vm7, 1, %v9640_v0  ;;  %vm3644_vm7 = vcmp.gt.s32.totalorder %v7355_v16, 2 }
 0x10f   : > { %5449 = vmatpush3.bf16.msra.mxu1 %v7446_v17  ;;  %3005 = vperm.xlu0 %5918, %v2976_v13   ;;  %v5999_v13 = vld [vmem:[%s7052_s30 + $0x88] sm:$0xff]  }
 0x110   : > { %5450 = vmatprep.subr.bf16.mxu1 %v7457_v54  ;;  %3002 = vperm.xlu1 %5919, %v2975_v56   ;;  %v2979_v56 = vsel %vm2963_vm10, 1, %v9640_v0  ;;  %vm3645_vm10 = vcmp.gt.s32.totalorder %v7381_v38, 2 }
 0x113   : > { %5451 = vmatpush3.bf16.msra.mxu1 %v7457_v54  ;;  %3011 = vperm.xlu0 %5918, %v2978_v58   ;;  %v2984_v58 = vsel %vm2968_vm13, 1, %v9640_v0  ;;  %vm3650_vm13 = vcmp.gt.s32.totalorder %v7402_v8, 2 }
 0x114   : > { %5468 = vmatprep.subr.bf16.mxu1 %v7215_v46  ;;  %3008 = vperm.xlu1 %5919, %v2977_v7   ;;  %v6003_v7 = vld [vmem:[%s7052_s30 + $0x90] sm:$0xff]  }
 0x115   : > { %1127 = vmatmul.mubr.bf16.gmra.mrb[64].mxu0 %v7471_v52  ;;  %5389 = vmatmul.mubr.bf16.gmra.mrb[64].mxu1 %v7282_v60  ;;  %v2982_v60 = vsel %vm2966_vm11, 1, %v9640_v0  ;;  %vm3648_vm11 = vcmp.gt.s32.totalorder %v7384_v42, 2 }
 0x116   : > { %1136 = vmatprep.mubr.bf16.mxu0 %v9640_v0  ;;  %5392 = vmatprep.mubr.bf16.mxu1 %v7305_v63  ;;  %v2981_v63 = vsel %vm2965_vm12, 1, %v9640_v0  ;;  %vm3647_vm12 = vcmp.gt.s32.totalorder %v7399_v31, 2 }
 0x117   : > { %3017 = vperm.xlu0 %5918, %v2980_v14   ;;  %v2983_v14 = vsel %vm2967_vm14, 1, %v9640_v0  ;;  %vm3649_vm14 = vcmp.gt.s32.totalorder %v7416_v18, 2 }
 0x118   : > { %3014 = vperm.xlu1 %5919, %v2979_v56   ;;  %v3654_v56 = vsel %vm3638_vm1, 1, %v9640_v0  ;;  %vm4320_vm1 = vcmp.gt.s32.totalorder %v7322_v5, 3 }
 0x11b   : > { %3023 = vperm.xlu0 %5918, %v2982_v60   ;;  %v6005_v60 = vld [vmem:[%s7052_s30 + $0x98] sm:$0xff]  }
 0x11c   : > { %3020 = vperm.xlu1 %5919, %v2981_v63   ;;  %v3653_v63 = vsel %vm3637_vm2, 1, %v9640_v0  ;;  %vm4319_vm2 = vcmp.gt.s32.totalorder %v7313_v3, 3 }
 0x11d   : > { %1137 = vmatmul.mubr.bf16.gmra.mrb[68].mxu0 %v5999_v13  ;;  %5393 = vmatmul.mubr.bf16.gmra.mrb[68].mxu1 %v7332_v9  ;;  %v3652_v9 = vsel %vm3636_vm15, 1, %v9640_v0  ;;  %vm4318_vm15 = vcmp.gt.s32.totalorder %v7302_v62, 3 }
 0x11e   : > { %1146 = vmatprep.mubr.bf16.mxu0 %v9640_v0  ;;  %5396 = vmatprep.mubr.bf16.mxu1 %v7362_v21  ;;  %v2985_v21 = vsel %vm2969_vm0, 1, %v9640_v0  ;;  %vm3651_vm0 = vcmp.gt.s32.totalorder %v7429_v45, 2 }
 0x11f   : > { %3029 = vperm.xlu0 %5918, %v2984_v58   ;;  %v3658_v58 = vsel %vm3642_vm5, 1, %v9640_v0  ;;  %vm4324_vm5 = vcmp.gt.s32.totalorder %v7341_v12, 3 }
 0x120   : > { %3026 = vperm.xlu1 %5919, %v2983_v14   ;;  %v3657_v14 = vsel %vm3641_vm6, 1, %v9640_v0  ;;  %vm4323_vm6 = vcmp.gt.s32.totalorder %v7352_v15, 3  ;;  %v9717_v15 = vld [vmem:[#allocation19_spill] sm:$0xff] }
 0x123   : > { %3669 = vperm.xlu0 %5918, %v3652_v9   ;;  %v3662_v9 = vsel %vm3646_vm9, 1, %v9640_v0  ;;  %vm4328_vm9 = vcmp.gt.s32.totalorder %v7368_v19, 3 }
 0x124   : > { %3032 = vperm.xlu1 %5919, %v2985_v21  }
 0x125   : > { %1147 = vmatmul.mubr.bf16.gmra.mrb[72].mxu0 %v6003_v7  ;;  %5397 = vmatmul.mubr.bf16.gmra.mrb[72].mxu1 %v7393_v24  ;;  %v3656_v24 = vsel %vm3640_vm3, 1, %v9640_v0  ;;  %vm4322_vm3 = vcmp.gt.s32.totalorder %v7325_v6, 3 }
 0x126   : > { %1156 = vmatprep.mubr.bf16.mxu0 %v9640_v0  ;;  %5400 = vmatprep.mubr.bf16.mxu1 %v7424_v37  ;;  %v3655_v37 = vsel %vm3639_vm4, 1, %v9640_v0  ;;  %vm4321_vm4 = vcmp.gt.s32.totalorder %v7338_v11, 3 }
 0x127   : > { %3675 = vperm.xlu0 %5918, %v3654_v56  }
 0x128   : > { %3672 = vperm.xlu1 %5919, %v3653_v63  }
 0x12b   : > { %3681 = vperm.xlu0 %5918, %v3656_v24  }
 0x12c   : > { %3678 = vperm.xlu1 %5919, %v3655_v37  }
 0x12d   : > { %1157 = vmatmul.mubr.bf16.gmra.mrb[76].mxu0 %v6005_v60  ;;  %5401 = vmatmul.mubr.bf16.gmra.mrb[76].mxu1 %v7450_v34  ;;  %v3660_v34 = vsel %vm3644_vm7, 1, %v9640_v0  ;;  %vm4326_vm7 = vcmp.gt.s32.totalorder %v7355_v16, 3 }
 0x12e   : > { %5404 = vmatprep.mubr.bf16.mxu1 %v7471_v52  ;;  %1736 = vmatprep.mubr.bf16.mxu0 %v9640_v0  ;;  %v3659_v52 = vsel %vm3643_vm8, 1, %v9640_v0  ;;  %vm4325_vm8 = vcmp.gt.s32.totalorder %v7365_v25, 3 }
 0x12f   : > { %3687 = vperm.xlu0 %5918, %v3658_v58  }
 0x130   : > { %3684 = vperm.xlu1 %5919, %v3657_v14  }
 0x133   : > { %3693 = vperm.xlu0 %5918, %v3660_v34  }
 0x134   : > { %3690 = vperm.xlu1 %5919, %v3659_v52  }
 0x135   : > { %5405 = vmatmul.mubr.bf16.gmra.mrb[80].mxu1 %v5999_v13  ;;  %1737 = vmatmul.mubr.bf16.vlgmr.msra.gmra.mrb[0].mxu0 %v9640_v0  ;;  %v3661_v13 = vsel %vm3645_vm10, 1, %v9640_v0  ;;  %vm4327_vm10 = vcmp.gt.s32.totalorder %v7381_v38, 3 }
 0x136   : > { %5408 = vmatprep.mubr.bf16.mxu1 %v6003_v7  ;;  %1746 = vmatprep.mubr.bf16.mxu0 %v9640_v0  ;;  %v3664_v7 = vsel %vm3648_vm11, 1, %v9640_v0  ;;  %vm4330_vm11 = vcmp.gt.s32.totalorder %v7384_v42, 3 }
 0x137   : > { %2393 = vmatpush1.bf16.msra.mxu0 %v7129_v22  ;;  %3699 = vperm.xlu0 %5918, %v3662_v9   ;;  %v3663_v22 = vsel %vm3647_vm12, 1, %v9640_v0  ;;  %vm4329_vm12 = vcmp.gt.s32.totalorder %v7399_v31, 3 }
 0x138   : > { %2394 = vmatprep.subr.bf16.mxu0 %v7133_v23  ;;  %3696 = vperm.xlu1 %5919, %v3661_v13   ;;  %v3666_v23 = vsel %vm3650_vm13, 1, %v9640_v0  ;;  %vm4332_vm13 = vcmp.gt.s32.totalorder %v7402_v8, 3 }
 0x13b   : > { %2395 = vmatpush1.bf16.msra.mxu0 %v7144_v26  ;;  %3705 = vperm.xlu0 %5918, %v3664_v7   ;;  %v3665_v26 = vsel %vm3649_vm14, 1, %v9640_v0  ;;  %vm4331_vm14 = vcmp.gt.s32.totalorder %v7416_v18, 3 }
 0x13c   : > { %2396 = vmatprep.subr.bf16.mxu0 %v7154_v29  ;;  %3702 = vperm.xlu1 %5919, %v3663_v22   ;;  %v3667_v29 = vsel %vm3651_vm0, 1, %v9640_v0 }
 0x13d   : > { %5409 = vmatmul.mubr.bf16.gmra.mrb[84].mxu1 %v6005_v60  ;;  %1747 = vmatmul.mubr.bf16.gmra.mrb[4].mxu0 %v9640_v0 }
 0x13e   : > { %5412 = vmatprep.mubr.bf16.mxu1 %v7123_v20  ;;  %1756 = vmatprep.mubr.bf16.mxu0 %v9640_v0  ;;  %v4334_v20 = vsel %vm4318_vm15, 1, %v9640_v0  ;;  %vm4333_vm15 = vcmp.gt.s32.totalorder %v7429_v45, 3 }
 0x13f   : > { %2397 = vmatpush1.bf16.msra.mxu0 %v7160_v30  ;;  %3711 = vperm.xlu0 %5918, %v3666_v23   ;;  %v4336_v30 = vsel %vm4320_vm1, 1, %v9640_v0 }
 0x140   : > { %2398 = vmatprep.subr.bf16.mxu0 %v7176_v35  ;;  %3708 = vperm.xlu1 %5919, %v3665_v26   ;;  %v4337_v35 = vsel %vm4321_vm4, 1, %v9640_v0 }
 0x143   : > { %2399 = vmatpush1.bf16.msra.mxu0 %v7178_v36  ;;  %4351 = vperm.xlu0 %5918, %v4334_v20   ;;  %v4340_v36 = vsel %vm4324_vm5, 1, %v9640_v0 }
 0x144   : > { %2400 = vmatprep.subr.bf16.mxu0 %v7192_v39  ;;  %3714 = vperm.xlu1 %5919, %v3667_v29   ;;  %v4339_v39 = vsel %vm4323_vm6, 1, %v9640_v0 }
 0x145   : > { %5413 = vmatmul.mubr.bf16.gmra.mrb[88].mxu1 %v7147_v27  ;;  %1757 = vmatmul.mubr.bf16.gmra.mrb[8].mxu0 %v9640_v0  ;;  %v4335_v27 = vsel %vm4319_vm2, 1, %v9640_v0 }
 0x146   : > { %5416 = vmatprep.mubr.bf16.mxu1 %v7171_v33  ;;  %1766 = vmatprep.mubr.bf16.mxu0 %v9640_v0  ;;  %v4338_v33 = vsel %vm4322_vm3, 1, %v9640_v0 }
 0x147   : > { %2401 = vmatpush1.bf16.msra.mxu0 %v7198_v41  ;;  %4357 = vperm.xlu0 %5918, %v4336_v30   ;;  %v6680_v41 = vld [vmem:[#allocation5 + $0x4] ss:$12 sps:$4 sm:$0xff]  }
 0x148   : > { %2402 = vmatprep.subr.bf16.mxu0 %v7208_v43  ;;  %4354 = vperm.xlu1 %5919, %v4335_v27   ;;  %v4341_v43 = vsel %vm4325_vm8, 1, %v9640_v0 }
 0x14b   : > { %2403 = vmatpush1.bf16.msra.mxu0 %v7210_v44  ;;  %4363 = vperm.xlu0 %5918, %v4338_v33   ;;  %v4344_v44 = vsel %vm4328_vm9, 1, %v9640_v0 }
 0x14c   : > { %2404 = vmatprep.subr.bf16.mxu0 %v7222_v48  ;;  %4360 = vperm.xlu1 %5919, %v4337_v35   ;;  %v4346_v48 = vsel %vm4330_vm11, 1, %v9640_v0 }
 0x14d   : > { %5417 = vmatmul.mubr.bf16.gmra.mrb[92].mxu1 %v7195_v40  ;;  %1767 = vmatmul.mubr.bf16.gmra.mrb[12].mxu0 %v9640_v0  ;;  %v4342_v40 = vsel %vm4326_vm7, 1, %v9640_v0 }
 0x14e   : > { %5420 = vmatprep.mubr.bf16.mxu1 %v7219_v47  ;;  %1776 = vmatprep.mubr.bf16.mxu0 %v9640_v0  ;;  %v4343_v47 = vsel %vm4327_vm10, 1, %v9640_v0 }
 0x14f   : > { %2405 = vmatpush1.bf16.msra.mxu0 %v7224_v49  ;;  %4369 = vperm.xlu0 %5918, %v4340_v36   ;;  %v4345_v49 = vsel %vm4329_vm12, 1, %v9640_v0 }
 0x150   : > { %2406 = vmatprep.subr.bf16.mxu0 %v7228_v50  ;;  %4366 = vperm.xlu1 %5919, %v4339_v39   ;;  %v4348_v50 = vsel %vm4332_vm13, 1, %v9640_v0 }
 0x153   : > { %2407 = vmatpush1.bf16.msra.mxu0 %v7232_v51  ;;  %4375 = vperm.xlu0 %5918, %v4342_v40   ;;  %v4347_v51 = vsel %vm4331_vm14, 1, %v9640_v0 }
 0x154   : > { %3074 = vmatprep.subr.bf16.mxu0 %v6680_v41  ;;  %4372 = vperm.xlu1 %5919, %v4341_v43  }
 0x155   : > { %5421 = vmatmul.mubr.bf16.gmra.mrb[96].mxu1 %v7240_v53  ;;  %1777 = vmatmul.mubr.bf16.gmra.mrb[16].mxu0 %v9640_v0  ;;  %v4349_v53 = vsel %vm4333_vm15, 1, %v9640_v0 }
 0x156   : > { %5424 = vmatprep.mubr.bf16.mxu1 %v7254_v55  ;;  %1786 = vmatprep.mubr.bf16.mxu0 %v9640_v0 }
 0x157   : > { %4381 = vperm.xlu0 %5918, %v4344_v44  }
 0x158   : > { %4378 = vperm.xlu1 %5919, %v4343_v47  }
 0x15b   : > { %4387 = vperm.xlu0 %5918, %v4346_v48  }
 0x15c   : > { %4384 = vperm.xlu1 %5919, %v4345_v49  }
 0x15d   : > { %5425 = vmatmul.mubr.bf16.gmra.mrb[100].mxu1 %v7264_v57  ;;  %1787 = vmatmul.mubr.bf16.gmra.mrb[20].mxu0 %v9640_v0 }
 0x15e   : > { %5428 = vmatprep.mubr.bf16.mxu1 %v7274_v59  ;;  %1796 = vmatprep.mubr.bf16.mxu0 %v9640_v0 }
 0x15f   : > { %4393 = vperm.xlu0 %5918, %v4348_v50  }
 0x160   : > { %4390 = vperm.xlu1 %5919, %v4347_v51  }
 0x164   : > { %4396 = vperm.xlu1 %5919, %v4349_v53  }
 0x165   : > { %5429 = vmatmul.mubr.bf16.gmra.mrb[104].mxu1 %v7285_v61  ;;  %1797 = vmatmul.mubr.bf16.gmra.mrb[24].mxu0 %v9640_v0 }
 0x166   : > { %5432 = vmatprep.mubr.bf16.mxu1 %v7309_v1  ;;  %1806 = vmatprep.mubr.bf16.mxu0 %v9640_v0 }
 0x168   : > { %v7614_v55 = vpop.f32.mrb[0].mxu1 }
 0x169   : > { %9705 = vst [vmem:[#allocation20_spill] sm:$0xff] %v7614_v55  ;;  %v7616_v57 = vpop.f32.mrb[1].mxu1 }
 0x16a   : > { %9706 = vst [vmem:[#allocation21_spill] sm:$0xff] %v7616_v57  ;;  %v7618_v59 = vpop.f32.mrb[2].mxu1 }
 0x16b   : > { %9707 = vst [vmem:[#allocation22_spill] sm:$0xff] %v7618_v59  ;;  %v7620_v62 = vpop.f32.mrb[3].mxu1 }
 0x16c   : > { %9708 = vst [vmem:[#allocation23_spill] sm:$0xff] %v7620_v62 }
 0x16d   : > { %5433 = vmatmul.mubr.bf16.gmra.mrb[108].mxu1 %v7335_v10  ;;  %1807 = vmatmul.mubr.bf16.gmra.mrb[28].mxu0 %v9640_v0 }
 0x16e   : > { %5452 = vmatprep.mubr.bf16.mxu1 %v9640_v0  ;;  %2424 = vmatprep.mubr.bf16.mxu0 %v9640_v0 }
 0x170   : > { %v7626_v61 = vpop.f32.mrb[4].mxu1 }
 0x171   : > { %9709 = vst [vmem:[#allocation24_spill] sm:$0xff] %v7626_v61  ;;  %v7628_v1 = vpop.f32.mrb[5].mxu1 }
 0x172   : > { %9710 = vst [vmem:[#allocation25_spill] sm:$0xff] %v7628_v1  ;;  %v7630_v3 = vpop.f32.mrb[6].mxu1 }
 0x173   : > { %9711 = vst [vmem:[#allocation26_spill] sm:$0xff] %v7630_v3  ;;  %v7632_v5 = vpop.f32.mrb[7].mxu1 }
 0x174   : > { %9712 = vst [vmem:[#allocation27_spill] sm:$0xff] %v7632_v5 }
 0x175   : > { %5453 = vmatmul.mubr.bf16.vlgmr.msra.gmra.mrb[112].mxu1 %v9640_v0 }
 0x176   : > { %5456 = vmatprep.mubr.bf16.mxu1 %v9640_v0  ;;  %5469 = vmatpush3.bf16.msra.mxu1 %v7215_v46 }
 0x177   : > { %5470 = vmatprep.subr.bf16.mxu1 %v7370_v28 }
 0x178   : > { %v7638_v6 = vpop.f32.mrb[8].mxu1 }
 0x179   : > { %9713 = vst [vmem:[#allocation28_spill] sm:$0xff] %v7638_v6  ;;  %v7640_v10 = vpop.f32.mrb[9].mxu1 }
 0x17a   : > { %9714 = vst [vmem:[#allocation29_spill] sm:$0xff] %v7640_v10  ;;  %v7642_v11 = vpop.f32.mrb[10].mxu1  ;;  %5471 = vmatpush3.bf16.msra.mxu1 %v7370_v28 }
 0x17b   : > { %9715 = vst [vmem:[#allocation30_spill] sm:$0xff] %v7642_v11  ;;  %v7645_v12 = vpop.f32.mrb[11].mxu1  ;;  %5472 = vmatprep.subr.bf16.mxu1 %v7388_v2 }
 0x17c   : > { %9716 = vst [vmem:[#allocation31_spill] sm:$0xff] %v7645_v12 }
 0x17d   : > { %5457 = vmatmul.mubr.bf16.gmra.mrb[116].mxu1 %v9640_v0 }
 0x17e   : > { %5460 = vmatprep.mubr.bf16.mxu1 %v9640_v0  ;;  %5473 = vmatpush3.bf16.msra.mxu1 %v7388_v2 }
 0x17f   : > { %5474 = vmatprep.subr.bf16.mxu1 %v9717_v15 }
 0x180   : > { %v7652_v16 = vpop.f32.mrb[12].mxu1 }
 0x181   : > { %9718 = vst [vmem:[#allocation19_spill] sm:$0xff] %v7652_v16  ;;  %v7654_v25 = vpop.f32.mrb[13].mxu1 }
 0x182   : > { %9719 = vst [vmem:[#allocation32_spill] sm:$0xff] %v7654_v25  ;;  %v7656_v19 = vpop.f32.mrb[14].mxu1  ;;  %5475 = vmatpush3.bf16.msra.mxu1 %v9717_v15 }
 0x183   : > { %9720 = vst [vmem:[#allocation33_spill] sm:$0xff] %v7656_v19  ;;  %v7659_v28 = vpop.f32.mrb[15].mxu1  ;;  %5476 = vmatprep.subr.bf16.mxu1 %v7421_v32 }
 0x184   : > { %9721 = vst [vmem:[#allocation34_spill] sm:$0xff] %v7659_v28 }
 0x185   : > { %5461 = vmatmul.mubr.bf16.gmra.mrb[120].mxu1 %v9640_v0 }
 0x186   : > { %5464 = vmatprep.mubr.bf16.mxu1 %v9640_v0  ;;  %5477 = vmatpush3.bf16.msra.mxu1 %v7421_v32 }
 0x187   : > { %5478 = vmatprep.subr.bf16.mxu1 %v7434_v4 }
 0x188   : > { %v7666_v38 = vpop.f32.mrb[16].mxu1 }
 0x189   : > { %9722 = vst [vmem:[#allocation35_spill] sm:$0xff] %v7666_v38  ;;  %v7668_v42 = vpop.f32.mrb[17].mxu1 }
 0x18a   : > { %9723 = vst [vmem:[#allocation36_spill] sm:$0xff] %v7668_v42  ;;  %v7670_v2 = vpop.f32.mrb[18].mxu1  ;;  %5479 = vmatpush3.bf16.msra.mxu1 %v7434_v4 }
 0x18b   : > { %9724 = vst [vmem:[#allocation37_spill] sm:$0xff] %v7670_v2  ;;  %v7673_v31 = vpop.f32.mrb[19].mxu1  ;;  %5480 = vmatprep.subr.bf16.mxu1 %v7446_v17 }
 0x18c   : > { %9725 = vst [vmem:[#allocation38_spill] sm:$0xff] %v7673_v31 }
 0x18d   : > { %5465 = vmatmul.mubr.bf16.gmra.mrb[124].mxu1 %v9640_v0 }
 0x18e   : > { %5481 = vmatpush3.bf16.msra.mxu1 %v7446_v17 }
 0x18f   : > { %5482 = vmatprep.subr.bf16.mxu1 %v7457_v54 }
 0x190   : > { %v7679_v8 = vpop.f32.mrb[20].mxu1 }
 0x191   : > { %9726 = vst [vmem:[#allocation39_spill] sm:$0xff] %v7679_v8  ;;  %v7681_v18 = vpop.f32.mrb[21].mxu1 }
 0x192   : > { %9727 = vst [vmem:[#allocation40_spill] sm:$0xff] %v7681_v18  ;;  %v7683_v32 = vpop.f32.mrb[22].mxu1  ;;  %5483 = vmatpush3.bf16.msra.mxu1 %v7457_v54 }
 0x193   : > { %9728 = vst [vmem:[#allocation41_spill] sm:$0xff] %v7683_v32  ;;  %v7686_v45 = vpop.f32.mrb[23].mxu1  ;;  %5500 = vmatprep.subr.bf16.mxu1 %v7215_v46 }
 0x194   : > { %9729 = vst [vmem:[#allocation42_spill] sm:$0xff] %v7686_v45 }
 0x198   : > { %v7689_v4 = vpop.f32.mrb[24].mxu1 }
 0x199   : > { %9730 = vst [vmem:[#allocation43_spill] sm:$0xff] %v7689_v4  ;;  %v7691_v21 = vpop.f32.mrb[25].mxu1 }
 0x19a   : > { %9731 = vst [vmem:[#allocation44_spill] sm:$0xff] %v7691_v21  ;;  %v7693_v56 = vpop.f32.mrb[26].mxu1 }
 0x19b   : > { %9732 = vst [vmem:[#allocation45_spill] sm:$0xff] %v7693_v56  ;;  %v7695_v17 = vpop.f32.mrb[27].mxu1 }
 0x19c   : > { %9733 = vst [vmem:[#allocation46_spill] sm:$0xff] %v7695_v17 }
 0x1a0   : > { %v7697_v60 = vpop.f32.mrb[28].mxu1 }
 0x1a1   : > { %9734 = vst [vmem:[#allocation47_spill] sm:$0xff] %v7697_v60  ;;  %v7699_v63 = vpop.f32.mrb[29].mxu1  ;;  %v7807_v60 = vld [vmem:[%s9623_s5] sm:$0x7] }
 0x1a2   : > { %9735 = vst [vmem:[#allocation48_spill] sm:$0xff] %v7699_v63  ;;  %v7701_v24 = vpop.f32.mrb[30].mxu1 }
 0x1a3   : > { %9736 = vst [vmem:[#allocation49_spill] sm:$0xff] %v7701_v24  ;;  %v7703_v37 = vpop.f32.mrb[31].mxu1 }
 0x1a4   : > { %9737 = vst [vmem:[#allocation50_spill] sm:$0xff] %v7703_v37 }
 0x1a8   : > { %v7705_v54 = vpop.f32.mrb[32].mxu1 }
 0x1a9   : > { %9738 = vst [vmem:[#allocation51_spill] sm:$0xff] %v7705_v54  ;;  %v7707_v58 = vpop.f32.mrb[33].mxu1 }
 0x1aa   : > { %9739 = vst [vmem:[#allocation52_spill] sm:$0xff] %v7707_v58  ;;  %v7709_v46 = vpop.f32.mrb[34].mxu1 }
 0x1ab   : > { %9740 = vst [vmem:[#allocation53_spill] sm:$0xff] %v7709_v46  ;;  %v7711_v14 = vpop.f32.mrb[35].mxu1 }
 0x1ac   : > { %9741 = vst [vmem:[#allocation54_spill] sm:$0xff] %v7711_v14 }
 0x1b0   : > { %v7713_v34 = vpop.f32.mrb[36].mxu1 }
 0x1b1   : > { %9742 = vst [vmem:[#allocation55_spill] sm:$0xff] %v7713_v34  ;;  %v7715_v52 = vpop.f32.mrb[37].mxu1  ;;  %v599_v34 = vlaneseq }
 0x1b2   : > { %9743 = vst [vmem:[#allocation56_spill] sm:$0xff] %v7715_v52  ;;  %v7717_v9 = vpop.f32.mrb[38].mxu1 }
 0x1b3   : > { %9744 = vst [vmem:[#allocation57_spill] sm:$0xff] %v7717_v9  ;;  %v7719_v13 = vpop.f32.mrb[39].mxu1  ;;  %v7793_v46 = vshrl.u32 %v599_v34, 7 }
 0x1b4   : > { %9745 = vst [vmem:[#allocation58_spill] sm:$0xff] %v7719_v13 }
 0x1b5   : > { %v601_v24 = vsub.s32 0, %v7793_v46  ;;  %v605_v17 = vsub.s32 1, %v7793_v46 }
 0x1b7   : > { %v7811_v34 = vrot.slane %v7807_v60, %v601_v24  ;;  %v7814_v56 = vrot.slane %v7807_v60, %v605_v17 }
 0x1b8   : > { %v7721_v7 = vpop.f32.mrb[40].mxu1 }
 0x1b9   : > { %9746 = vst [vmem:[#allocation59_spill] sm:$0xff] %v7721_v7  ;;  %v7723_v22 = vpop.f32.mrb[41].mxu1 }
 0x1ba   : > { %9747 = vst [vmem:[#allocation60_spill] sm:$0xff] %v7723_v22  ;;  %v7725_v23 = vpop.f32.mrb[42].mxu1 }
 0x1bb   : > { %9748 = vst [vmem:[#allocation61_spill] sm:$0xff] %v7725_v23  ;;  %v7727_v26 = vpop.f32.mrb[43].mxu1 }
 0x1bc   : > { %9749 = vst [vmem:[#allocation62_spill] sm:$0xff] %v7727_v26 }
 0x1c0   : > { %v7729_v20 = vpop.f32.mrb[44].mxu1 }
 0x1c1   : > { %9750 = vst [vmem:[#allocation63_spill] sm:$0xff] %v7729_v20  ;;  %v7731_v29 = vpop.f32.mrb[45].mxu1 }
 0x1c2   : > { %9751 = vst [vmem:[#allocation64_spill] sm:$0xff] %v7731_v29  ;;  %v7733_v30 = vpop.f32.mrb[46].mxu1 }
 0x1c3   : > { %9752 = vst [vmem:[#allocation65_spill] sm:$0xff] %v7733_v30  ;;  %v7735_v27 = vpop.f32.mrb[47].mxu1 }
 0x1c4   : > { %9753 = vst [vmem:[#allocation66_spill] sm:$0xff] %v7735_v27 }
 0x1c8   : > { %v7737_v33 = vpop.f32.mrb[48].mxu1 }
 0x1c9   : > { %v7739_v35 = vpop.f32.mrb[49].mxu1 }
 0x1ca   : > { %v7741_v36 = vpop.f32.mrb[50].mxu1 }
 0x1cb   : > { %v7743_v39 = vpop.f32.mrb[51].mxu1 }
 0x1d0   : > { %v7745_v40 = vpop.f32.mrb[52].mxu1 }
 0x1d1   : > { %v7747_v41 = vpop.f32.mrb[53].mxu1 }
 0x1d2   : > { %v7749_v43 = vpop.f32.mrb[54].mxu1 }
 0x1d3   : > { %v7751_v44 = vpop.f32.mrb[55].mxu1 }
 0x1d8   : > { %v7753_v47 = vpop.f32.mrb[56].mxu1 }
 0x1d9   : > { %v7755_v48 = vpop.f32.mrb[57].mxu1 }
 0x1da   : > { %v7757_v49 = vpop.f32.mrb[58].mxu1 }
 0x1db   : > { %v7759_v50 = vpop.f32.mrb[59].mxu1 }
 0x1e0   : > { %v7761_v51 = vpop.f32.mrb[60].mxu1 }
 0x1e1   : > { %v7763_v53 = vpop.f32.mrb[61].mxu1 }
 0x1e2   : > { %v7765_v15 = vpop.f32.mrb[62].mxu1 }
 0x1e3   : > { %v7767_v0 = vpop.f32.mrb[63].mxu1 }
 0x1e8   : > { %v7769_v27 = vpop.f32.mrb[64].mxu1 }
 0x1e9   : > { %9754 = vst [vmem:[#allocation67_spill] sm:$0xff] %v7769_v27  ;;  %v7771_v30 = vpop.f32.mrb[65].mxu1 }
 0x1ea   : > { %9755 = vst [vmem:[#allocation68_spill] sm:$0xff] %v7771_v30  ;;  %v7773_v29 = vpop.f32.mrb[66].mxu1 }
 0x1eb   : > { %9756 = vst [vmem:[#allocation69_spill] sm:$0xff] %v7773_v29  ;;  %v7775_v20 = vpop.f32.mrb[67].mxu1 }
 0x1ec   : > { %9757 = vst [vmem:[#allocation70_spill] sm:$0xff] %v7775_v20 }
 0x1f0   : > { %v7777_v26 = vpop.f32.mrb[68].mxu1 }
 0x1f1   : > { %9758 = vst [vmem:[#allocation71_spill] sm:$0xff] %v7777_v26  ;;  %v7779_v23 = vpop.f32.mrb[69].mxu1 }
 0x1f2   : > { %9759 = vst [vmem:[#allocation72_spill] sm:$0xff] %v7779_v23  ;;  %v7781_v22 = vpop.f32.mrb[70].mxu1 }
 0x1f3   : > { %9760 = vst [vmem:[#allocation73_spill] sm:$0xff] %v7781_v22  ;;  %v7783_v7 = vpop.f32.mrb[71].mxu1 }
 0x1f4   : > { %9761 = vst [vmem:[#allocation74_spill] sm:$0xff] %v7783_v7 }
 0x1f8   : > { %v7785_v13 = vpop.f32.mrb[72].mxu1 }
 0x1f9   : > { %9762 = vst [vmem:[#allocation75_spill] sm:$0xff] %v7785_v13  ;;  %v7787_v9 = vpop.f32.mrb[73].mxu1 }
 0x1fa   : > { %9763 = vst [vmem:[#allocation76_spill] sm:$0xff] %v7787_v9  ;;  %v7789_v52 = vpop.f32.mrb[74].mxu1 }
 0x1fb   : > { %9764 = vst [vmem:[#allocation77_spill] sm:$0xff] %v7789_v52  ;;  %v7791_v14 = vpop.f32.mrb[75].mxu1 }
 0x1fc   : > { %9765 = vst [vmem:[#allocation78_spill] sm:$0xff] %v7791_v14 }
 0x200   : > { %v7795_v58 = vpop.f32.mrb[76].mxu1 }
 0x201   : > { %9766 = vst [vmem:[#allocation79_spill] sm:$0xff] %v7795_v58  ;;  %v7797_v54 = vpop.f32.mrb[77].mxu1 }
 0x202   : > { %9767 = vst [vmem:[#allocation80_spill] sm:$0xff] %v7797_v54  ;;  %v7799_v37 = vpop.f32.mrb[78].mxu1 }
 0x203   : > { %9768 = vst [vmem:[#allocation81_spill] sm:$0xff] %v7799_v37  ;;  %v7802_v63 = vpop.f32.mrb[79].mxu1 }
 0x204   : > { %9769 = vst [vmem:[#allocation82_spill] sm:$0xff] %v7802_v63 }
 0x208   : > { %v7816_v21 = vpop.f32.mrb[80].mxu1  ;;  %v1738_v4 = vpop.f32.mrb[0].mxu0 }
 0x209   : > { %9770 = vst [vmem:[#allocation83_spill] sm:$0xff] %v7816_v21  ;;  %v5580_v45 = vadd.f32 %v1738_v4, %v7811_v34  ;;  %v7819_v32 = vpop.f32.mrb[81].mxu1  ;;  %v1740_v18 = vpop.f32.mrb[1].mxu0 }
 0x20a   : > { %9771 = vst [vmem:[#allocation84_spill] sm:$0xff] %v7819_v32  ;;  %v5581_v8 = vadd.f32 %v1740_v18, %v7814_v56  ;;  %v7822_v31 = vpop.f32.mrb[82].mxu1  ;;  %v1742_v2 = vpop.f32.mrb[2].mxu0 }
 0x20b   : > { %9772 = vst [vmem:[#allocation85_spill] sm:$0xff] %v7822_v31  ;;  %v4979_v42 = vmul.f32 -1.442695, %v5580_v45  ;;  %v5582_v24 = vadd.f32 %v1742_v2, %v7811_v34  ;;  %v7825_v38 = vpop.f32.mrb[83].mxu1  ;;  %v1744_v17 = vpop.f32.mrb[3].mxu0 }
 0x20c   : > { %9773 = vst [vmem:[#allocation86_spill] sm:$0xff] %v7825_v38  ;;  %v4995_v28 = vmul.f32 -1.442695, %v5581_v8  ;;  %v5583_v19 = vadd.f32 %v1744_v17, %v7814_v56 }
 0x20d   : > { %6040 = vpow2.f32 %v4979_v42  ;;  %v4980_v25 = vmul.f32 -1.442695, %v5582_v24 }
 0x20e   : > { %6042 = vpow2.f32 %v4995_v28  ;;  %v4996_v45 = vmul.f32 -1.442695, %v5583_v19 }
 0x20f   : > { %6044 = vpow2.f32 %v4980_v25 }
 0x210   : > { %v7828_v4 = vpop.f32.mrb[84].mxu1  ;;  %v1748_v21 = vpop.f32.mrb[4].mxu0  ;;  %6046 = vpow2.f32 %v4996_v45 }
 0x211   : > { %9774 = vst [vmem:[#allocation87_spill] sm:$0xff] %v7828_v4  ;;  %v5584_v18 = vadd.f32 %v1748_v21, %v7811_v34  ;;  %v7831_v16 = vpop.f32.mrb[85].mxu1  ;;  %v1750_v31 = vpop.f32.mrb[5].mxu0 }
 0x212   : > { %9775 = vst [vmem:[#allocation88_spill] sm:$0xff] %v7831_v16  ;;  %v5585_v2 = vadd.f32 %v1750_v31, %v7814_v56  ;;  %v7834_v12 = vpop.f32.mrb[86].mxu1  ;;  %v1752_v11 = vpop.f32.mrb[6].mxu0 }
 0x213   : > { %9776 = vst [vmem:[#allocation89_spill] sm:$0xff] %v7834_v12  ;;  %v5586_v8 = vadd.f32 %v1752_v11, %v7811_v34  ;;  %v7837_v42 = vpop.f32.mrb[87].mxu1  ;;  %v1754_v28 = vpop.f32.mrb[7].mxu0  ;;  %v4981_v24 = vmul.f32 -1.442695, %v5584_v18 }
 0x214   : > { %9777 = vst [vmem:[#allocation90_spill] sm:$0xff] %v7837_v42  ;;  %v4997_v17 = vmul.f32 -1.442695, %v5585_v2  ;;  %v5587_v21 = vadd.f32 %v1754_v28, %v7814_v56 }
 0x215   : > { %v4982_v4 = vmul.f32 -1.442695, %v5586_v8  ;;  %6048 = vpow2.f32 %v4981_v24 }
 0x216   : > { %6050 = vpow2.f32 %v4997_v17  ;;  %v4998_v11 = vmul.f32 -1.442695, %v5587_v21 }
 0x217   : > { %v6041_v31 = vpop.eup %6040  ;;  %6052 = vpow2.f32 %v4982_v4 }
 0x218   : > { %v7840_v16 = vpop.f32.mrb[88].mxu1  ;;  %v1758_v19 = vpop.f32.mrb[8].mxu0  ;;  %v1978_v24 = vadd.f32 1.0, %v6041_v31  ;;  %6054 = vpow2.f32 %v4998_v11 }
 0x219   : > { %9778 = vst [vmem:[#allocation91_spill] sm:$0xff] %v7840_v16  ;;  %v7842_v12 = vpop.f32.mrb[89].mxu1  ;;  %v1760_v25 = vpop.f32.mrb[9].mxu0  ;;  %v5588_v42 = vadd.f32 %v1758_v19, %v7811_v34 }
 0x21a   : > { %9779 = vst [vmem:[#allocation92_spill] sm:$0xff] %v7842_v12  ;;  %v6043_v10 = vpop.eup %6042  ;;  %v7845_v18 = vpop.f32.mrb[90].mxu1  ;;  %v5589_v2 = vadd.f32 %v1760_v25, %v7814_v56  ;;  %6056 = vrcp.f32 %v1978_v24 }
 0x21b   : > { %9780 = vst [vmem:[#allocation93_spill] sm:$0xff] %v7845_v18  ;;  %v1762_v45 = vpop.f32.mrb[10].mxu0  ;;  %v7848_v8 = vpop.f32.mrb[91].mxu1  ;;  %v2090_v6 = vadd.f32 1.0, %v6043_v10  ;;  %v4983_v12 = vmul.f32 -1.442695, %v5588_v42 }
 0x21c   : > { %9781 = vst [vmem:[#allocation94_spill] sm:$0xff] %v7848_v8  ;;  %v1764_v28 = vpop.f32.mrb[11].mxu0  ;;  %v6045_v16 = vpop.eup %6044  ;;  %v5590_v17 = vadd.f32 %v1762_v45, %v7811_v34  ;;  %v4999_v21 = vmul.f32 -1.442695, %v5589_v2 }
 0x21d   : > { %v5591_v4 = vadd.f32 %v1764_v28, %v7814_v56  ;;  %v6047_v5 = vpop.eup %6046  ;;  %v1979_v19 = vadd.f32 1.0, %v6045_v16  ;;  %6058 = vrcp.f32 %v2090_v6 }
 0x21e   : > { %v4984_v25 = vmul.f32 -1.442695, %v5590_v17  ;;  %6060 = vpow2.f32 %v4983_v12  ;;  %v2091_v28 = vadd.f32 1.0, %v6047_v5 }
 0x21f   : > { %v6049_v1 = vpop.eup %6048  ;;  %v5000_v11 = vmul.f32 -1.442695, %v5591_v4  ;;  %6062 = vpow2.f32 %v4999_v21 }
 0x220   : > { %v7852_v18 = vpop.f32.mrb[92].mxu1  ;;  %v1768_v3 = vpop.f32.mrb[12].mxu0  ;;  %6064 = vrcp.f32 %v1979_v19  ;;  %v1980_v17 = vadd.f32 1.0, %v6049_v1 }
 0x221   : > { %9782 = vst [vmem:[#allocation95_spill] sm:$0xff] %v7852_v18  ;;  %v5592_v8 = vadd.f32 %v1768_v3, %v7811_v34  ;;  %v7855_v31 = vpop.f32.mrb[93].mxu1  ;;  %v1770_v10 = vpop.f32.mrb[13].mxu0  ;;  %6066 = vpow2.f32 %v4984_v25 }
 0x222   : > { %9783 = vst [vmem:[#allocation96_spill] sm:$0xff] %v7855_v31  ;;  %v7857_v42 = vpop.f32.mrb[94].mxu1  ;;  %v1772_v45 = vpop.f32.mrb[14].mxu0  ;;  %v5593_v3 = vadd.f32 %v1770_v10, %v7814_v56  ;;  %6068 = vpow2.f32 %v5000_v11 }
 0x223   : > { %9784 = vst [vmem:[#allocation97_spill] sm:$0xff] %v7857_v42  ;;  %v6051_v2 = vpop.eup %6050  ;;  %v7859_v16 = vpop.f32.mrb[95].mxu1  ;;  %v4985_v6 = vmul.f32 -1.442695, %v5592_v8  ;;  %v5594_v31 = vadd.f32 %v1772_v45, %v7811_v34  ;;  %6070 = vrcp.f32 %v2091_v28 }
 0x224   : > { %9785 = vst [vmem:[#allocation98_spill] sm:$0xff] %v7859_v16  ;;  %v1774_v24 = vpop.f32.mrb[15].mxu0  ;;  %v6053_v18 = vpop.eup %6052  ;;  %v2092_v12 = vadd.f32 1.0, %v6051_v2  ;;  %v5001_v21 = vmul.f32 -1.442695, %v5593_v3 }
 0x225   : > { %v5595_v4 = vadd.f32 %v1774_v24, %v7814_v56  ;;  %v1981_v42 = vadd.f32 1.0, %v6053_v18  ;;  %v6055_v5 = vpop.eup %6054  ;;  %6072 = vpow2.f32 %v4985_v6  ;;  %v4986_v8 = vmul.f32 -1.442695, %v5594_v31 }
 0x226   : > { %6074 = vrcp.f32 %v1980_v17  ;;  %v7869_v10 = vpop.eup %6056  ;;  %v2093_v24 = vadd.f32 1.0, %v6055_v5 }
 0x227   : > { %6076 = vrcp.f32 %v2092_v12  ;;  %v5002_v11 = vmul.f32 -1.442695, %v5595_v4  ;;  %v7874_v28 = vpop.eup %6058 }
 0x228   : > { %v7864_v16 = vpop.f32.mrb[96].mxu1  ;;  %v1778_v38 = vpop.f32.mrb[16].mxu0  ;;  %6078 = vrcp.f32 %v1981_v42  ;;  %v9803_v29 = vsub.f32 1.0, %v7874_v28 }
 0x229   : > { %9786 = vst [vmem:[#allocation99_spill] sm:$0xff] %v7864_v16  ;;  %v5596_v19 = vadd.f32 %v1778_v38, %v7811_v34  ;;  %v7867_v1 = vpop.f32.mrb[97].mxu1  ;;  %v1780_v25 = vpop.f32.mrb[17].mxu0  ;;  %6080 = vpow2.f32 %v5001_v21 }
 0x22a   : > { %9787 = vst [vmem:[#allocation100_spill] sm:$0xff] %v7867_v1  ;;  %v5597_v45 = vadd.f32 %v1780_v25, %v7814_v56  ;;  %v7872_v18 = vpop.f32.mrb[98].mxu1  ;;  %v1782_v2 = vpop.f32.mrb[18].mxu0  ;;  %6082 = vpow2.f32 %v4986_v8 }
 0x22b   : > { %9788 = vst [vmem:[#allocation101_spill] sm:$0xff] %v7872_v18  ;;  %v7876_v6 = vpop.f32.mrb[99].mxu1  ;;  %v1784_v31 = vpop.f32.mrb[19].mxu0  ;;  %v4987_v3 = vmul.f32 -1.442695, %v5596_v19  ;;  %v5598_v17 = vadd.f32 %v1782_v2, %v7811_v34  ;;  %6084 = vpow2.f32 %v5002_v11 }
 0x22c   : > { %9789 = vst [vmem:[#allocation102_spill] sm:$0xff] %v7876_v6  ;;  %v6061_v38 = vpop.eup %6060  ;;  %v5003_v12 = vmul.f32 -1.442695, %v5597_v45  ;;  %v5599_v4 = vadd.f32 %v1784_v31, %v7814_v56  ;;  %6086 = vrcp.f32 %v2093_v24 }
 0x22d   : > { %v6063_v16 = vpop.eup %6062  ;;  %v4988_v18 = vmul.f32 -1.442695, %v5598_v17  ;;  %v1982_v42 = vadd.f32 1.0, %v6061_v38  ;;  %6088 = vpow2.f32 %v4987_v3 }
 0x22e   : > { %v7880_v25 = vpop.eup %6064  ;;  %v2094_v6 = vadd.f32 1.0, %v6063_v16  ;;  %6090 = vpow2.f32 %v5003_v12  ;;  %v5004_v8 = vmul.f32 -1.442695, %v5599_v4 }
 0x22f   : > { %v6067_v1 = vpop.eup %6066  ;;  %6092 = vpow2.f32 %v4988_v18 }
 0x230   : > { %v6069_v5 = vpop.eup %6068  ;;  %v7882_v61 = vpop.f32.mrb[100].mxu1  ;;  %v1983_v17 = vadd.f32 1.0, %v6067_v1  ;;  %6094 = vrcp.f32 %v1982_v42 }
 0x231   : > { %9790 = vst [vmem:[#allocation103_spill] sm:$0xff] %v7882_v61  ;;  %v1788_v21 = vpop.f32.mrb[20].mxu0  ;;  %v7884_v19 = vpop.eup %6070  ;;  %v2095_v61 = vadd.f32 1.0, %v6069_v5  ;;  %6096 = vrcp.f32 %v2094_v6 }
 0x232   : > { %v5600_v45 = vadd.f32 %v1788_v21, %v7811_v34  ;;  %v7887_v2 = vpop.f32.mrb[101].mxu1  ;;  %v1790_v31 = vpop.f32.mrb[21].mxu0  ;;  %6098 = vpow2.f32 %v5004_v8 }
 0x233   : > { %9791 = vst [vmem:[#allocation104_spill] sm:$0xff] %v7887_v2  ;;  %v6073_v11 = vpop.eup %6072  ;;  %v5601_v24 = vadd.f32 %v1790_v31, %v7814_v56  ;;  %v7890_v38 = vpop.f32.mrb[102].mxu1  ;;  %6100 = vrcp.f32 %v1983_v17 }
 0x234   : > { %9792 = vst [vmem:[#allocation105_spill] sm:$0xff] %v7890_v38  ;;  %v1792_v16 = vpop.f32.mrb[22].mxu0  ;;  %v7892_v3 = vpop.eup %6074  ;;  %v4989_v21 = vmul.f32 -1.442695, %v5600_v45  ;;  %v1984_v18 = vadd.f32 1.0, %v6073_v11  ;;  %6102 = vrcp.f32 %v2095_v61 }
 0x235   : > { %v7894_v62 = vpop.f32.mrb[103].mxu1  ;;  %v1794_v12 = vpop.f32.mrb[23].mxu0  ;;  %v5602_v2 = vadd.f32 %v1792_v16, %v7811_v34  ;;  %v5005_v32 = vmul.f32 -1.442695, %v5601_v24  ;;  %v609_v24 = vsub.s32 2, %v7793_v46 }
 0x236   : > { %9793 = vst [vmem:[#allocation106_spill] sm:$0xff] %v7894_v62  ;;  %v7896_v4 = vpop.eup %6076  ;;  %v5603_v31 = vadd.f32 %v1794_v12, %v7814_v56  ;;  %6104 = vpow2.f32 %v4989_v21 }
 0x237   : > { %v7899_v1 = vpop.eup %6078  ;;  %v4990_v5 = vmul.f32 -1.442695, %v5602_v2  ;;  %6106 = vrcp.f32 %v1984_v18 }
 0x238   : > { %v6081_v38 = vpop.eup %6080  ;;  %v5006_v59 = vmul.f32 -1.442695, %v5603_v31  ;;  %v7902_v57 = vpop.f32.mrb[104].mxu1  ;;  %6108 = vpow2.f32 %v5005_v32 }
 0x239   : > { %v6083_v42 = vpop.eup %6082  ;;  %9794 = vst [vmem:[#allocation107_spill] sm:$0xff] %v7902_v57  ;;  %v1798_v6 = vpop.f32.mrb[24].mxu0  ;;  %v2096_v16 = vadd.f32 1.0, %v6081_v38  ;;  %6110 = vpow2.f32 %v4990_v5 }
 0x23a   : > { %v6085_v62 = vpop.eup %6084  ;;  %v5604_v8 = vadd.f32 %v1798_v6, %v7811_v34  ;;  %v7907_v11 = vpop.f32.mrb[105].mxu1  ;;  %v1985_v61 = vadd.f32 1.0, %v6083_v42  ;;  %6112 = vpow2.f32 %v5006_v59 }
 0x23b   : > { %v7904_v45 = vpop.eup %6086  ;;  %9795 = vst [vmem:[#allocation108_spill] sm:$0xff] %v7907_v11  ;;  %v1800_v12 = vpop.f32.mrb[25].mxu0  ;;  %v2097_v57 = vadd.f32 1.0, %v6085_v62  ;;  %6114 = vrcp.f32 %v2096_v16 }
 0x23c   : > { %v6089_v17 = vpop.eup %6088  ;;  %v7910_v2 = vpop.f32.mrb[106].mxu1  ;;  %v4991_v6 = vmul.f32 -1.442695, %v5604_v8  ;;  %v5605_v11 = vadd.f32 %v1800_v12, %v7814_v56  ;;  %6116 = vrcp.f32 %v1985_v61  ;;  %v2243_v22 = vmul.f32 0.0, %v7904_v45 }
 0x23d   : > { %9796 = vst [vmem:[#allocation109_spill] sm:$0xff] %v7910_v2  ;;  %v1802_v21 = vpop.f32.mrb[26].mxu0  ;;  %v6091_v31 = vpop.eup %6090  ;;  %v1986_v46 = vadd.f32 1.0, %v6089_v17  ;;  %v7921_v2 = vrot.slane %v7807_v60, %v609_v24  ;;  %6118 = vrcp.f32 %v2097_v57 }
 0x23e   : > { %v7912_v55 = vpop.f32.mrb[107].mxu1  ;;  %v1804_v18 = vpop.f32.mrb[27].mxu0  ;;  %v5606_v32 = vadd.f32 %v1802_v21, %v7811_v34  ;;  %v2098_v62 = vadd.f32 1.0, %v6091_v31  ;;  %6120 = vpow2.f32 %v4991_v6  ;;  %v5007_v12 = vmul.f32 -1.442695, %v5605_v11 }
 0x23f   : > { %9797 = vst [vmem:[#allocation110_spill] sm:$0xff] %v7912_v55  ;;  %v6093_v38 = vpop.eup %6092  ;;  %9798 = vst [vmem:[#allocation111_spill] sm:$0xff] %v7921_v2  ;;  %v5607_v59 = vadd.f32 %v1804_v18, %v7814_v56  ;;  %6122 = vrcp.f32 %v1986_v46  ;;  %v7935_v31 = vadd.f32 %v7737_v33, %v7921_v2  ;;  %v7943_v46 = vadd.f32 %v7739_v35, %v7921_v2 }
 0x240   : > { %v7915_v37 = vpop.eup %6094  ;;  %v1987_v55 = vadd.f32 1.0, %v6093_v38  ;;  %v7926_v16 = vpop.f32.mrb[108].mxu1  ;;  %v4992_v58 = vmul.f32 -1.442695, %v5606_v32  ;;  %6124 = vrcp.f32 %v2098_v62  ;;  %v7947_v32 = vadd.f32 %v7741_v36, %v7921_v2 }
 0x241   : > { %v7918_v42 = vpop.eup %6096  ;;  %9799 = vst [vmem:[#allocation112_spill] sm:$0xff] %v7926_v16  ;;  %v1808_v17 = vpop.f32.mrb[28].mxu0  ;;  %v7958_v63 = vadd.f32 %v7745_v40, %v7921_v2  ;;  %v7972_v40 = vld [vmem:[%s9624_s6] ss:$0 sm:$0xff]  ;;  %v8000_v52 = vadd.f32 %v7759_v50, %v7921_v2 }
 0x242   : > { %v6099_v5 = vpop.eup %6098  ;;  %v5608_v60 = vadd.f32 %v1808_v17, %v7811_v34  ;;  %v7931_v24 = vpop.f32.mrb[109].mxu1  ;;  %6126 = vrcp.f32 %v1987_v55  ;;  %v5008_v17 = vmul.f32 -1.442695, %v5607_v59  ;;  %v7962_v55 = vadd.f32 %v7747_v41, %v7921_v2 }
 0x243   : > { %v7924_v8 = vpop.eup %6100  ;;  %9800 = vst [vmem:[#allocation113_spill] sm:$0xff] %v7931_v24  ;;  %v1810_v61 = vpop.f32.mrb[29].mxu0  ;;  %v2099_v18 = vadd.f32 1.0, %v6099_v5  ;;  %v7953_v5 = vadd.f32 %v7743_v39, %v7921_v2  ;;  %6128 = vpow2.f32 %v5007_v12  ;;  %v7966_v39 = vadd.f32 %v7749_v43, %v7921_v2 }
 0x244   : > { %v7928_v21 = vpop.eup %6102  ;;  %v7937_v11 = vpop.f32.mrb[110].mxu1  ;;  %6130 = vpow2.f32 %v4992_v58  ;;  %v5609_v12 = vadd.f32 %v1810_v61, %v7814_v56  ;;  %v7978_v41 = vadd.f32 %v7751_v44, %v7921_v2  ;;  %v7989_v61 = vadd.f32 %v7755_v48, %v7921_v2 }
 0x245   : > { %v6105_v57 = vpop.eup %6104  ;;  %9801 = vst [vmem:[#allocation114_spill] sm:$0xff] %v7937_v11  ;;  %v1812_v38 = vpop.f32.mrb[30].mxu0  ;;  %v4993_v11 = vmul.f32 -1.442695, %v5608_v60  ;;  %6132 = vrcp.f32 %v2099_v18  ;;  %v7995_v44 = vadd.f32 %v7757_v49, %v7921_v2 }
 0x246   : > { %v7939_v6 = vpop.eup %6106  ;;  %v7949_v16 = vpop.f32.mrb[111].mxu1  ;;  %v5610_v24 = vadd.f32 %v1812_v38, %v7811_v34  ;;  %v1988_v36 = vadd.f32 1.0, %v6105_v57  ;;  %6134 = vpow2.f32 %v5008_v17  ;;  %v5009_v48 = vmul.f32 -1.442695, %v5609_v12 }
 0x247   : > { %9802 = vst [vmem:[#allocation115_spill] sm:$0xff] %v7949_v16  ;;  %v1814_v33 = vpop.f32.mrb[31].mxu0  ;;  %v6109_v62 = vpop.eup %6108  ;;  %6136 = vpow2.f32 %v4993_v11 }
 0x248   : > { %v6111_v35 = vpop.eup %6110  ;;  %v4994_v60 = vmul.f32 -1.442695, %v5610_v24  ;;  %v2100_v58 = vadd.f32 1.0, %v6109_v62  ;;  %v5611_v43 = vadd.f32 %v1814_v33, %v7814_v56  ;;  %v7985_v24 = vadd.f32 %v7753_v47, %v7921_v2  ;;  %v5454_v16 = vpop.f32.mrb[112].mxu1 }
 0x249   : > { %v6113_v59 = vpop.eup %6112  ;;  %v1989_v18 = vadd.f32 1.0, %v6111_v35  ;;  %6138 = vrcp.f32 %v1988_v36  ;;  %v2146_v33 = vadd.f32 %v5454_v16, %v7972_v40  ;;  %v1851_v62 = vpop.f32.mrb[113].mxu1 }
 0x24a   : > { %v7974_v38 = vpop.eup %6114  ;;  %v2101_v17 = vadd.f32 1.0, %v6113_v59  ;;  %6140 = vpow2.f32 %v4994_v60  ;;  %v2144_v11 = vadd.f32 %v7972_v40, %v1851_v62  ;;  %v5455_v35 = vpop.f32.mrb[114].mxu1  ;;  %v5010_v49 = vmul.f32 -1.442695, %v5611_v43 }
 0x24b   : > { %v7981_v57 = vpop.eup %6116  ;;  %6142 = vrcp.f32 %v2100_v58  ;;  %v2162_v36 = vmul.f32 %v7892_v3, %v2146_v33  ;;  %v2147_v59 = vadd.f32 %v5455_v35, %v7972_v40  ;;  %v1854_v16 = vpop.f32.mrb[115].mxu1  ;;  %v8015_v62 = vadd.f32 %v7761_v51, %v7921_v2 }
 0x24c   : > { %v7991_v54 = vpop.eup %6118  ;;  %6144 = vrcp.f32 %v1989_v18  ;;  %v2160_v50 = vmul.f32 %v7869_v10, %v2144_v11  ;;  %v2145_v12 = vadd.f32 %v7972_v40, %v1854_v16  ;;  %v8021_v18 = vadd.f32 %v7763_v53, %v7921_v2  ;;  %v8023_v33 = vpop.permute.xlu0 %2305 }
 0x24d   : > { %v6121_v47 = vpop.eup %6120  ;;  %6146 = vrcp.f32 %v2101_v17  ;;  %v2178_v3 = vadd.f32 %v2162_v36, %v7935_v31  ;;  %v2163_v58 = vmul.f32 %v7899_v1, %v2147_v59  ;;  %v8029_v51 = vadd.f32 %v7765_v15, %v7921_v2  ;;  %v8035_v31 = vpop.permute.xlu1 %2311 }
 0x24e   : > { %v8003_v14 = vpop.eup %6122  ;;  %v1990_v13 = vadd.f32 1.0, %v6121_v47  ;;  %6148 = vpow2.f32 %v5009_v48  ;;  %v2176_v10 = vadd.f32 %v2160_v50, %v7943_v46  ;;  %v2161_v47 = vmul.f32 %v7880_v25, %v2145_v12 }
 0x24f   : > { %v8007_v9 = vpop.eup %6124  ;;  %v8033_v1 = vadd.f32 %v7767_v0, %v7921_v2  ;;  %6150 = vpow2.f32 %v5010_v49  ;;  %v2179_v53 = vadd.f32 %v2163_v58, %v7947_v32  ;;  %v8042_v25 = vmul.f32 0.0, %v7874_v28 }
 0x250   : > { %v8011_v60 = vpop.eup %6126  ;;  %6152 = vrcp.f32 %v1990_v13  ;;  %v2177_v15 = vadd.f32 %v2161_v47, %v7953_v5  ;;  %v5458_v48 = vpop.f32.mrb[116].mxu1  ;;  %v8050_v16 = vmul.f32 0.0, %v7884_v19  ;;  %v2210_v46 = vsub.f32 1.0, %v7896_v4 }
 0x251   : > { %v6129_v43 = vpop.eup %6128  ;;  %6154 = vtanh.f32 %v2178_v3  ;;  %v2150_v49 = vadd.f32 %v5458_v48, %v7972_v40  ;;  %v1867_v32 = vpop.f32.mrb[117].mxu1  ;;  %vm2352_vm0 = vcmp.eq.s32.totalorder %v8023_v33, 1  ;;  %vm2354_vm2 = vcmp.eq.s32.totalorder %v8035_v31, 1 }
 0x252   : > { %v6131_v11 = vpop.eup %6130  ;;  %v2102_v36 = vadd.f32 1.0, %v6129_v43  ;;  %6156 = vtanh.f32 %v2176_v10  ;;  %v2148_v13 = vadd.f32 %v7972_v40, %v1867_v32  ;;  %v5459_v12 = vpop.f32.mrb[118].mxu1 }
 0x253   : > { %v8038_v17 = vpop.eup %6132  ;;  %v1991_v50 = vadd.f32 1.0, %v6131_v11  ;;  %6158 = vtanh.f32 %v2179_v53  ;;  %v2166_v47 = vmul.f32 %v7939_v6, %v2150_v49  ;;  %v2151_v43 = vadd.f32 %v5459_v12, %v7972_v40  ;;  %v1870_v3 = vpop.f32.mrb[119].mxu1 }
 0x254   : > { %v8045_v35 = vpop.eup %6134  ;;  %v8055_v48 = vpop.permute.xlu0 %2308  ;;  %6160 = vtanh.f32 %v2177_v15  ;;  %v2164_v11 = vmul.f32 %v7915_v37, %v2148_v13  ;;  %v2149_v10 = vadd.f32 %v7972_v40, %v1870_v3  ;;  %v2242_v12 = vmul.f32 0.0, %v7896_v4 }
 0x255   : > { %v6137_v59 = vpop.eup %6136  ;;  %v8062_v7 = vpop.permute.xlu1 %2314  ;;  %6162 = vrcp.f32 %v2102_v36  ;;  %v2182_v6 = vadd.f32 %v2166_v47, %v7958_v63  ;;  %v2167_v49 = vmul.f32 %v7981_v57, %v2151_v43  ;;  %v2211_v3 = vsub.f32 1.0, %v7904_v45 }
 0x256   : > { %v6139_v5 = vpop.eup %6138  ;;  %v1992_v58 = vadd.f32 1.0, %v6137_v59  ;;  %6164 = vrcp.f32 %v1991_v50  ;;  %v2180_v15 = vadd.f32 %v2164_v11, %v7962_v55  ;;  %v2165_v37 = vmul.f32 %v7924_v8, %v2149_v10 }
 0x257   : > { %v6141_v0 = vpop.eup %6140  ;;  %v8077_v55 = vmul.f32 0.0, %v7918_v42  ;;  %vm2353_vm1 = vcmp.eq.s32.totalorder %v8055_v48, 1  ;;  %vm2355_vm3 = vcmp.eq.s32.totalorder %v8062_v7, 1 }
 0x258   : > { %v8060_v32 = vpop.eup %6142  ;;  %v1993_v53 = vadd.f32 1.0, %v6141_v0  ;;  %6166 = vrcp.f32 %v1992_v58  ;;  %v2183_v0 = vadd.f32 %v2167_v49, %v7966_v39  ;;  %v2181_v57 = vadd.f32 %v2165_v37, %v7978_v41  ;;  %v5462_v36 = vpop.f32.mrb[120].mxu1  ;;  %vm8144_vm8 = vmpackc.low %vm2355_vm3, %vm2354_vm2 }
 0x259   : > { %v6145_v59 = vpop.eup %6144  ;;  %v2154_v45 = vadd.f32 %v5462_v36, %v7972_v40  ;;  %v1883_v50 = vpop.f32.mrb[121].mxu1  ;;  %v8084_v58 = vmul.f32 0.0, %v7928_v21  ;;  %vm5012_vm9 = vmpackc.low %vm2353_vm1, %vm2352_vm0 }
 0x25a   : > { %v8069_v13 = vpop.eup %6146  ;;  %6168 = vrcp.f32 %v1993_v53  ;;  %v8089_v47 = vpop.permute.xlu0 %2317  ;;  %v2152_v43 = vadd.f32 %v7972_v40, %v1883_v50  ;;  %v8095_v53 = vmul.f32 0.0, %v7974_v38 }
 0x25b   : > { %v6149_v63 = vpop.eup %6148  ;;  %6170 = vtanh.f32 %v2182_v6  ;;  %v5463_v11 = vpop.f32.mrb[122].mxu1  ;;  %v2170_v37 = vmul.f32 %v6139_v5, %v2154_v45  ;;  %vm2356_vm4 = vcmp.eq.s32.totalorder %v8089_v47, 1 }
 0x25c   : > { %v6151_v8 = vpop.eup %6150  ;;  %6172 = vtanh.f32 %v2180_v15  ;;  %v8097_v49 = vpop.permute.xlu1 %2320  ;;  %v2155_v36 = vadd.f32 %v5463_v11, %v7972_v40  ;;  %v2168_v50 = vmul.f32 %v8003_v14, %v2152_v43  ;;  %v2104_v20 = vadd.f32 1.0, %v6149_v63 }
 0x25d   : > { %v8086_v41 = vpop.eup %6152  ;;  %6174 = vtanh.f32 %v2183_v0  ;;  %v1886_v39 = vpop.f32.mrb[123].mxu1  ;;  %v2186_v0 = vadd.f32 %v2170_v37, %v7985_v24  ;;  %v9804_v63 = vsub.f32 1.0, %v7884_v19  ;;  %vm2357_vm5 = vcmp.eq.s32.totalorder %v8097_v49, 1 }
 0x25e   : > { %v6155_v6 = vpop.eup %6154  ;;  %6176 = vtanh.f32 %v2181_v57  ;;  %v2153_v10 = vadd.f32 %v7972_v40, %v1886_v39  ;;  %v2171_v5 = vmul.f32 %v6145_v59, %v2155_v36  ;;  %v2184_v4 = vadd.f32 %v2168_v50, %v7989_v61  ;;  %v8118_v24 = vpop.permute.xlu0 %2323  ;;  %vm8222_vm10 = vmpackc.low %vm2357_vm5, %vm2356_vm4 }
 0x25f   : > { %v6157_v23 = vpop.eup %6156  ;;  %v2226_v15 = vmul.f32 %v6155_v6, %v2210_v46  ;;  %6178 = vtanh.f32 %v2186_v0  ;;  %v2105_v19 = vadd.f32 1.0, %v6151_v8  ;;  %vm2358_vm6 = vcmp.eq.s32.totalorder %v8118_v24, 1 }
 0x260   : > { %v6159_v26 = vpop.eup %6158  ;;  %v2224_v30 = vmul.f32 %v6157_v23, %v9803_v29  ;;  %v2169_v46 = vmul.f32 %v8011_v60, %v2153_v10  ;;  %v2187_v23 = vadd.f32 %v2171_v5, %v7995_v44  ;;  %6180 = vtanh.f32 %v2184_v4  ;;  %v5466_v60 = vpop.f32.mrb[124].mxu1 }
 0x261   : > { %v6161_v45 = vpop.eup %6160  ;;  %v8106_v11 = vadd.f32 %v2242_v12, %v2226_v15  ;;  %v2227_v27 = vmul.f32 %v6159_v26, %v2211_v3  ;;  %v2103_v26 = vadd.f32 1.0, %v8045_v35 }
 0x262   : > { %v8110_v57 = vpop.eup %6162  ;;  %v8113_v14 = vadd.f32 %v8042_v25, %v2224_v30  ;;  %v2225_v28 = vmul.f32 %v6161_v45, %v9804_v63  ;;  %v2185_v61 = vadd.f32 %v2169_v46, %v8000_v52  ;;  %v8126_v30 = vpop.permute.xlu1 %2326  ;;  %6182 = vtanh.f32 %v2187_v23 }
 0x263   : > { %v6165_v29 = vpop.eup %6164  ;;  %v8121_v59 = vadd.f32 %v2243_v22, %v2227_v27  ;;  %v2158_v25 = vadd.f32 %v5466_v60, %v7972_v40  ;;  %v1899_v22 = vpop.f32.mrb[125].mxu1  ;;  %vm2359_vm7 = vcmp.eq.s32.totalorder %v8126_v30, 1  ;;  %v9808_v46 = vsub.f32 1.0, %v7918_v42 }
 0x264   : > { %v6167_v12 = vpop.eup %6166  ;;  %v8129_v44 = vadd.f32 %v8050_v16, %v2225_v28  ;;  %6184 = vtanh.f32 %v2185_v61  ;;  %v2156_v52 = vadd.f32 %v7972_v40, %v1899_v22  ;;  %v5467_v35 = vpop.f32.mrb[126].mxu1  ;;  %v2247_v16 = vmul.f32 0.0, %v7991_v54  ;;  %vm8239_vm11 = vmpackc.low %vm2359_vm7, %vm2358_vm6 }
 0x265   : > { %v6169_v27 = vpop.eup %6168  ;;  %v8137_v3 = vpack.c.bf16 %v8121_v59, %v8106_v11  ;;  %6186 = vrcp.f32 %v2104_v20  ;;  %v2174_v39 = vmul.f32 %v6167_v12, %v2158_v25  ;;  %v2159_v43 = vadd.f32 %v5467_v35, %v7972_v40  ;;  %v1902_v10 = vpop.f32.mrb[127].mxu1  ;;  %v8180_v25 = vld [vmem:[#allocation5] ss:$12 sps:$4 sm:$0xff]  }
 0x266   : > { %v6171_v4 = vpop.eup %6170  ;;  %v5013_v6 = vpack.c.bf16 %v8129_v44, %v8113_v14  ;;  %6188 = vrcp.f32 %v2103_v26  ;;  %v2172_v36 = vmul.f32 %v8086_v41, %v2156_v52  ;;  %v2157_v15 = vadd.f32 %v7972_v40, %v1902_v10  ;;  %v8170_v60 = vpop.permute.xlu0 %2329 }
 0x267   : > { %v6173_v37 = vpop.eup %6172  ;;  %v9807_v20 = vsub.f32 1.0, %v7974_v38  ;;  %6190 = vrcp.f32 %v2105_v19  ;;  %v2190_v5 = vadd.f32 %v2174_v39, %v8015_v62  ;;  %v2175_v45 = vmul.f32 %v6169_v27, %v2159_v43  ;;  %v8172_v12 = vpop.permute.xlu1 %2332 }
 0x268   : > { %v6175_v0 = vpop.eup %6174  ;;  %5014 = vmatmul.mubr.msk.bf16.vlgmr.msra.gmra.mrb[32].mxu0 %vm5012_vm9, %v5013_v6  ;;  %5484 = vmatprep.mubr.msk.bf16.mxu1 %vm5012_vm9, %v5013_v6  ;;  %v2228_v63 = vmul.f32 %v6173_v37, %v9808_v46  ;;  %v2188_v23 = vadd.f32 %v2172_v36, %v8021_v18  ;;  %v2173_v26 = vmul.f32 %v6165_v29, %v2157_v15  ;;  %v9809_v38 = vmov 0  }
 0x269   : > { %v2230_v50 = vmul.f32 %v6171_v4, %v9807_v20  ;;  %v6177_v28 = vpop.eup %6176  ;;  %5485 = vmatmul.mubr.msk.bf16.vlgmr.msra.gmra.mrb[128].mxu1 %vm8144_vm8, %v8137_v3  ;;  %2434 = vmatprep.mubr.bf16.mxu0 %v9809_v38  ;;  %v9810_v41 = vsub.f32 1.0, %v7991_v54  ;;  %v2218_v62 = vsub.f32 1.0, %v8060_v32  ;;  %9811 = vst [vmem:[#allocation116_spill] sm:$0xff] %v8172_v12  ;;  %6192 = vtanh.f32 %v2190_v5  ;;  %v8183_v54 = vld [vmem:[#allocation5 + $0x8] ss:$12 sps:$4 sm:$0xff]  }
 0x26a   : > { %v2191_v42 = vadd.f32 %v2175_v45, %v8029_v51  ;;  %v9812_v18 = vsub.f32 1.0, %v7928_v21  ;;  %v8178_v19 = vadd.f32 %v8077_v55, %v2228_v63  ;;  %3075 = vmatpush1.bf16.msra.mxu0 %v8180_v25  ;;  %5501 = vmatpush3.bf16.msra.mxu1 %v8183_v54  ;;  %6194 = vtanh.f32 %v2188_v23  ;;  %v8192_v21 = vld [vmem:[#allocation5 + $0x1c] ss:$12 sps:$4 sm:$0xff]   ;;  %v8195_v55 = vld [vmem:[#allocation5 + $0x20] ss:$12 sps:$4 sm:$0xff]   ;;  %v6179_v52 = vpop.eup %6178 }
 0x26b   : > { %v2231_v61 = vmul.f32 %v6175_v0, %v9810_v41  ;;  %v2189_v22 = vadd.f32 %v2173_v26, %v8033_v1  ;;  %v8188_v27 = vadd.f32 %v8095_v53, %v2230_v50  ;;  %3076 = vmatprep.subr.bf16.mxu0 %v8192_v21  ;;  %5502 = vmatprep.subr.bf16.mxu1 %v8195_v55  ;;  %v2216_v1 = vsub.f32 1.0, %v8007_v9  ;;  %v6181_v4 = vpop.eup %6180  ;;  %v8232_v45 = vld [vmem:[#allocation5 + $0x38] ss:$12 sps:$4 sm:$0xff]   ;;  %v8338_v20 = vld [vmem:[#allocation5 + $0x60] ss:$12 sps:$4 sm:$0xff]  }
 0x26c   : > { %v2229_v29 = vmul.f32 %v6177_v28, %v9812_v18  ;;  %6196 = vtanh.f32 %v2191_v42  ;;  %v2250_v53 = vmul.f32 0.0, %v8060_v32  ;;  %v2219_v39 = vsub.f32 1.0, %v8069_v13  ;;  %v6183_v10 = vpop.eup %6182  ;;  %v8214_v32 = vld [vmem:[#allocation5 + $0x18] ss:$12 sps:$4 sm:$0xff]   ;;  %9816 = vst [vmem:[#allocation118_spill] sm:$0xff] %v8232_v45  ;;  %v8245_v28 = vpop.permute.xlu1 %2338  ;;  %9837 = vst [vmem:[#allocation133_spill] sm:$0xff] %v8338_v20 }
 0x26d   : > { %v8190_v51 = vadd.f32 %v2247_v16, %v2231_v61  ;;  %6198 = vtanh.f32 %v2189_v22  ;;  %v2234_v43 = vmul.f32 %v6179_v52, %v2218_v62  ;;  %v2232_v37 = vmul.f32 %v6181_v4, %v2216_v1  ;;  %9820 = vst [vmem:[#allocation120_spill] sm:$0xff] %v8245_v28  ;;  %v8266_v42 = vld [vmem:[#allocation5 + $0x30] ss:$12 sps:$4 sm:$0xff]   ;;  %v8402_v63 = vld [vmem:[#allocation5 + $0xa8] ss:$12 sps:$4 sm:$0xff]  }
 0x26e   : > { %v8199_v35 = vadd.f32 %v8084_v58, %v2229_v29  ;;  %v2217_v58 = vsub.f32 1.0, %v8038_v17  ;;  %v2248_v36 = vmul.f32 0.0, %v8007_v9  ;;  %3077 = vmatpush1.bf16.msra.mxu0 %v8214_v32  ;;  %5503 = vmatpush3.bf16.msra.mxu1 %v8195_v55  ;;  %v6185_v15 = vpop.eup %6184  ;;  %v2235_v50 = vmul.f32 %v6183_v10, %v2219_v39  ;;  %v8229_v9 = vld [vmem:[#allocation5 + $0x34] ss:$12 sps:$4 sm:$0xff]   ;;  %v8274_v29 = vld [vmem:[#allocation5 + $0x4c] ss:$12 sps:$4 sm:$0xff]  }
 0x26f   : > { %v8205_v16 = vpack.c.bf16 %v8190_v51, %v8188_v27  ;;  %v2251_v0 = vmul.f32 0.0, %v8069_v13  ;;  %v8227_v5 = vadd.f32 %v2250_v53, %v2234_v43  ;;  %3078 = vmatprep.subr.bf16.mxu0 %v8229_v9  ;;  %5504 = vmatprep.subr.bf16.mxu1 %v8232_v45  ;;  %v6187_v46 = vpop.eup %6186  ;;  %v8243_v13 = vpop.permute.xlu0 %2335  ;;  %v2249_v26 = vmul.f32 0.0, %v8038_v17  ;;  %v8277_v22 = vld [vmem:[#allocation5 + $0x50] ss:$12 sps:$4 sm:$0xff]   ;;  %9852 = vst [vmem:[#allocation144_spill] sm:$0xff] %v8402_v63 }
 0x270   : > { %v8210_v6 = vpack.c.bf16 %v8199_v35, %v8178_v19  ;;  %9819 = vst [vmem:[#allocation119_spill] sm:$0xff] %v8243_v13  ;;  %5017 = vmatmul.mubr.msk.bf16.gmra.mrb[36].mxu0 %vm8144_vm8, %v8137_v3  ;;  %v2233_v23 = vmul.f32 %v6185_v15, %v2217_v58  ;;  %v8254_v41 = vadd.f32 %v2248_v36, %v2232_v37  ;;  %v6189_v61 = vpop.eup %6188  ;;  %vm9647_vm12 = vcmp.eq.s32.totalorder %v8170_v60, 1  ;;  %v8297_v15 = vpop.permute.xlu1 %2344 }
 0x271   : > { %9815 = vst [vmem:[#allocation117_spill] sm:$0xff] %v8227_v5  ;;  %2444 = vmatprep.mubr.bf16.mxu0 %v9809_v38  ;;  %v8260_v62 = vadd.f32 %v2251_v0, %v2235_v50  ;;  %v6191_v8 = vpop.eup %6190  ;;  %vm9645_vm13 = vcmp.eq.s32.totalorder %v8172_v12, 1  ;;  %v2222_v18 = vsub.f32 1.0, %v6187_v46  ;;  %9823 = vst [vmem:[#allocation123_spill] sm:$0xff] %v8277_v22  ;;  %vm9646_vm14 = vcmp.eq.s32.totalorder %v8243_v13, 1 }
 0x272   : > { %5488 = vmatprep.mubr.msk.bf16.mxu1 %vm8222_vm10, %v8210_v6  ;;  %v8264_v3 = vadd.f32 %v2249_v26, %v2233_v23  ;;  %3079 = vmatpush1.bf16.msra.mxu0 %v8266_v42  ;;  %v2220_v53 = vsub.f32 1.0, %v8110_v57  ;;  %vm8290_vm15 = vmpackc.low %vm9645_vm13, %vm9647_vm12  ;;  %vm9644_vm8 = vcmp.eq.s32.totalorder %v8245_v28, 1  ;;  %v2223_v43 = vsub.f32 1.0, %v6191_v8  ;;  %9827 = vst [vmem:[#allocation125_spill] sm:$0xff] %v8297_v15  ;;  %v8303_v26 = vld [vmem:[#allocation5 + $0x48] ss:$12 sps:$4 sm:$0xff]  }
 0x273   : > { %5489 = vmatmul.mubr.msk.bf16.gmra.mrb[132].mxu1 %vm8239_vm11, %v8205_v16  ;;  %9821 = vst [vmem:[#allocation121_spill] sm:$0xff] %v8260_v62  ;;  %v8272_v17 = vpack.c.bf16 %v8260_v62, %v8227_v5  ;;  %3080 = vmatprep.subr.bf16.mxu0 %v8274_v29  ;;  %v6193_v52 = vpop.eup %6192  ;;  %v2254_v58 = vmul.f32 0.0, %v6187_v46  ;;  %v8295_v36 = vpop.permute.xlu0 %2341  ;;  %v2221_v50 = vsub.f32 1.0, %v6189_v61  ;;  %v2252_v23 = vmul.f32 0.0, %v8110_v57  ;;  %9828 = vst [vmem:[#allocation126_spill] sm:$0xff] %v8303_v26 }
 0x274   : > { %9822 = vst [vmem:[#allocation122_spill] sm:$0xff] %v8264_v3  ;;  %5505 = vmatpush3.bf16.msra.mxu1 %v8232_v45  ;;  %v8283_v1 = vpack.c.bf16 %v8264_v3, %v8254_v41  ;;  %v6195_v4 = vpop.eup %6194  ;;  %v2238_v10 = vmul.f32 %v6193_v52, %v2222_v18  ;;  %9826 = vst [vmem:[#allocation124_spill] sm:$0xff] %v8295_v36  ;;  %v2255_v46 = vmul.f32 0.0, %v6191_v8  ;;  %v8308_v12 = vld [vmem:[#allocation5 + $0x64] ss:$12 sps:$4 sm:$0xff]   ;;  %v8548_v31 = vsel %vm2356_vm4, %v8178_v19, 0.0 }
 0x275   : > { %5506 = vmatprep.subr.bf16.mxu1 %v8277_v22  ;;  %v2236_v0 = vmul.f32 %v6195_v4, %v2220_v53  ;;  %9830 = vst [vmem:[#allocation128_spill] sm:$0xff] %v8308_v12  ;;  %vm8316_vm9 = vmpackc.low %vm9644_vm8, %vm9646_vm14  ;;  %v2253_v53 = vmul.f32 0.0, %v6189_v61  ;;  %vm2364_vm8 = vcmp.eq.s32.totalorder %v8295_v36, 1  ;;  %v8557_v7 = vsel %vm2358_vm6, %v8188_v27, 0.0 }
 0x276   : > { %v6197_v37 = vpop.eup %6196  ;;  %5492 = vmatprep.mubr.msk.bf16.mxu1 %vm8290_vm15, %v8283_v1  ;;  %3081 = vmatpush1.bf16.msra.mxu0 %v8303_v26  ;;  %v8306_v52 = vadd.f32 %v2254_v58, %v2238_v10 }
 0x277   : > { %v6199_v62 = vpop.eup %6198  ;;  %v2239_v18 = vmul.f32 %v6197_v37, %v2223_v43  ;;  %3082 = vmatprep.subr.bf16.mxu0 %v8308_v12  ;;  %v8323_v4 = vadd.f32 %v2252_v23, %v2236_v0  ;;  %v8325_v43 = vld [vmem:[#allocation5 + $0x68] ss:$12 sps:$4 sm:$0xff]   ;;  %v8347_v58 = vpop.permute.xlu0 %2347  ;;  %v8353_v0 = vld [vmem:[#allocation5 + $0x80] ss:$12 sps:$4 sm:$0xff]  }
 0x278   : > { %9829 = vst [vmem:[#allocation127_spill] sm:$0xff] %v8306_v52  ;;  %5507 = vmatpush3.bf16.msra.mxu1 %v8277_v22  ;;  %5020 = vmatmul.mubr.msk.bf16.gmra.mrb[40].mxu0 %vm8222_vm10, %v8210_v6  ;;  %v2237_v8 = vmul.f32 %v6199_v62, %v2221_v50  ;;  %9834 = vst [vmem:[#allocation130_spill] sm:$0xff] %v8325_v43  ;;  %vm9648_vm10 = vcmp.eq.s32.totalorder %v8297_v15, 1  ;;  %v8343_v62 = vld [vmem:[#allocation5 + $0x7c] ss:$12 sps:$4 sm:$0xff]   ;;  %v8349_v37 = vpop.permute.xlu1 %2350  ;;  %vm2366_vm13 = vcmp.eq.s32.totalorder %v8347_v58, 1 }
 0x279   : > { %9833 = vst [vmem:[#allocation129_spill] sm:$0xff] %v8323_v4  ;;  %5508 = vmatprep.subr.bf16.mxu1 %v8325_v43  ;;  %2454 = vmatprep.mubr.bf16.mxu0 %v9809_v38  ;;  %v8332_v10 = vadd.f32 %v2255_v46, %v2239_v18  ;;  %9838 = vst [vmem:[#allocation134_spill] sm:$0xff] %v8343_v62  ;;  %vm2367_vm12 = vcmp.eq.s32.totalorder %v8349_v37, 1  ;;  %v8368_v18 = vld [vmem:[#allocation5 + $0x78] ss:$12 sps:$4 sm:$0xff]  }
 0x27a   : > { %v8336_v6 = vadd.f32 %v2253_v53, %v2237_v8  ;;  %3083 = vmatpush1.bf16.msra.mxu0 %v8338_v20  ;;  %9839 = vst [vmem:[#allocation135_spill] sm:$0xff] %v8347_v58  ;;  %9840 = vst [vmem:[#allocation136_spill] sm:$0xff] %v8349_v37  ;;  %v8371_v46 = vld [vmem:[#allocation5 + $0x94] ss:$12 sps:$4 sm:$0xff]   ;;  %v8386_v53 = vld [vmem:[#allocation5 + $0x98] ss:$12 sps:$4 sm:$0xff]  }
 0x27b   : > { %5493 = vmatmul.mubr.msk.bf16.gmra.mrb[136].mxu1 %vm8316_vm9, %v8272_v17  ;;  %9835 = vst [vmem:[#allocation131_spill] sm:$0xff] %v8332_v10  ;;  %v5034_v61 = vpack.c.bf16 %v8332_v10, %v8306_v52  ;;  %3084 = vmatprep.subr.bf16.mxu0 %v8343_v62  ;;  %9841 = vst [vmem:[#allocation137_spill] sm:$0xff] %v8353_v0  ;;  %v8392_v10 = vld [vmem:[#allocation5 + $0x90] ss:$12 sps:$4 sm:$0xff]   ;;  %v8395_v37 = vld [vmem:[#allocation5 + $0xac] ss:$12 sps:$4 sm:$0xff]  }
 0x27c   : > { %9836 = vst [vmem:[#allocation132_spill] sm:$0xff] %v8336_v6  ;;  %5509 = vmatpush3.bf16.msra.mxu1 %v8325_v43  ;;  %v5031_v50 = vpack.c.bf16 %v8336_v6, %v8323_v4  ;;  %vm8361_vm14 = vmpackc.low %vm9648_vm10, %vm2364_vm8  ;;  %v6704_v58 = vld [vmem:[#allocation5 + $0x4] ss:$12 sps:$4 sm:$0xff]  }
 0x27d   : > { %5510 = vmatprep.subr.bf16.mxu1 %v8353_v0  ;;  %9844 = vst [vmem:[#allocation138_spill] sm:$0xff] %v8368_v18  ;;  %9845 = vst [vmem:[#allocation139_spill] sm:$0xff] %v8371_v46 }
 0x27e   : > { %5496 = vmatprep.mubr.msk.bf16.mxu1 %vm8361_vm14, %v5031_v50  ;;  %3085 = vmatpush1.bf16.msra.mxu0 %v8368_v18  ;;  %vm8379_vm10 = vmpackc.low %vm2367_vm12, %vm2366_vm13  ;;  %9848 = vst [vmem:[#allocation140_spill] sm:$0xff] %v8386_v53 }
 0x27f   : > { %3086 = vmatprep.subr.bf16.mxu0 %v8371_v46  ;;  %9849 = vst [vmem:[#allocation141_spill] sm:$0xff] %v8392_v10  ;;  %9850 = vst [vmem:[#allocation142_spill] sm:$0xff] %v8395_v37 }
 0x280   : > { %5511 = vmatpush3.bf16.msra.mxu1 %v8353_v0  ;;  %5023 = vmatmul.mubr.msk.bf16.gmra.mrb[44].mxu0 %vm8239_vm11, %v8205_v16  ;;  %v8399_v16 = vld [vmem:[#allocation5 + $0xb0] ss:$12 sps:$4 sm:$0xff]  }
 0x281   : > { %5512 = vmatprep.subr.bf16.mxu1 %v8386_v53  ;;  %2464 = vmatprep.mubr.bf16.mxu0 %v9809_v38  ;;  %9851 = vst [vmem:[#allocation143_spill] sm:$0xff] %v8399_v16 }
 0x282   : > { %3087 = vmatpush1.bf16.msra.mxu0 %v8392_v10 }
 0x283   : > { %5497 = vmatmul.mubr.msk.bf16.gmra.mrb[140].mxu1 %vm8379_vm10, %v5034_v61  ;;  %3088 = vmatprep.subr.bf16.mxu0 %v8395_v37 }
 0x284   : > { %5513 = vmatpush3.bf16.msra.mxu1 %v8386_v53 }
 0x285   : > { %5514 = vmatprep.subr.bf16.mxu1 %v8399_v16 }
 0x286   : > { %3089 = vmatpush1.bf16.msra.mxu0 %v8402_v63 }
 0x287   : > { %3756 = vmatprep.subr.bf16.mxu0 %v6704_v58 }
 0x288   : > { %5515 = vmatpush3.bf16.msra.mxu1 %v8399_v16  ;;  %5026 = vmatmul.mubr.msk.bf16.gmra.mrb[48].mxu0 %vm8290_vm15, %v8283_v1 }
 0x289   : > { %5532 = vmatprep.subr.bf16.mxu1 %v8183_v54  ;;  %2474 = vmatprep.mubr.bf16.mxu0 %v9809_v38 }
 0x290   : > { %5029 = vmatmul.mubr.msk.bf16.gmra.mrb[52].mxu0 %vm8316_vm9, %v8272_v17 }
 0x291   : > { %2484 = vmatprep.mubr.bf16.mxu0 %v9809_v38 }
 0x298   : > { %5032 = vmatmul.mubr.msk.bf16.gmra.mrb[56].mxu0 %vm8361_vm14, %v5031_v50 }
 0x299   : > { %2494 = vmatprep.mubr.bf16.mxu0 %v9809_v38 }
 0x2a0   : > { %5035 = vmatmul.mubr.msk.bf16.gmra.mrb[60].mxu0 %vm8379_vm10, %v5034_v61 }
 0x2a1   : > { %3106 = vmatprep.mubr.bf16.mxu0 %v9809_v38 }
 0x33b   : > { %v2426_v1 = vpop.f32.mrb[32].mxu0 }
 0x33c   : > { %v5612_v39 = vadd.f32 %v2426_v1, %v7811_v34  ;;  %v2428_v58 = vpop.f32.mrb[33].mxu0  ;;  %v8422_v52 = vpop.f32.mrb[128].mxu1 }
 0x33d   : > { %v5613_v17 = vadd.f32 %v2428_v58, %v7814_v56  ;;  %v2430_v57 = vpop.f32.mrb[34].mxu0  ;;  %v8425_v15 = vpop.f32.mrb[129].mxu1 }
 0x33e   : > { %v5060_v23 = vmul.f32 -1.442695, %v5612_v39  ;;  %v5614_v50 = vadd.f32 %v2430_v57, %v7811_v34  ;;  %v2432_v6 = vpop.f32.mrb[35].mxu0  ;;  %v8428_v16 = vpop.f32.mrb[130].mxu1 }
 0x33f   : > { %v5076_v61 = vmul.f32 -1.442695, %v5613_v17  ;;  %v5615_v8 = vadd.f32 %v2432_v6, %v7814_v56  ;;  %v8431_v53 = vpop.f32.mrb[131].mxu1 }
 0x340   : > { %6200 = vpow2.f32 %v5060_v23  ;;  %v5061_v1 = vmul.f32 -1.442695, %v5614_v50 }
 0x341   : > { %6202 = vpow2.f32 %v5076_v61  ;;  %v5077_v63 = vmul.f32 -1.442695, %v5615_v8 }
 0x342   : > { %6204 = vpow2.f32 %v5061_v1 }
 0x343   : > { %6206 = vpow2.f32 %v5077_v63  ;;  %v2436_v58 = vpop.f32.mrb[36].mxu0 }
 0x344   : > { %v5616_v36 = vadd.f32 %v2436_v58, %v7811_v34  ;;  %v2438_v39 = vpop.f32.mrb[37].mxu0 }
 0x345   : > { %v5617_v57 = vadd.f32 %v2438_v39, %v7814_v56  ;;  %v2440_v0 = vpop.f32.mrb[38].mxu0 }
 0x346   : > { %v8434_v4 = vpop.f32.mrb[132].mxu1  ;;  %v5062_v6 = vmul.f32 -1.442695, %v5616_v36  ;;  %v5618_v37 = vadd.f32 %v2440_v0, %v7811_v34  ;;  %v2442_v23 = vpop.f32.mrb[39].mxu0 }
 0x347   : > { %v8437_v17 = vpop.f32.mrb[133].mxu1  ;;  %v5078_v61 = vmul.f32 -1.442695, %v5617_v57  ;;  %v5619_v63 = vadd.f32 %v2442_v23, %v7814_v56 }
 0x348   : > { %v8440_v50 = vpop.f32.mrb[134].mxu1  ;;  %6208 = vpow2.f32 %v5062_v6  ;;  %v5063_v1 = vmul.f32 -1.442695, %v5618_v37 }
 0x349   : > { %v8443_v8 = vpop.f32.mrb[135].mxu1  ;;  %6210 = vpow2.f32 %v5078_v61  ;;  %v5079_v58 = vmul.f32 -1.442695, %v5619_v63 }
 0x34a   : > { %v6201_v28 = vpop.eup %6200  ;;  %6212 = vpow2.f32 %v5063_v1 }
 0x34b   : > { %v6203_v39 = vpop.eup %6202  ;;  %v2666_v10 = vadd.f32 1.0, %v6201_v28  ;;  %6214 = vpow2.f32 %v5079_v58  ;;  %v2446_v36 = vpop.f32.mrb[40].mxu0 }
 0x34c   : > { %v6205_v43 = vpop.eup %6204  ;;  %v2778_v0 = vadd.f32 1.0, %v6203_v39  ;;  %v5620_v46 = vadd.f32 %v2446_v36, %v7811_v34  ;;  %v2448_v18 = vpop.f32.mrb[41].mxu0 }
 0x34d   : > { %v6207_v23 = vpop.eup %6206  ;;  %6216 = vrcp.f32 %v2666_v10  ;;  %v2667_v22 = vadd.f32 1.0, %v6205_v43  ;;  %v5621_v37 = vadd.f32 %v2448_v18, %v7814_v56  ;;  %v2450_v6 = vpop.f32.mrb[42].mxu0  ;;  %v9856_v10 = vld [vmem:[#allocation67_spill] sm:$0xff] }
 0x34e   : > { %v8446_v57 = vpop.f32.mrb[136].mxu1  ;;  %6218 = vrcp.f32 %v2778_v0  ;;  %v2779_v63 = vadd.f32 1.0, %v6207_v23  ;;  %v5064_v28 = vmul.f32 -1.442695, %v5620_v46  ;;  %v5622_v1 = vadd.f32 %v2450_v6, %v7811_v34  ;;  %v2452_v58 = vpop.f32.mrb[43].mxu0  ;;  %v9857_v23 = vld [vmem:[#allocation68_spill] sm:$0xff] }
 0x34f   : > { %9853 = vst [vmem:[#allocation145_spill] sm:$0xff] %v8446_v57  ;;  %v8449_v61 = vpop.f32.mrb[137].mxu1  ;;  %6220 = vrcp.f32 %v2667_v22  ;;  %v5080_v36 = vmul.f32 -1.442695, %v5621_v37  ;;  %v5623_v3 = vadd.f32 %v2452_v58, %v7814_v56  ;;  %v8459_v18 = vadd.f32 %v9856_v10, %v7921_v2  ;;  %v9859_v37 = vld [vmem:[#allocation70_spill] sm:$0xff] }
 0x350   : > { %v8452_v39 = vpop.f32.mrb[138].mxu1  ;;  %6222 = vrcp.f32 %v2779_v63  ;;  %v5065_v43 = vmul.f32 -1.442695, %v5622_v1  ;;  %v1386_v6 = vadd.f32 %v9857_v23, %v7921_v2  ;;  %v1389_v58 = vadd.f32 %v9859_v37, %v7921_v2  ;;  %v9860_v1 = vld [vmem:[#allocation71_spill] sm:$0xff] }
 0x351   : > { %9854 = vst [vmem:[#allocation146_spill] sm:$0xff] %v8452_v39  ;;  %v8455_v62 = vpop.f32.mrb[139].mxu1  ;;  %6224 = vpow2.f32 %v5064_v28  ;;  %v5081_v0 = vmul.f32 -1.442695, %v5623_v3  ;;  %v9858_v39 = vld [vmem:[#allocation69_spill] sm:$0xff]  ;;  %v8471_v13 = vadd.f32 %v9860_v1, %v7921_v2  ;;  %v9861_v28 = vld [vmem:[#allocation72_spill] sm:$0xff] }
 0x352   : > { %9855 = vst [vmem:[#allocation147_spill] sm:$0xff] %v8455_v62  ;;  %v6209_v46 = vpop.eup %6208  ;;  %v8465_v22 = vadd.f32 %v9858_v39, %v7921_v2  ;;  %6226 = vpow2.f32 %v5080_v36  ;;  %v8475_v3 = vadd.f32 %v9861_v28, %v7921_v2  ;;  %v9862_v39 = vld [vmem:[#allocation73_spill] sm:$0xff]  ;;  %v2826_v28 = vadd.f32 %v7972_v40, %v8425_v15 }
 0x353   : > { %v6211_v63 = vpop.eup %6210  ;;  %v2668_v10 = vadd.f32 1.0, %v6209_v46  ;;  %6228 = vpow2.f32 %v5065_v43  ;;  %v2456_v23 = vpop.f32.mrb[44].mxu0  ;;  %v8479_v57 = vadd.f32 %v9862_v39, %v7921_v2  ;;  %v8495_v15 = vsel %vm2352_vm0, %v8113_v14, 0.0 }
 0x354   : > { %v6213_v5 = vpop.eup %6212  ;;  %v2780_v20 = vadd.f32 1.0, %v6211_v63  ;;  %6230 = vpow2.f32 %v5081_v0  ;;  %v5624_v36 = vadd.f32 %v2456_v23, %v7811_v34  ;;  %v2458_v37 = vpop.f32.mrb[45].mxu0 }
 0x355   : > { %v6215_v1 = vpop.eup %6214  ;;  %6232 = vrcp.f32 %v2668_v10  ;;  %v2669_v46 = vadd.f32 1.0, %v6213_v5  ;;  %v5625_v43 = vadd.f32 %v2458_v37, %v7814_v56  ;;  %v2460_v45 = vpop.f32.mrb[46].mxu0 }
 0x356   : > { %v8482_v62 = vpop.f32.mrb[140].mxu1  ;;  %6234 = vrcp.f32 %v2780_v20  ;;  %v2781_v39 = vadd.f32 1.0, %v6215_v1  ;;  %v5066_v63 = vmul.f32 -1.442695, %v5624_v36  ;;  %v5626_v0 = vadd.f32 %v2460_v45, %v7811_v34  ;;  %v2462_v23 = vpop.f32.mrb[47].mxu0 }
 0x357   : > { %9863 = vst [vmem:[#allocation67_spill] sm:$0xff] %v8482_v62  ;;  %v8487_v12 = vpop.f32.mrb[141].mxu1  ;;  %v6217_v62 = vpop.eup %6216  ;;  %6236 = vrcp.f32 %v2669_v46  ;;  %v5082_v5 = vmul.f32 -1.442695, %v5625_v43  ;;  %v5627_v10 = vadd.f32 %v2462_v23, %v7814_v56  ;;  %v2827_v45 = vadd.f32 %v7972_v40, %v8431_v53 }
 0x358   : > { %9864 = vst [vmem:[#allocation68_spill] sm:$0xff] %v8487_v12  ;;  %v8490_v26 = vpop.f32.mrb[142].mxu1  ;;  %v8500_v20 = vpop.eup %6218  ;;  %v2842_v36 = vmul.f32 %v6217_v62, %v2826_v28  ;;  %6238 = vrcp.f32 %v2781_v39  ;;  %v5067_v1 = vmul.f32 -1.442695, %v5626_v0  ;;  %v9867_v12 = vld [vmem:[#allocation74_spill] sm:$0xff]  ;;  %v8517_v62 = vsel %vm2353_vm1, %v8129_v44, 0.0 }
 0x359   : > { %9865 = vst [vmem:[#allocation69_spill] sm:$0xff] %v8490_v26  ;;  %v8498_v37 = vpop.f32.mrb[143].mxu1  ;;  %v6221_v26 = vpop.eup %6220  ;;  %v8506_v33 = vadd.f32 %v9867_v12, %v7921_v2  ;;  %v8510_v14 = vmul.f32 %v8500_v20, %v8495_v15  ;;  %6240 = vpow2.f32 %v5066_v63  ;;  %v5083_v46 = vmul.f32 -1.442695, %v5627_v10  ;;  %v9868_v12 = vld [vmem:[#allocation75_spill] sm:$0xff]  ;;  %v9870_v0 = vld [vmem:[#allocation76_spill] sm:$0xff] }
 0x35a   : > { %9866 = vst [vmem:[#allocation70_spill] sm:$0xff] %v8498_v37  ;;  %v8512_v43 = vpop.eup %6222  ;;  %v2858_v23 = vadd.f32 %v2842_v36, %v1386_v6  ;;  %v2843_v53 = vmul.f32 %v6221_v26, %v2827_v45  ;;  %6242 = vpow2.f32 %v5082_v5  ;;  %v8521_v39 = vadd.f32 %v9868_v12, %v7921_v2 }
 0x35b   : > { %v6225_v28 = vpop.eup %6224  ;;  %v8525_v37 = vadd.f32 %v9870_v0, %v7921_v2  ;;  %v8529_v63 = vmul.f32 %v8512_v43, %v8517_v62  ;;  %6244 = vpow2.f32 %v5067_v1  ;;  %v2466_v6 = vpop.f32.mrb[48].mxu0  ;;  %vm9871_vm1 = vcmp.eq.s32.totalorder %v8170_v60, 1 }
 0x35c   : > { %9869 = vst [vmem:[#allocation71_spill] sm:$0xff] %v8521_v39  ;;  %v6227_v48 = vpop.eup %6226  ;;  %6246 = vtanh.f32 %v2858_v23  ;;  %v2859_v44 = vadd.f32 %v2843_v53, %v1389_v58  ;;  %v2670_v26 = vadd.f32 1.0, %v6225_v28  ;;  %v5628_v5 = vadd.f32 %v2466_v6, %v7811_v34  ;;  %v2468_v10 = vpop.f32.mrb[49].mxu0 }
 0x35d   : > { %v6229_v36 = vpop.eup %6228  ;;  %v2782_v45 = vadd.f32 1.0, %v6227_v48  ;;  %6248 = vpow2.f32 %v5083_v46  ;;  %v5629_v12 = vadd.f32 %v2468_v10, %v7814_v56  ;;  %v2470_v0 = vpop.f32.mrb[50].mxu0  ;;  %v8536_v39 = vsel %vm2354_vm2, %v8106_v11, 0.0 }
 0x35e   : > { %v6231_v1 = vpop.eup %6230  ;;  %v2828_v23 = vadd.f32 %v8422_v52, %v7972_v40  ;;  %6250 = vtanh.f32 %v2859_v44  ;;  %v2671_v58 = vadd.f32 1.0, %v6229_v36  ;;  %v2472_v53 = vpop.f32.mrb[51].mxu0  ;;  %v8543_v28 = vsel %vm2355_vm3, %v8121_v59, 0.0 }
 0x35f   : > { %v6233_v46 = vpop.eup %6232  ;;  %6252 = vrcp.f32 %v2670_v26  ;;  %v2783_v6 = vadd.f32 1.0, %v6231_v1  ;;  %v5068_v48 = vmul.f32 -1.442695, %v5628_v5  ;;  %v2829_v52 = vadd.f32 %v8428_v16, %v7972_v40  ;;  %v8559_v26 = vpop.permute.xlu0 %2987 }
 0x360   : > { %v8550_v11 = vpop.eup %6234  ;;  %v2844_v44 = vmul.f32 %v6233_v46, %v2828_v23  ;;  %6254 = vrcp.f32 %v2782_v45  ;;  %v5084_v5 = vmul.f32 -1.442695, %v5629_v12  ;;  %v8568_v40 = vsel %vm2357_vm5, %v8199_v35, 0.0  ;;  %v8579_v36 = vpop.permute.xlu1 %2990 }
 0x361   : > { %v6237_v59 = vpop.eup %6236  ;;  %6256 = vrcp.f32 %v2671_v58  ;;  %v8563_v47 = vmul.f32 %v8550_v11, %v8536_v39  ;;  %vm3034_vm0 = vcmp.eq.s32.totalorder %v8559_v26, 1  ;;  %v8577_v16 = vsel %vm2359_vm7, %v8190_v51, 0.0 }
 0x362   : > { %v8570_v19 = vpop.eup %6238  ;;  %v2860_v24 = vadd.f32 %v2844_v44, %v8459_v18  ;;  %v2845_v27 = vmul.f32 %v6237_v59, %v2829_v52  ;;  %6258 = vrcp.f32 %v2783_v6  ;;  %v5630_v49 = vadd.f32 %v2470_v0, %v7811_v34 }
 0x363   : > { %v6241_v10 = vpop.eup %6240  ;;  %6260 = vpow2.f32 %v5068_v48  ;;  %v2476_v35 = vpop.f32.mrb[52].mxu0  ;;  %v8584_v45 = vmul.f32 %v8570_v19, %v8543_v28  ;;  %v8589_v18 = vsel %vm9871_vm1, %v8254_v41, 0.0  ;;  %vm3035_vm2 = vcmp.eq.s32.totalorder %v8579_v36, 1  ;;  %v8599_v48 = vld [vmem:[%s9624_s6] ss:$0 sm:$0xff] }
 0x364   : > { %v6243_v12 = vpop.eup %6242  ;;  %6262 = vtanh.f32 %v2860_v24  ;;  %v2861_v30 = vadd.f32 %v2845_v27, %v8465_v22  ;;  %v2672_v51 = vadd.f32 1.0, %v6241_v10  ;;  %v5631_v1 = vadd.f32 %v2472_v53, %v7814_v56  ;;  %v2478_v0 = vpop.f32.mrb[53].mxu0 }
 0x365   : > { %v6245_v23 = vpop.eup %6244  ;;  %v2890_v58 = vsub.f32 1.0, %v8500_v20  ;;  %v2784_v46 = vadd.f32 1.0, %v6243_v12  ;;  %6264 = vpow2.f32 %v5084_v5  ;;  %v5632_v6 = vadd.f32 %v2476_v35, %v7811_v34  ;;  %v2480_v60 = vpop.f32.mrb[54].mxu0 }
 0x366   : > { %v6247_v41 = vpop.eup %6246  ;;  %6266 = vtanh.f32 %v2861_v30  ;;  %v2830_v22 = vadd.f32 %v8599_v48, %v8437_v17  ;;  %v2673_v53 = vadd.f32 1.0, %v6245_v23  ;;  %v5633_v52 = vadd.f32 %v2478_v0, %v7814_v56  ;;  %v2482_v44 = vpop.f32.mrb[55].mxu0 }
 0x367   : > { %v6249_v20 = vpop.eup %6248  ;;  %v2906_v59 = vmul.f32 %v6247_v41, %v2890_v58  ;;  %v2891_v5 = vsub.f32 1.0, %v8512_v43  ;;  %6268 = vrcp.f32 %v2672_v51  ;;  %v5069_v24 = vmul.f32 -1.442695, %v5630_v49  ;;  %v8610_v58 = vpop.permute.xlu0 %2993 }
 0x368   : > { %v6251_v27 = vpop.eup %6250  ;;  %v2831_v10 = vadd.f32 %v8599_v48, %v8443_v8  ;;  %6270 = vrcp.f32 %v2784_v46  ;;  %v2785_v35 = vadd.f32 1.0, %v6249_v20  ;;  %v5085_v12 = vmul.f32 -1.442695, %v5631_v1  ;;  %v8613_v8 = vpop.permute.xlu1 %2996 }
 0x369   : > { %v6253_v30 = vpop.eup %6252  ;;  %v2938_v17 = vadd.f32 %v8510_v14, %v2906_v59  ;;  %v2907_v23 = vmul.f32 %v6251_v27, %v2891_v5  ;;  %6272 = vrcp.f32 %v2673_v53  ;;  %v5070_v0 = vmul.f32 -1.442695, %v5632_v6 }
 0x36a   : > { %v8608_v2 = vpop.eup %6254  ;;  %v2846_v43 = vmul.f32 %v6253_v30, %v2830_v22  ;;  %6274 = vrcp.f32 %v2785_v35  ;;  %v5086_v49 = vmul.f32 -1.442695, %v5633_v52  ;;  %v5634_v51 = vadd.f32 %v2480_v60, %v7811_v34 }
 0x36b   : > { %v6257_v41 = vpop.eup %6256  ;;  %v2939_v1 = vadd.f32 %v8529_v63, %v2907_v23  ;;  %6276 = vpow2.f32 %v5069_v24  ;;  %v5635_v14 = vadd.f32 %v2482_v44, %v7814_v56  ;;  %v2486_v46 = vpop.f32.mrb[56].mxu0  ;;  %v8620_v6 = vsel %vm3034_vm0, %v2938_v17, %v8495_v15 }
 0x36c   : > { %v8622_v53 = vpop.eup %6258  ;;  %vm3036_vm3 = vcmp.eq.s32.totalorder %v8610_v58, 1  ;;  %vm3037_vm4 = vcmp.eq.s32.totalorder %v8613_v8, 1  ;;  %v2832_v60 = vadd.f32 %v8599_v48, %v8434_v4  ;;  %v2862_v63 = vadd.f32 %v2846_v43, %v8475_v3  ;;  %v2488_v52 = vpop.f32.mrb[57].mxu0 }
 0x36d   : > { %v2847_v22 = vmul.f32 %v6257_v41, %v2831_v10  ;;  %6278 = vpow2.f32 %v5085_v12  ;;  %v6261_v44 = vpop.eup %6260  ;;  %v5636_v26 = vadd.f32 %v2486_v46, %v7811_v34  ;;  %v2490_v15 = vpop.f32.mrb[58].mxu0  ;;  %v8633_v20 = vsel %vm3035_vm2, %v2939_v1, %v8517_v62 }
 0x36e   : > { %6280 = vpow2.f32 %v5070_v0  ;;  %v2892_v59 = vsub.f32 1.0, %v8550_v11  ;;  %v6263_v5 = vpop.eup %6262  ;;  %v2674_v3 = vadd.f32 1.0, %v6261_v44  ;;  %v2492_v24 = vpop.f32.mrb[59].mxu0  ;;  %v2893_v27 = vsub.f32 1.0, %v8570_v19 }
 0x36f   : > { %6282 = vtanh.f32 %v2862_v63  ;;  %v2863_v4 = vadd.f32 %v2847_v22, %v8506_v33  ;;  %v6265_v10 = vpop.eup %6264  ;;  %v5071_v35 = vmul.f32 -1.442695, %v5634_v51  ;;  %v5087_v12 = vmul.f32 -1.442695, %v5635_v14  ;;  %v8648_v14 = vpop.permute.xlu0 %2999 }
 0x370   : > { %6284 = vpow2.f32 %v5086_v49  ;;  %v5637_v30 = vadd.f32 %v2488_v52, %v7814_v56  ;;  %v6267_v17 = vpop.eup %6266  ;;  %v2786_v62 = vadd.f32 1.0, %v6265_v10  ;;  %v3066_v11 = vpack.c.bf16 %v8633_v20, %v8620_v6 }
 0x371   : > { %6286 = vtanh.f32 %v2863_v4  ;;  %v2908_v36 = vmul.f32 %v6263_v5, %v2892_v59  ;;  %v6269_v23 = vpop.eup %6268  ;;  %v2833_v33 = vadd.f32 %v8599_v48, %v8440_v50  ;;  %v5072_v0 = vmul.f32 -1.442695, %v5636_v26  ;;  %v8663_v59 = vpop.permute.xlu1 %3002 }
 0x372   : > { %6288 = vrcp.f32 %v2674_v3  ;;  %v2909_v19 = vmul.f32 %v6267_v17, %v2893_v27  ;;  %v8643_v43 = vpop.eup %6270  ;;  %v2848_v49 = vmul.f32 %v6269_v23, %v2832_v60  ;;  %3107 = vmatmul.mubr.bf16.vlgmr.msra.gmra.mrb[64].mxu0 %v3066_v11  ;;  %5516 = vmatprep.mubr.bf16.mxu1 %v3066_v11  ;;  %v2926_v41 = vmul.f32 %v8608_v2, %v8548_v31 }
 0x373   : > { %6290 = vrcp.f32 %v2786_v62  ;;  %v2940_v51 = vadd.f32 %v8563_v47, %v2908_v36  ;;  %v6273_v1 = vpop.eup %6272  ;;  %v5088_v46 = vmul.f32 -1.442695, %v5637_v30  ;;  %v2496_v50 = vpop.f32.mrb[60].mxu0  ;;  %3116 = vmatprep.mubr.bf16.mxu0 %v9809_v38  ;;  %v8654_v60 = vmul.f32 %v8622_v53, %v8568_v40  ;;  %3757 = vmatpush1.bf16.msra.mxu0 %v8180_v25 }
 0x374   : > { %6292 = vpow2.f32 %v5071_v35  ;;  %v2941_v63 = vadd.f32 %v8584_v45, %v2909_v19  ;;  %v8657_v47 = vpop.eup %6274  ;;  %vm3038_vm5 = vcmp.eq.s32.totalorder %v8648_v14, 1  ;;  %v2864_v22 = vadd.f32 %v2848_v49, %v8471_v13  ;;  %v2498_v26 = vpop.f32.mrb[61].mxu0  ;;  %3758 = vmatprep.subr.bf16.mxu0 %v8192_v21 }
 0x375   : > { %v2849_v52 = vmul.f32 %v6273_v1, %v2833_v33  ;;  %6294 = vpow2.f32 %v5087_v12  ;;  %v5638_v44 = vadd.f32 %v2490_v15, %v7811_v34  ;;  %v6277_v45 = vpop.eup %6276  ;;  %v5639_v5 = vadd.f32 %v2492_v24, %v7814_v56  ;;  %v2500_v25 = vpop.f32.mrb[62].mxu0 }
 0x376   : > { %6296 = vpow2.f32 %v5072_v0  ;;  %v8669_v4 = vsel %vm3036_vm3, %v2940_v51, %v8536_v39  ;;  %v8674_v13 = vsel %vm3037_vm4, %v2941_v63, %v8543_v28  ;;  %vm3039_vm6 = vcmp.eq.s32.totalorder %v8663_v59, 1  ;;  %v2502_v27 = vpop.f32.mrb[63].mxu0  ;;  %v8689_v33 = vpop.permute.xlu0 %3005 }
 0x377   : > { %v6279_v15 = vpop.eup %6278  ;;  %6298 = vtanh.f32 %v2864_v22  ;;  %v2865_v21 = vadd.f32 %v2849_v52, %v8479_v57  ;;  %v2675_v3 = vadd.f32 1.0, %v6277_v45  ;;  %v5640_v24 = vadd.f32 %v2496_v50, %v7811_v34  ;;  %3759 = vmatpush1.bf16.msra.mxu0 %v8214_v32  ;;  %v9874_v45 = vld [vmem:[#allocation78_spill] sm:$0xff] }
 0x378   : > { %v6281_v10 = vpop.eup %6280  ;;  %v2834_v39 = vadd.f32 %v8599_v48, %v8449_v61  ;;  %v2787_v58 = vadd.f32 1.0, %v6279_v15  ;;  %6300 = vpow2.f32 %v5088_v46  ;;  %v2894_v8 = vsub.f32 1.0, %v8608_v2  ;;  %3760 = vmatprep.subr.bf16.mxu0 %v8229_v9  ;;  %v8704_v46 = vpop.permute.xlu1 %3008 }
 0x379   : > { %v6283_v28 = vpop.eup %6282  ;;  %6302 = vtanh.f32 %v2865_v21  ;;  %v2676_v35 = vadd.f32 1.0, %v6281_v10  ;;  %v3067_v57 = vpack.c.bf16 %v8674_v13, %v8669_v4  ;;  %v2895_v12 = vsub.f32 1.0, %v8622_v53  ;;  %v9875_v21 = vld [vmem:[#allocation128_spill] sm:$0xff] }
 0x37a   : > { %v6285_v30 = vpop.eup %6284  ;;  %6304 = vrcp.f32 %v2675_v3  ;;  %v5073_v17 = vmul.f32 -1.442695, %v5638_v44  ;;  %v5089_v61 = vmul.f32 -1.442695, %v5639_v5  ;;  %v2910_v62 = vmul.f32 %v6283_v28, %v2894_v8  ;;  %v9872_v44 = vld [vmem:[#allocation126_spill] sm:$0xff] }
 0x37b   : > { %v6287_v11 = vpop.eup %6286  ;;  %6306 = vrcp.f32 %v2787_v58  ;;  %v2788_v2 = vadd.f32 1.0, %v6285_v30  ;;  %v5074_v36 = vmul.f32 -1.442695, %v5640_v24  ;;  %3117 = vmatmul.mubr.bf16.gmra.mrb[68].mxu0 %v3067_v57  ;;  %5517 = vmatmul.mubr.bf16.vlgmr.msra.gmra.mrb[144].mxu1 %v3067_v57  ;;  %v2928_v32 = vmul.f32 %v8643_v43, %v8557_v7 }
 0x37c   : > { %v6289_v23 = vpop.eup %6288  ;;  %6308 = vrcp.f32 %v2676_v35  ;;  %3126 = vmatprep.mubr.bf16.mxu0 %v9809_v38  ;;  %v2911_v9 = vmul.f32 %v6287_v11, %v2895_v12  ;;  %v2942_v53 = vadd.f32 %v2926_v41, %v2910_v62  ;;  %v8694_v0 = vmul.f32 %v8657_v47, %v8577_v16  ;;  %3761 = vmatpush1.bf16.msra.mxu0 %v8266_v42  ;;  %v9880_v11 = vld [vmem:[#allocation117_spill] sm:$0xff] }
 0x37d   : > { %v8697_v19 = vpop.eup %6290  ;;  %vm3040_vm7 = vcmp.eq.s32.totalorder %v8689_v33, 1  ;;  %v2850_v49 = vmul.f32 %v6289_v23, %v2834_v39  ;;  %6310 = vrcp.f32 %v2788_v2  ;;  %v5641_v51 = vadd.f32 %v2498_v26, %v7814_v56  ;;  %3762 = vmatprep.subr.bf16.mxu0 %v8274_v29  ;;  %5533 = vmatpush3.bf16.msra.mxu1 %v8183_v54  ;;  %v9877_v39 = vld [vmem:[#allocation147_spill] sm:$0xff]  ;;  %v9883_v23 = vld [vmem:[#allocation134_spill] sm:$0xff] }
 0x37e   : > { %v2896_v1 = vsub.f32 1.0, %v8643_v43  ;;  %v6293_v41 = vpop.eup %6292  ;;  %6312 = vpow2.f32 %v5073_v17  ;;  %v5642_v42 = vadd.f32 %v2500_v25, %v7811_v34  ;;  %v2943_v50 = vadd.f32 %v8654_v60, %v2911_v9  ;;  %5534 = vmatprep.subr.bf16.mxu1 %v8195_v55  ;;  %v9879_v17 = vld [vmem:[#allocation145_spill] sm:$0xff]  ;;  %v9881_v2 = vld [vmem:[#allocation119_spill] sm:$0xff] }
 0x37f   : > { %v8711_v63 = vsel %vm3038_vm5, %v2942_v53, %v8548_v31  ;;  %v6295_v43 = vpop.eup %6294  ;;  %vm3041_vm11 = vcmp.eq.s32.totalorder %v8704_v46, 1  ;;  %v2866_v54 = vadd.f32 %v2850_v49, %v8525_v37  ;;  %v2677_v29 = vadd.f32 1.0, %v6293_v41  ;;  %v9873_v37 = vld [vmem:[#allocation111_spill] sm:$0xff]  ;;  %v9884_v49 = vld [vmem:[#allocation122_spill] sm:$0xff] }
 0x380   : > { %6314 = vpow2.f32 %v5089_v61  ;;  %v8718_v22 = vmul.f32 %v8697_v19, %v8589_v18  ;;  %v6297_v52 = vpop.eup %6296  ;;  %v2789_v60 = vadd.f32 1.0, %v6295_v43  ;;  %v5643_v14 = vadd.f32 %v2502_v27, %v7814_v56  ;;  %3763 = vmatpush1.bf16.msra.mxu0 %v9872_v44  ;;  %v9876_v27 = vld [vmem:[#allocation118_spill] sm:$0xff]  ;;  %v9887_v41 = vld [vmem:[#allocation123_spill] sm:$0xff] }
 0x381   : > { %6316 = vpow2.f32 %v5074_v36  ;;  %v8724_v31 = vsel %vm3039_vm6, %v2943_v50, %v8568_v40  ;;  %v6299_v26 = vpop.eup %6298  ;;  %v1421_v5 = vadd.f32 %v9874_v45, %v9873_v37  ;;  %v2678_v25 = vadd.f32 1.0, %v6297_v52  ;;  %3764 = vmatprep.subr.bf16.mxu0 %v9875_v21  ;;  %5535 = vmatpush3.bf16.msra.mxu1 %v8195_v55  ;;  %v9890_v45 = vld [vmem:[#allocation139_spill] sm:$0xff]  ;;  %v9892_v21 = vld [vmem:[#allocation146_spill] sm:$0xff] }
 0x382   : > { %6318 = vtanh.f32 %v2866_v54  ;;  %v3068_v15 = vpack.c.bf16 %v8724_v31, %v8711_v63  ;;  %v6301_v3 = vpop.eup %6300  ;;  %v5090_v59 = vmul.f32 -1.442695, %v5641_v51  ;;  %v2897_v40 = vsub.f32 1.0, %v8657_v47  ;;  %5536 = vmatprep.subr.bf16.mxu1 %v9876_v27  ;;  %v9878_v47 = vld [vmem:[#allocation133_spill] sm:$0xff]  ;;  %v9885_v51 = vld [vmem:[#allocation116_spill] sm:$0xff] }
 0x383   : > { %6320 = vrcp.f32 %v2677_v29  ;;  %v2912_v24 = vmul.f32 %v6299_v26, %v2896_v1  ;;  %v6303_v10 = vpop.eup %6302  ;;  %v2835_v58 = vadd.f32 %v8599_v48, %v9877_v39  ;;  %v2790_v8 = vadd.f32 1.0, %v6301_v3  ;;  %v9888_v29 = vld [vmem:[#allocation138_spill] sm:$0xff]  ;;  %v9894_v39 = vld [vmem:[#allocation141_spill] sm:$0xff] }
 0x384   : > { %6322 = vrcp.f32 %v2789_v60  ;;  %v5075_v28 = vmul.f32 -1.442695, %v5642_v42  ;;  %3127 = vmatmul.mubr.bf16.gmra.mrb[72].mxu0 %v3068_v15  ;;  %5520 = vmatprep.mubr.bf16.mxu1 %v3068_v15  ;;  %v6305_v35 = vpop.eup %6304  ;;  %v5091_v55 = vmul.f32 -1.442695, %v5643_v14  ;;  %v2913_v57 = vmul.f32 %v6303_v10, %v2897_v40  ;;  %v9889_v60 = vld [vmem:[#allocation71_spill] sm:$0xff] }
 0x385   : > { %6324 = vrcp.f32 %v2678_v25  ;;  %3136 = vmatprep.mubr.bf16.mxu0 %v9809_v38  ;;  %v2944_v12 = vadd.f32 %v2928_v32, %v2912_v24  ;;  %3765 = vmatpush1.bf16.msra.mxu0 %v9878_v47  ;;  %v8739_v30 = vpop.eup %6306  ;;  %v2836_v61 = vadd.f32 %v8599_v48, %v9879_v17  ;;  %v2851_v62 = vmul.f32 %v6305_v35, %v2835_v58  ;;  %v9891_v25 = vld [vmem:[#allocation130_spill] sm:$0xff]  ;;  %v9893_v24 = vld [vmem:[#allocation77_spill] sm:$0xff]  ;;  %v3012_v58 = vpop.permute.xlu0 %3011 }
 0x386   : > { %6326 = vrcp.f32 %v2790_v8  ;;  %vm9882_vm14 = vcmp.eq.s32.totalorder %v9881_v2, 1  ;;  %3766 = vmatprep.subr.bf16.mxu0 %v9883_v23  ;;  %5537 = vmatpush3.bf16.msra.mxu1 %v9876_v27  ;;  %v6309_v9 = vpop.eup %6308  ;;  %v2945_v32 = vadd.f32 %v8694_v0, %v2913_v57  ;;  %vm9886_vm15 = vcmp.eq.s32.totalorder %v9885_v51, 1  ;;  %v9895_v8 = vld [vmem:[#allocation68_spill] sm:$0xff]  ;;  %v9899_v47 = vld [vmem:[#allocation142_spill] sm:$0xff]  ;;  %v9902_v51 = vld [vmem:[#allocation129_spill] sm:$0xff] }
 0x387   : > { %v8746_v36 = vsel %vm9882_vm14, %v9880_v11, 0.0  ;;  %6328 = vpow2.f32 %v5090_v59  ;;  %v8754_v53 = vsel %vm3040_vm7, %v2944_v12, %v8557_v7  ;;  %v8759_v1 = vsel %vm9886_vm15, %v9884_v49, 0.0  ;;  %5538 = vmatprep.subr.bf16.mxu1 %v9887_v41  ;;  %v8762_v42 = vpop.eup %6310  ;;  %v9897_v57 = vld [vmem:[#allocation120_spill] sm:$0xff]  ;;  %v9900_v11 = vld [vmem:[#allocation137_spill] sm:$0xff] }
 0x388   : > { %v2867_v50 = vadd.f32 %v2851_v62, %v1421_v5  ;;  %v2852_v43 = vmul.f32 %v6309_v9, %v2836_v61  ;;  %6330 = vpow2.f32 %v5075_v28  ;;  %v8766_v0 = vmul.f32 %v8739_v30, %v8759_v1  ;;  %v6313_v54 = vpop.eup %6312  ;;  %v9901_v23 = vld [vmem:[#allocation80_spill] sm:$0xff] }
 0x389   : > { %6332 = vpow2.f32 %v5091_v55  ;;  %v8771_v7 = vsel %vm3041_vm11, %v2945_v32, %v8577_v16  ;;  %v8775_v33 = vmul.f32 %v8762_v42, %v8746_v36  ;;  %3767 = vmatpush1.bf16.msra.mxu0 %v9888_v29  ;;  %v2679_v44 = vadd.f32 1.0, %v6313_v54  ;;  %v9896_v55 = vld [vmem:[#allocation121_spill] sm:$0xff]  ;;  %v9904_v29 = vld [vmem:[#allocation144_spill] sm:$0xff] }
 0x38a   : > { %v6315_v52 = vpop.eup %6314  ;;  %6334 = vtanh.f32 %v2867_v50  ;;  %v2868_v14 = vadd.f32 %v2852_v43, %v9889_v60  ;;  %v3069_v26 = vpack.c.bf16 %v8771_v7, %v8754_v53  ;;  %3768 = vmatprep.subr.bf16.mxu0 %v9890_v45  ;;  %5539 = vmatpush3.bf16.msra.mxu1 %v9887_v41  ;;  %v2898_v5 = vsub.f32 1.0, %v8697_v19 }
 0x38b   : > { %v6317_v16 = vpop.eup %6316  ;;  %v2791_v46 = vadd.f32 1.0, %v6315_v52  ;;  %5540 = vmatprep.subr.bf16.mxu1 %v9891_v25  ;;  %v2837_v3 = vadd.f32 %v8599_v48, %v9892_v21  ;;  %v1429_v27 = vadd.f32 %v9893_v24, %v9873_v37  ;;  %v2838_v28 = vadd.f32 %v8599_v48, %v9895_v8  ;;  %v3015_v21 = vpop.permute.xlu1 %3014  ;;  %v9909_v8 = vld [vmem:[#allocation67_spill] sm:$0xff] }
 0x38c   : > { %v6319_v15 = vpop.eup %6318  ;;  %6336 = vtanh.f32 %v2868_v14  ;;  %v2680_v59 = vadd.f32 1.0, %v6317_v16  ;;  %3137 = vmatmul.mubr.bf16.gmra.mrb[76].mxu0 %v3069_v26  ;;  %5521 = vmatmul.mubr.bf16.gmra.mrb[148].mxu1 %v3069_v26  ;;  %vm9898_vm9 = vcmp.eq.s32.totalorder %v9897_v57, 1  ;;  %vm3042_vm10 = vcmp.eq.s32.totalorder %v3012_v58, 1  ;;  %v9905_v16 = vld [vmem:[#allocation140_spill] sm:$0xff]  ;;  %v3018_v58 = vpop.permute.xlu0 %3017  ;;  %v9911_v57 = vld [vmem:[#allocation125_spill] sm:$0xff] }
 0x38d   : > { %v6321_v40 = vpop.eup %6320  ;;  %6338 = vrcp.f32 %v2679_v44  ;;  %3146 = vmatprep.mubr.bf16.mxu0 %v9809_v38  ;;  %v2914_v10 = vmul.f32 %v6319_v15, %v2898_v5  ;;  %3769 = vmatpush1.bf16.msra.mxu0 %v9894_v39  ;;  %v8798_v12 = vsel %vm9898_vm9, %v9896_v55, 0.0  ;;  %v1434_v9 = vadd.f32 %v9901_v23, %v9873_v37  ;;  %v9908_v39 = vld [vmem:[#allocation82_spill] sm:$0xff]  ;;  %v9910_v55 = vld [vmem:[#allocation132_spill] sm:$0xff]  ;;  %v9913_v23 = vld [vmem:[#allocation79_spill] sm:$0xff] }
 0x38e   : > { %v8791_v19 = vpop.eup %6322  ;;  %v2853_v35 = vmul.f32 %v6321_v40, %v2837_v3  ;;  %6340 = vrcp.f32 %v2791_v46  ;;  %3770 = vmatprep.subr.bf16.mxu0 %v9899_v47  ;;  %5541 = vmatpush3.bf16.msra.mxu1 %v9891_v25  ;;  %v8815_v50 = vsel %vm2364_vm8, %v9902_v51, 0.0  ;;  %v2899_v45 = vsub.f32 1.0, %v8739_v30  ;;  %v9906_v3 = vld [vmem:[#allocation70_spill] sm:$0xff] }
 0x38f   : > { %v6325_v17 = vpop.eup %6324  ;;  %6342 = vrcp.f32 %v2680_v59  ;;  %v2946_v61 = vadd.f32 %v8718_v22, %v2914_v10  ;;  %v8805_v62 = vmul.f32 %v8791_v19, %v8798_v12  ;;  %5542 = vmatprep.subr.bf16.mxu1 %v9900_v11  ;;  %v2900_v25 = vsub.f32 1.0, %v8762_v42 }
 0x390   : > { %v8808_v2 = vpop.eup %6326  ;;  %v2869_v32 = vadd.f32 %v2853_v35, %v1429_v27  ;;  %v2854_v49 = vmul.f32 %v6325_v17, %v2838_v28  ;;  %v2839_v59 = vadd.f32 %v8599_v48, %v9906_v3  ;;  %vm3043_vm8 = vcmp.eq.s32.totalorder %v3015_v21, 1  ;;  %v9907_v27 = vld [vmem:[#allocation143_spill] sm:$0xff]  ;;  %v3024_v3 = vpop.permute.xlu0 %3023 }
 0x391   : > { %v6329_v43 = vpop.eup %6328  ;;  %v8818_v22 = vsel %vm3042_vm10, %v2946_v61, %v8589_v18  ;;  %v8822_v54 = vmul.f32 %v8808_v2, %v8815_v50  ;;  %3771 = vmatpush1.bf16.msra.mxu0 %v9904_v29  ;;  %v1437_v42 = vadd.f32 %v9908_v39, %v9873_v37  ;;  %v2840_v28 = vadd.f32 %v8599_v48, %v9909_v8 }
 0x392   : > { %v6331_v52 = vpop.eup %6330  ;;  %6344 = vtanh.f32 %v2869_v32  ;;  %v2870_v60 = vadd.f32 %v2854_v49, %v1434_v9  ;;  %v2792_v14 = vadd.f32 1.0, %v6329_v43  ;;  %5543 = vmatpush3.bf16.msra.mxu1 %v9900_v11  ;;  %vm9912_vm0 = vcmp.eq.s32.totalorder %v9911_v57, 1 }
 0x393   : > { %v6333_v44 = vpop.eup %6332  ;;  %v2681_v26 = vadd.f32 1.0, %v6331_v52  ;;  %5544 = vmatprep.subr.bf16.mxu1 %v9905_v16  ;;  %v2381_v47 = vsel %vm9912_vm0, %v9910_v55, 0.0  ;;  %vm3044_vm1 = vcmp.eq.s32.totalorder %v3018_v58, 1  ;;  %v1442_v9 = vadd.f32 %v9913_v23, %v9873_v37 }
 0x394   : > { %v6335_v18 = vpop.eup %6334  ;;  %6346 = vtanh.f32 %v2870_v60  ;;  %v2793_v46 = vadd.f32 1.0, %v6333_v44  ;;  %v2901_v41 = vsub.f32 1.0, %v8791_v19  ;;  %v2902_v52 = vsub.f32 1.0, %v8808_v2  ;;  %v3021_v44 = vpop.permute.xlu1 %3020 }
 0x395   : > { %6348 = vrcp.f32 %v2792_v14  ;;  %v2915_v5 = vmul.f32 %v6335_v18, %v2899_v45  ;;  %vm3045_vm2 = vcmp.eq.s32.totalorder %v3021_v44, 1  ;;  %vm3046_vm3 = vcmp.eq.s32.totalorder %v3024_v3, 1  ;;  %v3030_v23 = vpop.permute.xlu0 %3029 }
 0x396   : > { %v6337_v15 = vpop.eup %6336  ;;  %6350 = vrcp.f32 %v2681_v26  ;;  %5545 = vmatpush3.bf16.msra.mxu1 %v9905_v16  ;;  %v9914_v26 = vld [vmem:[#allocation69_spill] sm:$0xff]  ;;  %v9915_v16 = vld [vmem:[#allocation127_spill] sm:$0xff] }
 0x397   : > { %v6339_v40 = vpop.eup %6338  ;;  %6352 = vrcp.f32 %v2793_v46  ;;  %v2947_v30 = vadd.f32 %v8766_v0, %v2915_v5  ;;  %v2916_v24 = vmul.f32 %v6337_v15, %v2900_v25  ;;  %5546 = vmatprep.subr.bf16.mxu1 %v9907_v27  ;;  %v2841_v19 = vadd.f32 %v8599_v48, %v9914_v26  ;;  %v9917_v25 = vld [vmem:[#allocation81_spill] sm:$0xff] }
 0x398   : > { %v6341_v10 = vpop.eup %6340  ;;  %v2855_v35 = vmul.f32 %v6339_v40, %v2839_v59  ;;  %v2382_v46 = vsel %vm2366_vm13, %v9915_v16, 0.0  ;;  %v1445_v15 = vadd.f32 %v9917_v25, %v9873_v37  ;;  %v3027_v57 = vpop.permute.xlu1 %3026  ;;  %vm3048_vm13 = vcmp.eq.s32.totalorder %v3030_v23, 1 }
 0x399   : > { %v6343_v17 = vpop.eup %6342  ;;  %v8842_v0 = vsel %vm3043_vm8, %v2947_v30, %v8759_v1  ;;  %v2948_v61 = vadd.f32 %v8775_v33, %v2916_v24  ;;  %v2935_v11 = vmul.f32 %v6341_v10, %v2381_v47 }
 0x39a   : > { %v2871_v32 = vadd.f32 %v2855_v35, %v1437_v42  ;;  %v2856_v49 = vmul.f32 %v6343_v17, %v2840_v28  ;;  %v3070_v51 = vpack.c.bf16 %v8842_v0, %v8818_v22  ;;  %5547 = vmatpush3.bf16.msra.mxu1 %v9907_v27 }
 0x39b   : > { %v8852_v43 = vsel %vm3044_vm1, %v2948_v61, %v8746_v36 }
 0x39c   : > { %v6345_v1 = vpop.eup %6344  ;;  %6354 = vtanh.f32 %v2871_v32  ;;  %v2872_v29 = vadd.f32 %v2856_v49, %v1442_v9  ;;  %3147 = vmatmul.mubr.bf16.gmra.mrb[80].mxu0 %v3070_v51  ;;  %5524 = vmatprep.mubr.bf16.mxu1 %v3070_v51 }
 0x39d   : > { %3156 = vmatprep.mubr.bf16.mxu0 %v9809_v38  ;;  %v2917_v33 = vmul.f32 %v6345_v1, %v2901_v41 }
 0x39e   : > { %v6347_v60 = vpop.eup %6346  ;;  %6356 = vtanh.f32 %v2872_v29 }
 0x39f   : > { %v6349_v14 = vpop.eup %6348  ;;  %v2949_v36 = vadd.f32 %v8805_v62, %v2917_v33  ;;  %v2918_v45 = vmul.f32 %v6347_v60, %v2902_v52  ;;  %v9918_v62 = vld [vmem:[#allocation131_spill] sm:$0xff] }
 0x3a0   : > { %v6351_v5 = vpop.eup %6350  ;;  %v2936_v2 = vmul.f32 %v6349_v14, %v2382_v46  ;;  %v2383_v27 = vsel %vm2367_vm12, %v9918_v62, 0.0  ;;  %v2904_v35 = vsub.f32 1.0, %v6349_v14  ;;  %vm3047_vm12 = vcmp.eq.s32.totalorder %v3027_v57, 1 }
 0x3a1   : > { %v6353_v21 = vpop.eup %6352  ;;  %v2857_v59 = vmul.f32 %v6351_v5, %v2841_v19  ;;  %v8865_v40 = vsel %vm3045_vm2, %v2949_v36, %v8798_v12  ;;  %v2950_v30 = vadd.f32 %v8822_v54, %v2918_v45  ;;  %v2903_v12 = vsub.f32 1.0, %v6341_v10 }
 0x3a2   : > { %v3071_v39 = vpack.c.bf16 %v8865_v40, %v8852_v43  ;;  %v2937_v42 = vmul.f32 %v6353_v21, %v2383_v27  ;;  %v2905_v10 = vsub.f32 1.0, %v6353_v21 }
 0x3a3   : > { %v2873_v58 = vadd.f32 %v2857_v59, %v1445_v15  ;;  %v8874_v8 = vsel %vm3046_vm3, %v2950_v30, %v8815_v50 }
 0x3a4   : > { %3157 = vmatmul.mubr.bf16.gmra.mrb[84].mxu0 %v3071_v39  ;;  %5525 = vmatmul.mubr.bf16.gmra.mrb[152].mxu1 %v3071_v39 }
 0x3a5   : > { %6358 = vtanh.f32 %v2873_v58  ;;  %3166 = vmatprep.mubr.bf16.mxu0 %v9809_v38 }
 0x3a6   : > { %v6355_v54 = vpop.eup %6354 }
 0x3a7   : > { %v2919_v28 = vmul.f32 %v6355_v54, %v2903_v12 }
 0x3a8   : > { %v6357_v55 = vpop.eup %6356 }
 0x3a9   : > { %v2951_v17 = vadd.f32 %v2935_v11, %v2919_v28  ;;  %v2920_v61 = vmul.f32 %v6357_v55, %v2904_v35  ;;  %v3033_v11 = vpop.permute.xlu1 %3032 }
 0x3aa   : > { %vm3049_vm4 = vcmp.eq.s32.totalorder %v3033_v11, 1 }
 0x3ab   : > { %v8877_v9 = vsel %vm3047_vm12, %v2951_v17, %v2381_v47  ;;  %v2952_v32 = vadd.f32 %v2936_v2, %v2920_v61 }
 0x3ac   : > { %v3072_v50 = vpack.c.bf16 %v8877_v9, %v8874_v8 }
 0x3ad   : > { %v8881_v49 = vsel %vm3048_vm13, %v2952_v32, %v2382_v46 }
 0x3ae   : > { %9920 = vst [vmem:[#allocation72_spill] sm:$0xff] %v8881_v49  ;;  %3167 = vmatmul.mubr.bf16.gmra.mrb[88].mxu0 %v3072_v50  ;;  %5528 = vmatprep.mubr.bf16.mxu1 %v3072_v50 }
 0x3af   : > { %v6359_v51 = vpop.eup %6358  ;;  %3176 = vmatprep.mubr.bf16.mxu0 %v9809_v38 }
 0x3b0   : > { %v2921_v41 = vmul.f32 %v6359_v51, %v2905_v10 }
 0x3b2   : > { %v2953_v1 = vadd.f32 %v2937_v42, %v2921_v41 }
 0x3b4   : > { %v8884_v29 = vsel %vm3049_vm4, %v2953_v1, %v2383_v27 }
 0x3b5   : > { %9921 = vst [vmem:[#allocation73_spill] sm:$0xff] %v8884_v29  ;;  %v3073_v47 = vpack.c.bf16 %v8884_v29, %v8881_v49 }
 0x3b7   : > { %3177 = vmatmul.mubr.bf16.gmra.mrb[92].mxu0 %v3073_v47  ;;  %5529 = vmatmul.mubr.bf16.gmra.mrb[156].mxu1 %v3073_v47 }
 0x3b8   : > { %3788 = vmatprep.mubr.bf16.mxu0 %v9809_v38 }
 0x445   : > { %v3108_v33 = vpop.f32.mrb[64].mxu0 }
 0x446   : > { %v5644_v52 = vadd.f32 %v3108_v33, %v7811_v34  ;;  %v3110_v60 = vpop.f32.mrb[65].mxu0 }
 0x447   : > { %v5645_v14 = vadd.f32 %v3110_v60, %v7814_v56  ;;  %v3112_v44 = vpop.f32.mrb[66].mxu0 }
 0x448   : > { %v5092_v26 = vmul.f32 -1.442695, %v5644_v52  ;;  %v5646_v19 = vadd.f32 %v3112_v44, %v7811_v34  ;;  %v3114_v36 = vpop.f32.mrb[67].mxu0 }
 0x449   : > { %v5647_v45 = vadd.f32 %v3114_v36, %v7814_v56  ;;  %v5108_v18 = vmul.f32 -1.442695, %v5645_v14 }
 0x44a   : > { %6360 = vpow2.f32 %v5092_v26  ;;  %v5093_v16 = vmul.f32 -1.442695, %v5646_v19  ;;  %v9922_v26 = vld [vmem:[#allocation20_spill] sm:$0xff] }
 0x44b   : > { %v5109_v46 = vmul.f32 -1.442695, %v5647_v45  ;;  %v8909_v19 = vadd.f32 %v9922_v26, %v7811_v34 }
 0x44c   : > { %6362 = vpow2.f32 %v5093_v16 }
 0x44d   : > { %6364 = vpow2.f32 %v5108_v18 }
 0x44e   : > { %v3118_v5 = vpop.f32.mrb[68].mxu0  ;;  %v8893_v25 = vpop.f32.mrb[144].mxu1  ;;  %6366 = vpow2.f32 %v5109_v46  ;;  %v9923_v46 = vld [vmem:[#allocation21_spill] sm:$0xff] }
 0x44f   : > { %v5648_v15 = vadd.f32 %v3118_v5, %v7811_v34  ;;  %v3120_v2 = vpop.f32.mrb[69].mxu0  ;;  %v3221_v21 = vpop.f32.mrb[145].mxu1  ;;  %v8915_v5 = vadd.f32 %v9923_v46, %v7814_v56 }
 0x450   : > { %v3122_v3 = vpop.f32.mrb[70].mxu0  ;;  %v8896_v59 = vpop.f32.mrb[146].mxu1  ;;  %v5649_v62 = vadd.f32 %v3120_v2, %v7814_v56 }
 0x451   : > { %v5094_v30 = vmul.f32 -1.442695, %v5648_v15  ;;  %v5650_v24 = vadd.f32 %v3122_v3, %v7811_v34  ;;  %v3124_v27 = vpop.f32.mrb[71].mxu0  ;;  %v8900_v39 = vpop.f32.mrb[147].mxu1 }
 0x452   : > { %v5651_v58 = vadd.f32 %v3124_v27, %v7814_v56  ;;  %v5110_v54 = vmul.f32 -1.442695, %v5649_v62  ;;  %v9924_v62 = vld [vmem:[#allocation22_spill] sm:$0xff] }
 0x453   : > { %6368 = vpow2.f32 %v5094_v30  ;;  %v5095_v42 = vmul.f32 -1.442695, %v5650_v24  ;;  %v8922_v24 = vadd.f32 %v9924_v62, %v7811_v34 }
 0x454   : > { %v6361_v12 = vpop.eup %6360  ;;  %v5111_v57 = vmul.f32 -1.442695, %v5651_v58 }
 0x455   : > { %6370 = vpow2.f32 %v5095_v42  ;;  %v3348_v28 = vadd.f32 1.0, %v6361_v12 }
 0x456   : > { %v6363_v55 = vpop.eup %6362 }
 0x457   : > { %v3128_v35 = vpop.f32.mrb[72].mxu0  ;;  %6372 = vrcp.f32 %v3348_v28  ;;  %v3349_v23 = vadd.f32 1.0, %v6363_v55  ;;  %v6365_v11 = vpop.eup %6364 }
 0x458   : > { %v5652_v17 = vadd.f32 %v3128_v35, %v7811_v34  ;;  %v3130_v61 = vpop.f32.mrb[73].mxu0  ;;  %6374 = vpow2.f32 %v5110_v54  ;;  %v6367_v52 = vpop.eup %6366  ;;  %v3460_v44 = vadd.f32 1.0, %v6365_v11  ;;  %v3508_v54 = vadd.f32 %v8599_v48, %v3221_v21 }
 0x459   : > { %v5653_v32 = vadd.f32 %v3130_v61, %v7814_v56  ;;  %v3132_v50 = vpop.f32.mrb[74].mxu0  ;;  %6376 = vrcp.f32 %v3349_v23  ;;  %v3461_v15 = vadd.f32 1.0, %v6367_v52  ;;  %v9925_v61 = vld [vmem:[#allocation84_spill] sm:$0xff]  ;;  %v3509_v21 = vadd.f32 %v8599_v48, %v8900_v39 }
 0x45a   : > { %v5096_v10 = vmul.f32 -1.442695, %v5652_v17  ;;  %v5654_v51 = vadd.f32 %v3132_v50, %v7811_v34  ;;  %v3134_v41 = vpop.f32.mrb[75].mxu0  ;;  %6378 = vpow2.f32 %v5111_v57  ;;  %v1450_v23 = vadd.f32 %v9925_v61, %v9873_v37 }
 0x45b   : > { %v5112_v1 = vmul.f32 -1.442695, %v5653_v32  ;;  %v5655_v47 = vadd.f32 %v3134_v41, %v7814_v56 }
 0x45c   : > { %v5097_v33 = vmul.f32 -1.442695, %v5654_v51  ;;  %6380 = vpow2.f32 %v5096_v10 }
 0x45d   : > { %v5113_v60 = vmul.f32 -1.442695, %v5655_v47  ;;  %v6369_v14 = vpop.eup %6368  ;;  %6382 = vpow2.f32 %v5112_v1  ;;  %v9926_v1 = vld [vmem:[#allocation23_spill] sm:$0xff] }
 0x45e   : > { %v3350_v36 = vadd.f32 1.0, %v6369_v14  ;;  %6384 = vpow2.f32 %v5097_v33  ;;  %v8938_v47 = vadd.f32 %v9926_v1, %v7814_v56  ;;  %v9927_v33 = vld [vmem:[#allocation24_spill] sm:$0xff] }
 0x45f   : > { %v3138_v45 = vpop.f32.mrb[76].mxu0  ;;  %v8911_v16 = vpop.f32.mrb[148].mxu1  ;;  %6386 = vpow2.f32 %v5113_v60  ;;  %v8942_v52 = vadd.f32 %v9927_v33, %v7811_v34  ;;  %v9936_v33 = vld [vmem:[#allocation19_spill] sm:$0xff] }
 0x460   : > { %v6371_v18 = vpop.eup %6370  ;;  %v5656_v2 = vadd.f32 %v3138_v45, %v7811_v34  ;;  %v3140_v3 = vpop.f32.mrb[77].mxu0  ;;  %6388 = vrcp.f32 %v3350_v36 }
 0x461   : > { %v8918_v30 = vpop.f32.mrb[149].mxu1  ;;  %v3351_v27 = vadd.f32 1.0, %v6371_v18  ;;  %v5657_v42 = vadd.f32 %v3140_v3, %v7814_v56  ;;  %v3142_v58 = vpop.f32.mrb[78].mxu0  ;;  %6390 = vrcp.f32 %v3460_v44  ;;  %v9928_v44 = vld [vmem:[#allocation86_spill] sm:$0xff]  ;;  %v9929_v18 = vld [vmem:[#allocation25_spill] sm:$0xff]  ;;  %v9931_v3 = vld [vmem:[#allocation27_spill] sm:$0xff] }
 0x462   : > { %v8925_v12 = vpop.f32.mrb[150].mxu1  ;;  %v5098_v28 = vmul.f32 -1.442695, %v5656_v2  ;;  %v5658_v35 = vadd.f32 %v3142_v58, %v7811_v34  ;;  %v3144_v55 = vpop.f32.mrb[79].mxu0  ;;  %v1453_v26 = vadd.f32 %v9928_v44, %v9873_v37  ;;  %v8948_v46 = vadd.f32 %v9929_v18, %v7814_v56  ;;  %v9938_v18 = vld [vmem:[#allocation85_spill] sm:$0xff] }
 0x463   : > { %v8929_v57 = vpop.f32.mrb[151].mxu1  ;;  %v6373_v17 = vpop.eup %6372  ;;  %6392 = vrcp.f32 %v3351_v27  ;;  %v5114_v32 = vmul.f32 -1.442695, %v5657_v42  ;;  %v5659_v50 = vadd.f32 %v3144_v55, %v7814_v56  ;;  %v8956_v62 = vadd.f32 %v9931_v3, %v7814_v56  ;;  %v9939_v3 = vld [vmem:[#allocation87_spill] sm:$0xff] }
 0x464   : > { %v6375_v10 = vpop.eup %6374  ;;  %6394 = vrcp.f32 %v3461_v15  ;;  %v3524_v51 = vmul.f32 %v6373_v17, %v3508_v54  ;;  %v5099_v41 = vmul.f32 -1.442695, %v5658_v35  ;;  %v9930_v15 = vld [vmem:[#allocation26_spill] sm:$0xff]  ;;  %v9932_v35 = vld [vmem:[#allocation28_spill] sm:$0xff]  ;;  %v9933_v17 = vld [vmem:[#allocation29_spill] sm:$0xff]  ;;  %v8978_v44 = vadd.f32 %v9936_v33, %v7811_v34 }
 0x465   : > { %v6377_v11 = vpop.eup %6376  ;;  %6396 = vpow2.f32 %v5098_v28  ;;  %v5115_v60 = vmul.f32 -1.442695, %v5659_v50  ;;  %v8952_v2 = vadd.f32 %v9930_v15, %v7811_v34  ;;  %v3462_v42 = vadd.f32 1.0, %v6375_v10 }
 0x466   : > { %v6379_v14 = vpop.eup %6378  ;;  %v3540_v36 = vadd.f32 %v3524_v51, %v1450_v23  ;;  %v3525_v45 = vmul.f32 %v6377_v11, %v3509_v21  ;;  %6398 = vpow2.f32 %v5114_v32  ;;  %v8960_v55 = vadd.f32 %v9932_v35, %v7811_v34  ;;  %v9934_v23 = vld [vmem:[#allocation30_spill] sm:$0xff]  ;;  %v9935_v11 = vld [vmem:[#allocation31_spill] sm:$0xff] }
 0x467   : > { %v6381_v39 = vpop.eup %6380  ;;  %6400 = vpow2.f32 %v5099_v41  ;;  %v8964_v61 = vadd.f32 %v9933_v17, %v7814_v56  ;;  %v8968_v32 = vadd.f32 %v9934_v23, %v7811_v34  ;;  %v3510_v10 = vadd.f32 %v8599_v48, %v8893_v25 }
 0x468   : > { %v6383_v27 = vpop.eup %6382  ;;  %6402 = vtanh.f32 %v3540_v36  ;;  %v3541_v58 = vadd.f32 %v3525_v45, %v1453_v26  ;;  %v3352_v54 = vadd.f32 1.0, %v6381_v39  ;;  %v3463_v51 = vadd.f32 1.0, %v6379_v14 }
 0x469   : > { %v6385_v28 = vpop.eup %6384  ;;  %6404 = vpow2.f32 %v5115_v60  ;;  %v8974_v1 = vadd.f32 %v9935_v11, %v7814_v56  ;;  %v3464_v26 = vadd.f32 1.0, %v6383_v27  ;;  %v9937_v60 = vld [vmem:[#allocation83_spill] sm:$0xff]  ;;  %v3511_v25 = vadd.f32 %v8599_v48, %v8896_v59  ;;  %v9941_v48 = vld [vmem:[#allocation90_spill] sm:$0xff] }
 0x46a   : > { %v6387_v50 = vpop.eup %6386  ;;  %6406 = vtanh.f32 %v3541_v58  ;;  %v3353_v21 = vadd.f32 1.0, %v6385_v28  ;;  %v1458_v45 = vadd.f32 %v9937_v60, %v9873_v37  ;;  %v1461_v15 = vadd.f32 %v9938_v18, %v9873_v37  ;;  %v9940_v28 = vld [vmem:[#allocation88_spill] sm:$0xff] }
 0x46b   : > { %v6389_v41 = vpop.eup %6388  ;;  %6408 = vrcp.f32 %v3352_v54  ;;  %v8988_v58 = vadd.f32 %v9939_v3, %v9873_v37  ;;  %v3465_v54 = vadd.f32 1.0, %v6387_v50  ;;  %v1466_v35 = vadd.f32 %v9940_v28, %v9873_v37 }
 0x46c   : > { %v6391_v36 = vpop.eup %6390  ;;  %v3526_v39 = vmul.f32 %v6389_v41, %v3510_v10  ;;  %6410 = vrcp.f32 %v3462_v42  ;;  %v8994_v59 = vadd.f32 %v9941_v48, %v9873_v37  ;;  %v8999_v41 = vld [vmem:[%s9624_s6] ss:$0 sm:$0xff] }
 0x46d   : > { %v6393_v14 = vpop.eup %6392  ;;  %6412 = vrcp.f32 %v3353_v21  ;;  %v3572_v10 = vsub.f32 1.0, %v6391_v36  ;;  %v3512_v50 = vadd.f32 %v8999_v41, %v8918_v30  ;;  %v9008_v30 = vpop.permute.xlu1 %3672  ;;  %v3514_v49 = vadd.f32 %v8999_v41, %v8911_v16 }
 0x46e   : > { %v6395_v27 = vpop.eup %6394  ;;  %v3542_v17 = vadd.f32 %v3526_v39, %v1458_v45  ;;  %v3527_v23 = vmul.f32 %v6393_v14, %v3511_v25  ;;  %6414 = vrcp.f32 %v3463_v51  ;;  %v9004_v25 = vpop.permute.xlu0 %3669  ;;  %vm3717_vm6 = vcmp.eq.s32.totalorder %v9008_v30, 1  ;;  %v9942_v30 = vld [vmem:[#allocation32_spill] sm:$0xff] }
 0x46f   : > { %v6397_v42 = vpop.eup %6396  ;;  %6416 = vrcp.f32 %v3464_v26  ;;  %v3148_v21 = vpop.f32.mrb[80].mxu0  ;;  %v3604_v26 = vmul.f32 %v6391_v36, %v8620_v6  ;;  %v3573_v48 = vsub.f32 1.0, %v6395_v27  ;;  %vm3716_vm5 = vcmp.eq.s32.totalorder %v9004_v25, 1 }
 0x470   : > { %v6399_v11 = vpop.eup %6398  ;;  %6418 = vtanh.f32 %v3542_v17  ;;  %v3543_v33 = vadd.f32 %v3527_v23, %v1461_v15  ;;  %v3354_v51 = vadd.f32 1.0, %v6397_v42  ;;  %v3292_v60 = vadd.f32 %v3148_v21, %v8909_v19  ;;  %v3150_v45 = vpop.f32.mrb[81].mxu0 }
 0x471   : > { %v6401_v39 = vpop.eup %6400  ;;  %6420 = vrcp.f32 %v3465_v54  ;;  %v3466_v14 = vadd.f32 1.0, %v6399_v11  ;;  %v3404_v18 = vadd.f32 %v3150_v45, %v8915_v5  ;;  %v3152_v3 = vpop.f32.mrb[82].mxu0  ;;  %v3605_v21 = vmul.f32 %v6395_v27, %v8633_v20 }
 0x472   : > { %v6403_v28 = vpop.eup %6402  ;;  %6422 = vtanh.f32 %v3543_v33  ;;  %v3355_v15 = vadd.f32 1.0, %v6401_v39  ;;  %v3293_v17 = vadd.f32 %v3152_v3, %v8922_v24  ;;  %v3154_v19 = vpop.f32.mrb[83].mxu0  ;;  %v5100_v54 = vmul.f32 -1.442695, %v3292_v60 }
 0x473   : > { %v6405_v23 = vpop.eup %6404  ;;  %v3588_v36 = vmul.f32 %v6403_v28, %v3572_v10  ;;  %6424 = vrcp.f32 %v3354_v51  ;;  %v3405_v5 = vadd.f32 %v3154_v19, %v8938_v47  ;;  %v5116_v33 = vmul.f32 -1.442695, %v3404_v18 }
 0x474   : > { %v6407_v42 = vpop.eup %6406  ;;  %6426 = vrcp.f32 %v3466_v14  ;;  %v3467_v11 = vadd.f32 1.0, %v6405_v23  ;;  %v5101_v3 = vmul.f32 -1.442695, %v3293_v17  ;;  %v3513_v47 = vadd.f32 %v8999_v41, %v8929_v57 }
 0x475   : > { %v6409_v45 = vpop.eup %6408  ;;  %v3620_v39 = vadd.f32 %v3604_v26, %v3588_v36  ;;  %v3589_v24 = vmul.f32 %v6407_v42, %v3573_v48  ;;  %6428 = vrcp.f32 %v3355_v15  ;;  %v3515_v27 = vadd.f32 %v8999_v41, %v8925_v12 }
 0x476   : > { %v6411_v29 = vpop.eup %6410  ;;  %v3528_v10 = vmul.f32 %v6409_v45, %v3512_v50  ;;  %6430 = vrcp.f32 %v3467_v11  ;;  %v5117_v14 = vmul.f32 -1.442695, %v3405_v5 }
 0x477   : > { %v6413_v51 = vpop.eup %6412  ;;  %v3621_v60 = vadd.f32 %v3605_v21, %v3589_v24  ;;  %6432 = vpow2.f32 %v5100_v54  ;;  %v3158_v26 = vpop.f32.mrb[84].mxu0  ;;  %v3574_v36 = vsub.f32 1.0, %v6411_v29  ;;  %v3606_v54 = vmul.f32 %v6411_v29, %v8669_v4 }
 0x478   : > { %v9021_v18 = vpop.f32.mrb[152].mxu1  ;;  %v6415_v28 = vpop.eup %6414  ;;  %v3544_v48 = vadd.f32 %v3528_v10, %v1466_v35  ;;  %v3529_v15 = vmul.f32 %v6413_v51, %v3513_v47  ;;  %6434 = vpow2.f32 %v5116_v33  ;;  %v3294_v16 = vadd.f32 %v3158_v26, %v8942_v52 }
 0x479   : > { %v3160_v50 = vpop.f32.mrb[85].mxu0  ;;  %v9024_v17 = vpop.f32.mrb[153].mxu1  ;;  %6436 = vpow2.f32 %v5101_v3  ;;  %v3575_v24 = vsub.f32 1.0, %v6415_v28 }
 0x47a   : > { %v9026_v57 = vpop.eup %6416  ;;  %v3406_v19 = vadd.f32 %v3160_v50, %v8948_v46  ;;  %v3162_v12 = vpop.f32.mrb[86].mxu0  ;;  %6438 = vtanh.f32 %v3544_v48  ;;  %v3545_v35 = vadd.f32 %v3529_v15, %v8994_v59  ;;  %v5102_v42 = vmul.f32 -1.442695, %v3294_v16 }
 0x47b   : > { %v9029_v23 = vpop.f32.mrb[154].mxu1  ;;  %v6419_v5 = vpop.eup %6418  ;;  %v3295_v52 = vadd.f32 %v3162_v12, %v8952_v2  ;;  %6440 = vpow2.f32 %v5117_v14  ;;  %v9042_v59 = vsel %vm3716_vm5, %v3620_v39, %v8620_v6  ;;  %v9047_v2 = vsel %vm3717_vm6, %v3621_v60, %v8633_v20  ;;  %v9943_v60 = vld [vmem:[#allocation33_spill] sm:$0xff] }
 0x47c   : > { %v3164_v21 = vpop.f32.mrb[87].mxu0  ;;  %v9034_v11 = vpop.f32.mrb[155].mxu1  ;;  %v5118_v46 = vmul.f32 -1.442695, %v3406_v19  ;;  %6442 = vtanh.f32 %v3545_v35  ;;  %v3590_v26 = vmul.f32 %v6419_v5, %v3574_v36  ;;  %v3607_v6 = vmul.f32 %v6415_v28, %v8674_v13 }
 0x47d   : > { %v9036_v33 = vpop.eup %6420  ;;  %v3407_v45 = vadd.f32 %v3164_v21, %v8956_v62  ;;  %v3676_v10 = vpop.permute.xlu0 %3675  ;;  %v5103_v29 = vmul.f32 -1.442695, %v3295_v52  ;;  %6444 = vpow2.f32 %v5102_v42  ;;  %v3748_v62 = vpack.c.bf16 %v9047_v2, %v9042_v59  ;;  %v9945_v42 = vld [vmem:[#allocation34_spill] sm:$0xff] }
 0x47e   : > { %v6423_v3 = vpop.eup %6422  ;;  %v3679_v51 = vpop.permute.xlu1 %3678  ;;  %6446 = vpow2.f32 %v5118_v46  ;;  %v9056_v20 = vadd.f32 %v9942_v30, %v7814_v56  ;;  %v9060_v16 = vadd.f32 %v9943_v60, %v7811_v34  ;;  %v3622_v50 = vadd.f32 %v3606_v54, %v3590_v26 }
 0x47f   : > { %v6425_v47 = vpop.eup %6424  ;;  %v5119_v14 = vmul.f32 -1.442695, %v3407_v45  ;;  %v3591_v25 = vmul.f32 %v6423_v3, %v3575_v24  ;;  %6448 = vpow2.f32 %v5103_v29  ;;  %3789 = vmatmul.mubr.bf16.vlgmr.msra.gmra.mrb[96].mxu0 %v3748_v62  ;;  %5548 = vmatprep.mubr.bf16.mxu1 %v3748_v62  ;;  %v9070_v52 = vadd.f32 %v9945_v42, %v7814_v56 }
 0x480   : > { %v9051_v48 = vpop.eup %6426  ;;  %v3530_v15 = vmul.f32 %v6425_v47, %v3514_v49  ;;  %v9944_v49 = vld [vmem:[#allocation89_spill] sm:$0xff]  ;;  %3798 = vmatprep.mubr.bf16.mxu0 %v9809_v38  ;;  %vm3718_vm7 = vcmp.eq.s32.totalorder %v3676_v10, 1  ;;  %vm3719_vm11 = vcmp.eq.s32.totalorder %v3679_v51, 1  ;;  %v3576_v51 = vsub.f32 1.0, %v9026_v57 }
 0x481   : > { %v6429_v39 = vpop.eup %6428  ;;  %v1477_v12 = vadd.f32 %v9944_v49, %v9873_v37  ;;  %v3623_v5 = vadd.f32 %v3607_v6, %v3591_v25  ;;  %6450 = vpow2.f32 %v5119_v14  ;;  %v3168_v54 = vpop.f32.mrb[88].mxu0  ;;  %v3577_v14 = vsub.f32 1.0, %v9036_v33 }
 0x482   : > { %v9062_v19 = vpop.eup %6430  ;;  %v3546_v28 = vadd.f32 %v3530_v15, %v8988_v58  ;;  %v3531_v36 = vmul.f32 %v6429_v39, %v3515_v27  ;;  %v9072_v46 = vpop.permute.xlu0 %3681  ;;  %v3296_v58 = vadd.f32 %v3168_v54, %v8960_v55  ;;  %v9086_v39 = vsel %vm3718_vm7, %v3622_v50, %v8669_v4 }
 0x483   : > { %v6433_v35 = vpop.eup %6432  ;;  %v3170_v27 = vpop.f32.mrb[89].mxu0  ;;  %v9079_v26 = vsel %vm3719_vm11, %v3623_v5, %v8674_v13  ;;  %vm3720_vm14 = vcmp.eq.s32.totalorder %v9072_v46, 1  ;;  %v3608_v10 = vmul.f32 %v9026_v57, %v8711_v63 }
 0x484   : > { %v6435_v21 = vpop.eup %6434  ;;  %6452 = vtanh.f32 %v3546_v28  ;;  %v3547_v45 = vadd.f32 %v3531_v36, %v1477_v12  ;;  %v3356_v24 = vadd.f32 1.0, %v6433_v35  ;;  %v9075_v29 = vpop.permute.xlu1 %3684  ;;  %v3408_v47 = vadd.f32 %v3170_v27, %v8964_v61  ;;  %v9946_v12 = vld [vmem:[#allocation91_spill] sm:$0xff]  ;;  %v9947_v35 = vld [vmem:[#allocation92_spill] sm:$0xff] }
 0x485   : > { %v6437_v3 = vpop.eup %6436  ;;  %v3172_v62 = vpop.f32.mrb[90].mxu0  ;;  %v5104_v13 = vmul.f32 -1.442695, %v3296_v58  ;;  %v3749_v60 = vpack.c.bf16 %v9079_v26, %v9086_v39  ;;  %vm3721_vm15 = vcmp.eq.s32.totalorder %v9075_v29, 1  ;;  %v3468_v28 = vadd.f32 1.0, %v6435_v21 }
 0x486   : > { %v6439_v15 = vpop.eup %6438  ;;  %6454 = vtanh.f32 %v3547_v45  ;;  %v3357_v25 = vadd.f32 1.0, %v6437_v3  ;;  %v3297_v6 = vadd.f32 %v3172_v62, %v8968_v32  ;;  %v3174_v55 = vpop.f32.mrb[91].mxu0  ;;  %v9096_v32 = vadd.f32 %v9946_v12, %v9873_v37 }
 0x487   : > { %v6441_v30 = vpop.eup %6440  ;;  %6456 = vrcp.f32 %v3356_v24  ;;  %v9090_v61 = vadd.f32 %v3174_v55, %v8974_v1  ;;  %v3592_v4 = vmul.f32 %v6439_v15, %v3576_v51  ;;  %3799 = vmatmul.mubr.bf16.gmra.mrb[100].mxu0 %v3749_v60  ;;  %5549 = vmatmul.mubr.bf16.vlgmr.msra.gmra.mrb[160].mxu1 %v3749_v60  ;;  %v3609_v36 = vmul.f32 %v9036_v33, %v8724_v31  ;;  %v9108_v21 = vpop.permute.xlu0 %3687 }
 0x488   : > { %v6443_v49 = vpop.eup %6442  ;;  %6458 = vrcp.f32 %v3357_v25  ;;  %v1482_v42 = vadd.f32 %v9947_v35, %v9873_v37  ;;  %v3516_v45 = vadd.f32 %v8999_v41, %v9024_v17  ;;  %3808 = vmatprep.mubr.bf16.mxu0 %v9809_v38  ;;  %v9110_v58 = vpop.permute.xlu1 %3690  ;;  %v3469_v27 = vadd.f32 1.0, %v6441_v30 }
 0x489   : > { %v6445_v50 = vpop.eup %6444  ;;  %v3593_v1 = vmul.f32 %v6443_v49, %v3577_v14  ;;  %v3624_v57 = vadd.f32 %v3608_v10, %v3592_v4  ;;  %v3517_v33 = vadd.f32 %v8999_v41, %v9034_v11  ;;  %6460 = vpow2.f32 %v5104_v13 }
 0x48a   : > { %v6447_v5 = vpop.eup %6446  ;;  %v3358_v54 = vadd.f32 1.0, %v6445_v50  ;;  %vm3722_vm9 = vcmp.eq.s32.totalorder %v9108_v21, 1  ;;  %v3178_v17 = vpop.f32.mrb[92].mxu0  ;;  %v3578_v15 = vsub.f32 1.0, %v9051_v48  ;;  %vm3723_vm10 = vcmp.eq.s32.totalorder %v9110_v58, 1 }
 0x48b   : > { %v6449_v24 = vpop.eup %6448  ;;  %v3625_v3 = vadd.f32 %v3609_v36, %v3593_v1  ;;  %v3470_v62 = vadd.f32 1.0, %v6447_v5  ;;  %v9115_v14 = vpop.f32.mrb[156].mxu1  ;;  %v5105_v55 = vmul.f32 -1.442695, %v3297_v6  ;;  %v3298_v30 = vadd.f32 %v3178_v17, %v8978_v44 }
 0x48c   : > { %6462 = vrcp.f32 %v3358_v54  ;;  %v3359_v51 = vadd.f32 1.0, %v6449_v24  ;;  %v6451_v25 = vpop.eup %6450  ;;  %v3180_v11 = vpop.f32.mrb[93].mxu0  ;;  %v3579_v60 = vsub.f32 1.0, %v9062_v19  ;;  %v5120_v12 = vmul.f32 -1.442695, %v3408_v47 }
 0x48d   : > { %6464 = vrcp.f32 %v3468_v28  ;;  %v9120_v13 = vpop.f32.mrb[157].mxu1  ;;  %v3410_v4 = vadd.f32 %v3180_v11, %v9056_v20  ;;  %v3182_v10 = vpop.f32.mrb[94].mxu0  ;;  %v9129_v28 = vsel %vm3721_vm15, %v3625_v3, %v8724_v31  ;;  %v5106_v44 = vmul.f32 -1.442695, %v3298_v30 }
 0x48e   : > { %v6453_v49 = vpop.eup %6452  ;;  %6466 = vrcp.f32 %v3359_v51  ;;  %v9124_v50 = vpop.f32.mrb[158].mxu1  ;;  %v3299_v6 = vadd.f32 %v3182_v10, %v9060_v16  ;;  %v3610_v47 = vmul.f32 %v9051_v48, %v8754_v53  ;;  %v3471_v20 = vadd.f32 1.0, %v6451_v25 }
 0x48f   : > { %6468 = vrcp.f32 %v3469_v27  ;;  %v3184_v1 = vpop.f32.mrb[95].mxu0  ;;  %v9132_v36 = vpop.f32.mrb[159].mxu1  ;;  %v9140_v31 = vsel %vm3720_vm14, %v3624_v57, %v8711_v63  ;;  %v3594_v24 = vmul.f32 %v6453_v49, %v3578_v15  ;;  %v3611_v3 = vmul.f32 %v9062_v19, %v8771_v7 }
 0x490   : > { %v6455_v5 = vpop.eup %6454  ;;  %6470 = vrcp.f32 %v3470_v62  ;;  %v3411_v35 = vadd.f32 %v3184_v1, %v9070_v52  ;;  %v5107_v54 = vmul.f32 -1.442695, %v3299_v6  ;;  %v3750_v16 = vpack.c.bf16 %v9129_v28, %v9140_v31  ;;  %v9948_v52 = vld [vmem:[#allocation94_spill] sm:$0xff] }
 0x491   : > { %v6457_v29 = vpop.eup %6456  ;;  %6472 = vpow2.f32 %v5105_v55  ;;  %v3595_v48 = vmul.f32 %v6455_v5, %v3579_v60  ;;  %v1485_v51 = vadd.f32 %v9948_v52, %v9873_v37  ;;  %v5121_v63 = vmul.f32 -1.442695, %v9090_v61 }
 0x492   : > { %v3532_v27 = vmul.f32 %v6457_v29, %v3516_v45  ;;  %6474 = vpow2.f32 %v5120_v12  ;;  %v6459_v62 = vpop.eup %6458  ;;  %3809 = vmatmul.mubr.bf16.gmra.mrb[104].mxu0 %v3750_v16  ;;  %5552 = vmatprep.mubr.bf16.mxu1 %v3750_v16  ;;  %v3626_v46 = vadd.f32 %v3610_v47, %v3594_v24  ;;  %v3518_v19 = vadd.f32 %v8999_v41, %v9021_v18 }
 0x493   : > { %6476 = vpow2.f32 %v5106_v44  ;;  %v3533_v17 = vmul.f32 %v6459_v62, %v3517_v33  ;;  %3818 = vmatprep.mubr.bf16.mxu0 %v9809_v38  ;;  %v3627_v45 = vadd.f32 %v3611_v3, %v3595_v48  ;;  %v6461_v15 = vpop.eup %6460  ;;  %v5122_v25 = vmul.f32 -1.442695, %v3410_v4  ;;  %v9949_v4 = vld [vmem:[#allocation93_spill] sm:$0xff]  ;;  %v3694_v48 = vpop.permute.xlu0 %3693 }
 0x494   : > { %v3548_v57 = vadd.f32 %v3532_v27, %v1482_v42  ;;  %6478 = vrcp.f32 %v3471_v20  ;;  %v9155_v61 = vsel %vm3722_vm9, %v3626_v46, %v8754_v53  ;;  %v3360_v42 = vadd.f32 1.0, %v6461_v15 }
 0x495   : > { %6480 = vpow2.f32 %v5107_v54  ;;  %v3549_v30 = vadd.f32 %v3533_v17, %v1485_v51  ;;  %v9160_v33 = vsel %vm3723_vm10, %v3627_v45, %v8771_v7  ;;  %v3519_v18 = vadd.f32 %v8999_v41, %v9029_v23 }
 0x496   : > { %v6463_v55 = vpop.eup %6462  ;;  %6482 = vtanh.f32 %v3548_v57  ;;  %v3751_v21 = vpack.c.bf16 %v9160_v33, %v9155_v61  ;;  %v5123_v49 = vmul.f32 -1.442695, %v3411_v35  ;;  %v1493_v10 = vadd.f32 %v9949_v4, %v9873_v37 }
 0x497   : > { %v6465_v11 = vpop.eup %6464  ;;  %v3534_v60 = vmul.f32 %v6463_v55, %v3518_v19  ;;  %6484 = vpow2.f32 %v5121_v63  ;;  %vm3724_vm8 = vcmp.eq.s32.totalorder %v3694_v48, 1  ;;  %v3520_v63 = vadd.f32 %v8999_v41, %v9120_v13  ;;  %v9950_v19 = vld [vmem:[#allocation96_spill] sm:$0xff]  ;;  %v3697_v55 = vpop.permute.xlu1 %3696 }
 0x498   : > { %v6467_v53 = vpop.eup %6466  ;;  %6486 = vtanh.f32 %v3549_v30  ;;  %5553 = vmatmul.mubr.bf16.gmra.mrb[164].mxu1 %v3751_v21  ;;  %v3612_v52 = vmul.f32 %v6465_v11, %v8818_v22  ;;  %vm3725_vm0 = vcmp.eq.s32.totalorder %v3697_v55, 1  ;;  %v3523_v48 = vadd.f32 %v8999_v41, %v9124_v50 }
 0x499   : > { %v6469_v12 = vpop.eup %6468  ;;  %v3550_v58 = vadd.f32 %v3534_v60, %v9096_v32  ;;  %v3535_v7 = vmul.f32 %v6467_v53, %v3519_v18  ;;  %6488 = vrcp.f32 %v3360_v42  ;;  %v3580_v32 = vsub.f32 1.0, %v6465_v11 }
 0x49a   : > { %v6471_v44 = vpop.eup %6470  ;;  %6490 = vpow2.f32 %v5122_v25  ;;  %3819 = vmatmul.mubr.bf16.gmra.mrb[108].mxu0 %v3751_v21  ;;  %v3581_v3 = vsub.f32 1.0, %v6469_v12  ;;  %v3613_v17 = vmul.f32 %v6469_v12, %v8842_v0  ;;  %v1498_v25 = vadd.f32 %v9950_v19, %v9873_v37 }
 0x49b   : > { %v6473_v6 = vpop.eup %6472  ;;  %6492 = vtanh.f32 %v3550_v58  ;;  %v3551_v23 = vadd.f32 %v3535_v7, %v1493_v10  ;;  %3828 = vmatprep.mubr.bf16.mxu0 %v9809_v38  ;;  %v3582_v42 = vsub.f32 1.0, %v6471_v44  ;;  %v3521_v60 = vadd.f32 %v8999_v41, %v9132_v36  ;;  %v3700_v36 = vpop.permute.xlu0 %3699 }
 0x49c   : > { %v6475_v1 = vpop.eup %6474  ;;  %v3361_v47 = vadd.f32 1.0, %v6473_v6  ;;  %6494 = vpow2.f32 %v5123_v49  ;;  %v3614_v18 = vmul.f32 %v6471_v44, %v8852_v43  ;;  %vm3726_vm1 = vcmp.eq.s32.totalorder %v3700_v36, 1  ;;  %v9954_v36 = vld [vmem:[#allocation72_spill] sm:$0xff] }
 0x49d   : > { %v6477_v5 = vpop.eup %6476  ;;  %6496 = vtanh.f32 %v3551_v23  ;;  %v3472_v16 = vadd.f32 1.0, %v6475_v1 }
 0x49e   : > { %v6479_v20 = vpop.eup %6478  ;;  %v3362_v35 = vadd.f32 1.0, %v6477_v5  ;;  %6498 = vrcp.f32 %v3361_v47 }
 0x49f   : > { %v6481_v29 = vpop.eup %6480  ;;  %v3583_v12 = vsub.f32 1.0, %v6479_v20  ;;  %v3615_v23 = vmul.f32 %v6479_v20, %v8865_v40 }
 0x4a0   : > { %v6483_v54 = vpop.eup %6482  ;;  %v3363_v24 = vadd.f32 1.0, %v6481_v29  ;;  %6500 = vrcp.f32 %v3362_v35  ;;  %v9951_v35 = vld [vmem:[#allocation98_spill] sm:$0xff] }
 0x4a1   : > { %v6485_v27 = vpop.eup %6484  ;;  %v3596_v62 = vmul.f32 %v6483_v54, %v3580_v32  ;;  %v1501_v29 = vadd.f32 %v9951_v35, %v9873_v37 }
 0x4a2   : > { %v6487_v51 = vpop.eup %6486  ;;  %6502 = vrcp.f32 %v3363_v24  ;;  %v3473_v53 = vadd.f32 1.0, %v6485_v27  ;;  %v9952_v24 = vld [vmem:[#allocation95_spill] sm:$0xff] }
 0x4a3   : > { %v6489_v46 = vpop.eup %6488  ;;  %v3597_v57 = vmul.f32 %v6487_v51, %v3581_v3  ;;  %v3628_v45 = vadd.f32 %v3612_v52, %v3596_v62  ;;  %6504 = vrcp.f32 %v3472_v16  ;;  %v1506_v27 = vadd.f32 %v9952_v24, %v9873_v37 }
 0x4a4   : > { %v6491_v15 = vpop.eup %6490  ;;  %v3536_v30 = vmul.f32 %v6489_v46, %v3520_v63 }
 0x4a5   : > { %v6493_v11 = vpop.eup %6492  ;;  %v3629_v13 = vadd.f32 %v3613_v17, %v3597_v57  ;;  %v3474_v58 = vadd.f32 1.0, %v6491_v15  ;;  %v9181_v7 = vsel %vm3724_vm8, %v3628_v45, %v8818_v22  ;;  %v3703_v22 = vpop.permute.xlu1 %3702  ;;  %v9953_v57 = vld [vmem:[#allocation97_spill] sm:$0xff] }
 0x4a6   : > { %v6495_v21 = vpop.eup %6494  ;;  %v3552_v49 = vadd.f32 %v3536_v30, %v1498_v25  ;;  %v3598_v4 = vmul.f32 %v6493_v11, %v3582_v42  ;;  %vm3727_vm2 = vcmp.eq.s32.totalorder %v3703_v22, 1  ;;  %v1509_v50 = vadd.f32 %v9953_v57, %v9873_v37  ;;  %v6024_v57 = vld [vmem:[#allocation7 + $0x60] sm:$0xff]  }
 0x4a7   : > { %v6497_v10 = vpop.eup %6496  ;;  %v9184_v6 = vsel %vm3725_vm0, %v3629_v13, %v8842_v0  ;;  %v3475_v32 = vadd.f32 1.0, %v6495_v21  ;;  %v3522_v0 = vadd.f32 %v8999_v41, %v9115_v14 }
 0x4a8   : > { %6506 = vtanh.f32 %v3552_v49  ;;  %v3752_v44 = vpack.c.bf16 %v9184_v6, %v9181_v7  ;;  %v3599_v1 = vmul.f32 %v6497_v10, %v3583_v12  ;;  %v3630_v47 = vadd.f32 %v3614_v18, %v3598_v4  ;;  %v6499_v5 = vpop.eup %6498  ;;  %v3706_v18 = vpop.permute.xlu0 %3705 }
 0x4a9   : > { %6508 = vrcp.f32 %v3473_v53  ;;  %v3537_v54 = vmul.f32 %v6499_v5, %v3521_v60  ;;  %v3709_v21 = vpop.permute.xlu1 %3708  ;;  %vm3728_vm3 = vcmp.eq.s32.totalorder %v3706_v18, 1 }
 0x4aa   : > { %3829 = vmatmul.mubr.bf16.gmra.mrb[112].mxu0 %v3752_v44  ;;  %5556 = vmatprep.mubr.bf16.mxu1 %v3752_v44  ;;  %v3631_v20 = vadd.f32 %v3615_v23, %v3599_v1  ;;  %v6501_v16 = vpop.eup %6500  ;;  %6510 = vrcp.f32 %v3474_v58  ;;  %v9200_v14 = vsel %vm3726_vm1, %v3630_v47, %v8852_v43  ;;  %vm3729_vm12 = vcmp.eq.s32.totalorder %v3709_v21, 1  ;;  %v9955_v47 = vld [vmem:[#allocation73_spill] sm:$0xff] }
 0x4ab   : > { %3838 = vmatprep.mubr.bf16.mxu0 %v9809_v38  ;;  %v3538_v3 = vmul.f32 %v6501_v16, %v3522_v0  ;;  %v3553_v62 = vadd.f32 %v3537_v54, %v1501_v29  ;;  %6512 = vrcp.f32 %v3475_v32 }
 0x4ac   : > { %v9203_v52 = vsel %vm3727_vm2, %v3631_v20, %v8865_v40  ;;  %v6503_v51 = vpop.eup %6502  ;;  %v3712_v54 = vpop.permute.xlu0 %3711 }
 0x4ad   : > { %v3753_v63 = vpack.c.bf16 %v9203_v52, %v9200_v14  ;;  %v6505_v46 = vpop.eup %6504  ;;  %v3554_v17 = vadd.f32 %v3538_v3, %v1506_v27  ;;  %v3539_v45 = vmul.f32 %v6503_v51, %v3523_v48  ;;  %6514 = vtanh.f32 %v3553_v62  ;;  %v3715_v20 = vpop.permute.xlu1 %3714  ;;  %v6016_v27 = vld [vmem:[#allocation7 + $0x40] sm:$0xff]   ;;  %v6018_v3 = vld [vmem:[#allocation7 + $0x48] sm:$0xff]   ;;  %v6021_v51 = vld [vmem:[#allocation7 + $0x10] sm:$0xff]  }
 0x4ae   : > { %v3584_v43 = vsub.f32 1.0, %v6505_v46  ;;  %v3616_v25 = vmul.f32 %v6505_v46, %v8874_v8  ;;  %vm3730_vm13 = vcmp.eq.s32.totalorder %v3712_v54, 1  ;;  %vm3731_vm4 = vcmp.eq.s32.totalorder %v3715_v20, 1  ;;  %v6017_v48 = vld [vmem:[#allocation7] sm:$0xff]   ;;  %5292 = vmatprep.subr.bf16.mxu1 %v6016_v27  ;;  %v6019_v62 = vld [vmem:[#allocation7 + $0x8] sm:$0xff]   ;;  %v6023_v46 = vld [vmem:[#allocation7 + $0x18] sm:$0xff]  }
 0x4af   : > { %5557 = vmatmul.mubr.bf16.gmra.mrb[168].mxu1 %v3753_v63  ;;  %6516 = vtanh.f32 %v3554_v17  ;;  %v3555_v15 = vadd.f32 %v3539_v45, %v1509_v50  ;;  %v6025_v50 = vld [vmem:[#allocation7 + $0x20] sm:$0xff]   ;;  %v6026_v17 = vld [vmem:[#allocation7 + $0x68] sm:$0xff]  }
 0x4b0   : > { %5293 = vmatpush3.bf16.msra.mxu1 %v6017_v48  ;;  %v6027_v45 = vld [vmem:[#allocation7 + $0x28] sm:$0xff]  }
 0x4b1   : > { %6518 = vtanh.f32 %v3555_v15  ;;  %5294 = vmatprep.subr.bf16.mxu1 %v6018_v3  ;;  %v6028_v15 = vld [vmem:[#allocation7 + $0x70] sm:$0xff]  }
 0x4b2   : > { %v6507_v19 = vpop.eup %6506  ;;  %3839 = vmatmul.mubr.bf16.gmra.mrb[116].mxu0 %v3753_v63  ;;  %v6022_v63 = vld [vmem:[#allocation7 + $0x58] sm:$0xff]  }
 0x4b3   : > { %3848 = vmatprep.mubr.bf16.mxu0 %v9809_v38  ;;  %v3600_v40 = vmul.f32 %v6507_v19, %v3584_v43  ;;  %v6509_v55 = vpop.eup %6508  ;;  %v6029_v43 = vld [vmem:[#allocation7 + $0x30] sm:$0xff]   ;;  %v6030_v19 = vld [vmem:[#allocation7 + $0x78] sm:$0xff]  }
 0x4b4   : > { %v6511_v30 = vpop.eup %6510  ;;  %v3585_v60 = vsub.f32 1.0, %v6509_v55  ;;  %v3617_v49 = vmul.f32 %v6509_v55, %v8877_v9  ;;  %5295 = vmatpush3.bf16.msra.mxu1 %v6019_v62  ;;  %v9963_v62 = vld [vmem:[#allocation42_spill] sm:$0xff] }
 0x4b5   : > { %v3632_v42 = vadd.f32 %v3616_v25, %v3600_v40  ;;  %v6513_v11 = vpop.eup %6512  ;;  %v3586_v12 = vsub.f32 1.0, %v6511_v30  ;;  %v3618_v44 = vmul.f32 %v6511_v30, %v9954_v36  ;;  %v6031_v40 = vld [vmem:[#allocation7 + $0x38] sm:$0xff]   ;;  %v9956_v25 = vld [vmem:[#allocation35_spill] sm:$0xff]  ;;  %v9957_v30 = vld [vmem:[#allocation36_spill] sm:$0xff] }
 0x4b6   : > { %v3587_v58 = vsub.f32 1.0, %v6513_v11  ;;  %v3619_v5 = vmul.f32 %v6513_v11, %v9955_v47  ;;  %v1209_v55 = vadd.f32 %v9956_v25, %v7811_v34 }
 0x4b7   : > { %v6515_v13 = vpop.eup %6514  ;;  %v9215_v35 = vsel %vm3728_vm3, %v3632_v42, %v8874_v8  ;;  %v1211_v42 = vadd.f32 %v9957_v30, %v7814_v56 }
 0x4b8   : > { %v3601_v53 = vmul.f32 %v6515_v13, %v3585_v60  ;;  %v9958_v60 = vld [vmem:[#allocation37_spill] sm:$0xff] }
 0x4b9   : > { %v6517_v4 = vpop.eup %6516  ;;  %v1213_v13 = vadd.f32 %v9958_v60, %v7811_v34 }
 0x4ba   : > { %v3633_v10 = vadd.f32 %v3617_v49, %v3601_v53  ;;  %v3602_v23 = vmul.f32 %v6517_v4, %v3586_v12  ;;  %v9959_v53 = vld [vmem:[#allocation38_spill] sm:$0xff] }
 0x4bb   : > { %v6519_v1 = vpop.eup %6518  ;;  %v1215_v49 = vadd.f32 %v9959_v53, %v7814_v56 }
 0x4bc   : > { %v9218_v29 = vsel %vm3729_vm12, %v3633_v10, %v8877_v9  ;;  %v3603_v32 = vmul.f32 %v6519_v1, %v3587_v58  ;;  %v3634_v22 = vadd.f32 %v3618_v44, %v3602_v23 }
 0x4bd   : > { %v3754_v0 = vpack.c.bf16 %v9218_v29, %v9215_v35 }
 0x4be   : > { %v3635_v16 = vadd.f32 %v3619_v5, %v3603_v32  ;;  %v9224_v8 = vsel %vm3730_vm13, %v3634_v22, %v9954_v36  ;;  %v9960_v5 = vld [vmem:[#allocation39_spill] sm:$0xff]  ;;  %v9961_v22 = vld [vmem:[#allocation40_spill] sm:$0xff] }
 0x4bf   : > { %3849 = vmatmul.mubr.bf16.gmra.mrb[120].mxu0 %v3754_v0  ;;  %5560 = vmatprep.mubr.bf16.mxu1 %v3754_v0  ;;  %v1219_v32 = vadd.f32 %v9960_v5, %v7811_v34  ;;  %v1221_v0 = vadd.f32 %v9961_v22, %v7814_v56 }
 0x4c0   : > { %3858 = vmatprep.mubr.bf16.mxu0 %v9809_v38  ;;  %v9227_v9 = vsel %vm3731_vm4, %v3635_v16, %v9955_v47  ;;  %v6020_v38 = vld [vmem:[#allocation7 + $0x50] sm:$0xff]  }
 0x4c1   : > { %v3755_v24 = vpack.c.bf16 %v9227_v9, %v9224_v8  ;;  %5296 = vmatprep.subr.bf16.mxu1 %v6020_v38  ;;  %v9962_v16 = vld [vmem:[#allocation41_spill] sm:$0xff]  ;;  %v1225_v38 = vadd.f32 %v9963_v62, %v7814_v56  ;;  %v9968_v62 = vld [vmem:[#allocation47_spill] sm:$0xff] }
 0x4c2   : > { %5297 = vmatpush3.bf16.msra.mxu1 %v6021_v51 }
 0x4c3   : > { %5561 = vmatmul.mubr.bf16.gmra.mrb[172].mxu1 %v3755_v24  ;;  %5298 = vmatprep.subr.bf16.mxu1 %v6022_v63 }
 0x4c6   : > { %5299 = vmatpush3.bf16.msra.mxu1 %v6023_v46 }
 0x4c7   : > { %3859 = vmatmul.mubr.bf16.gmra.mrb[124].mxu0 %v3755_v24  ;;  %5300 = vmatprep.subr.bf16.mxu1 %v6024_v57  ;;  %v1223_v24 = vadd.f32 %v9962_v16, %v7811_v34 }
 0x4ca   : > { %5301 = vmatpush3.bf16.msra.mxu1 %v6025_v50 }
 0x4cb   : > { %5302 = vmatprep.subr.bf16.mxu1 %v6026_v17 }
 0x4ce   : > { %5303 = vmatpush3.bf16.msra.mxu1 %v6027_v45 }
 0x4cf   : > { %5304 = vmatprep.subr.bf16.mxu1 %v6028_v15 }
 0x4d2   : > { %5305 = vmatpush3.bf16.msra.mxu1 %v6029_v43 }
 0x4d3   : > { %5306 = vmatprep.subr.bf16.mxu1 %v6030_v19 }
 0x4d6   : > { %5307 = vmatpush3.bf16.msra.mxu1 %v6031_v40 }
 0x552   : > { %v3790_v11 = vpop.f32.mrb[96].mxu0 }
 0x553   : > { %v3966_v18 = vadd.f32 %v3790_v11, %v1209_v55  ;;  %v3792_v21 = vpop.f32.mrb[97].mxu0  ;;  %v9964_v11 = vld [vmem:[#allocation43_spill] sm:$0xff] }
 0x554   : > { %v4078_v12 = vadd.f32 %v3792_v21, %v1211_v42  ;;  %v3794_v4 = vpop.f32.mrb[98].mxu0  ;;  %v1229_v60 = vadd.f32 %v9964_v11, %v7811_v34  ;;  %v9965_v21 = vld [vmem:[#allocation44_spill] sm:$0xff] }
 0x555   : > { %v5124_v10 = vmul.f32 -1.442695, %v3966_v18  ;;  %v3967_v58 = vadd.f32 %v3794_v4, %v1213_v13  ;;  %v3796_v23 = vpop.f32.mrb[99].mxu0  ;;  %v1231_v53 = vadd.f32 %v9965_v21, %v7814_v56  ;;  %v9966_v4 = vld [vmem:[#allocation45_spill] sm:$0xff] }
 0x556   : > { %v5140_v36 = vmul.f32 -1.442695, %v4078_v12  ;;  %v4079_v44 = vadd.f32 %v3796_v23, %v1215_v49 }
 0x557   : > { %6520 = vpow2.f32 %v5124_v10  ;;  %v5125_v1 = vmul.f32 -1.442695, %v3967_v58  ;;  %v1233_v10 = vadd.f32 %v9966_v4, %v7811_v34 }
 0x558   : > { %6522 = vpow2.f32 %v5140_v36  ;;  %v5141_v47 = vmul.f32 -1.442695, %v4079_v44  ;;  %v9967_v44 = vld [vmem:[#allocation46_spill] sm:$0xff] }
 0x559   : > { %6524 = vpow2.f32 %v5125_v1  ;;  %v1235_v1 = vadd.f32 %v9967_v44, %v7814_v56 }
 0x55a   : > { %6526 = vpow2.f32 %v5141_v47  ;;  %v3800_v54 = vpop.f32.mrb[100].mxu0  ;;  %v9243_v20 = vpop.f32.mrb[160].mxu1 }
 0x55b   : > { %v3968_v27 = vadd.f32 %v3800_v54, %v1219_v32  ;;  %v3802_v48 = vpop.f32.mrb[101].mxu0  ;;  %v9247_v3 = vpop.f32.mrb[161].mxu1 }
 0x55c   : > { %v4080_v51 = vadd.f32 %v3802_v48, %v1221_v0  ;;  %v3804_v63 = vpop.f32.mrb[102].mxu0  ;;  %v9251_v46 = vpop.f32.mrb[162].mxu1 }
 0x55d   : > { %v5126_v57 = vmul.f32 -1.442695, %v3968_v27  ;;  %v3969_v50 = vadd.f32 %v3804_v63, %v1223_v24  ;;  %v3806_v17 = vpop.f32.mrb[103].mxu0  ;;  %v9253_v45 = vpop.f32.mrb[163].mxu1 }
 0x55e   : > { %v5142_v15 = vmul.f32 -1.442695, %v4080_v51  ;;  %v4081_v43 = vadd.f32 %v3806_v17, %v1225_v38  ;;  %v1239_v38 = vadd.f32 %v9968_v62, %v7811_v34 }
 0x55f   : > { %6528 = vpow2.f32 %v5126_v57  ;;  %v5127_v19 = vmul.f32 -1.442695, %v3969_v50  ;;  %v9969_v50 = vld [vmem:[#allocation48_spill] sm:$0xff] }
 0x560   : > { %6530 = vpow2.f32 %v5142_v15  ;;  %v5143_v40 = vmul.f32 -1.442695, %v4081_v43  ;;  %v1241_v17 = vadd.f32 %v9969_v50, %v7814_v56  ;;  %v9970_v15 = vld [vmem:[#allocation49_spill] sm:$0xff] }
 0x561   : > { %v6521_v25 = vpop.eup %6520  ;;  %6532 = vpow2.f32 %v5127_v19  ;;  %v1243_v43 = vadd.f32 %v9970_v15, %v7811_v34 }
 0x562   : > { %v6523_v55 = vpop.eup %6522  ;;  %v4030_v30 = vadd.f32 1.0, %v6521_v25  ;;  %6534 = vpow2.f32 %v5143_v40 }
 0x563   : > { %v6525_v42 = vpop.eup %6524  ;;  %v4142_v13 = vadd.f32 1.0, %v6523_v55  ;;  %v9971_v55 = vld [vmem:[#allocation50_spill] sm:$0xff] }
 0x564   : > { %v6527_v18 = vpop.eup %6526  ;;  %6536 = vrcp.f32 %v4030_v30  ;;  %v4031_v49 = vadd.f32 1.0, %v6525_v42  ;;  %v1245_v30 = vadd.f32 %v9971_v55, %v7814_v56 }
 0x565   : > { %v3810_v12 = vpop.f32.mrb[104].mxu0  ;;  %v4143_v58 = vadd.f32 1.0, %v6527_v18  ;;  %v4190_v18 = vadd.f32 %v8999_v41, %v9247_v3 }
 0x566   : > { %v3970_v23 = vadd.f32 %v3810_v12, %v1229_v60  ;;  %v3812_v36 = vpop.f32.mrb[105].mxu0  ;;  %6538 = vrcp.f32 %v4031_v49 }
 0x567   : > { %v4082_v47 = vadd.f32 %v3812_v36, %v1231_v53  ;;  %v3814_v5 = vpop.f32.mrb[106].mxu0  ;;  %6540 = vrcp.f32 %v4142_v13 }
 0x568   : > { %v5128_v32 = vmul.f32 -1.442695, %v3970_v23  ;;  %v3971_v22 = vadd.f32 %v3814_v5, %v1233_v10  ;;  %v3816_v0 = vpop.f32.mrb[107].mxu0  ;;  %6542 = vrcp.f32 %v4143_v58  ;;  %v9972_v10 = vld [vmem:[#allocation100_spill] sm:$0xff]  ;;  %v4191_v23 = vadd.f32 %v8999_v41, %v9253_v45 }
 0x569   : > { %v5144_v54 = vmul.f32 -1.442695, %v4082_v47  ;;  %v4083_v16 = vadd.f32 %v3816_v0, %v1235_v1  ;;  %v6529_v24 = vpop.eup %6528  ;;  %v1514_v58 = vadd.f32 %v9972_v10, %v9873_v37 }
 0x56a   : > { %6544 = vpow2.f32 %v5128_v32  ;;  %v5129_v27 = vmul.f32 -1.442695, %v3971_v22  ;;  %v6531_v48 = vpop.eup %6530  ;;  %v4032_v51 = vadd.f32 1.0, %v6529_v24  ;;  %v9973_v22 = vld [vmem:[#allocation102_spill] sm:$0xff] }
 0x56b   : > { %6546 = vpow2.f32 %v5144_v54  ;;  %v9265_v63 = vpop.f32.mrb[164].mxu1  ;;  %v6533_v57 = vpop.eup %6532  ;;  %v4144_v19 = vadd.f32 1.0, %v6531_v48  ;;  %v5145_v11 = vmul.f32 -1.442695, %v4083_v16  ;;  %v1517_v0 = vadd.f32 %v9973_v22, %v9873_v37 }
 0x56c   : > { %6548 = vpow2.f32 %v5129_v27  ;;  %v9271_v40 = vpop.f32.mrb[165].mxu1  ;;  %v6535_v25 = vpop.eup %6534  ;;  %v4033_v42 = vadd.f32 1.0, %v6533_v57  ;;  %v9975_v57 = vld [vmem:[#allocation52_spill] sm:$0xff] }
 0x56d   : > { %6550 = vrcp.f32 %v4032_v51  ;;  %v3820_v60 = vpop.f32.mrb[108].mxu0  ;;  %v9275_v13 = vpop.f32.mrb[166].mxu1  ;;  %v4145_v21 = vadd.f32 1.0, %v6535_v25  ;;  %v1251_v50 = vadd.f32 %v9975_v57, %v7814_v56  ;;  %v9977_v25 = vld [vmem:[#allocation54_spill] sm:$0xff] }
 0x56e   : > { %6552 = vrcp.f32 %v4144_v19  ;;  %v3972_v53 = vadd.f32 %v3820_v60, %v1239_v38  ;;  %v3822_v49 = vpop.f32.mrb[109].mxu0  ;;  %v9279_v12 = vpop.f32.mrb[167].mxu1  ;;  %v9974_v38 = vld [vmem:[#allocation51_spill] sm:$0xff]  ;;  %v9299_v55 = vadd.f32 %v9977_v25, %v7814_v56 }
 0x56f   : > { %v6537_v4 = vpop.eup %6536  ;;  %6554 = vrcp.f32 %v4033_v42  ;;  %v4084_v36 = vadd.f32 %v3822_v49, %v1241_v17  ;;  %v3824_v44 = vpop.f32.mrb[110].mxu0  ;;  %v1249_v51 = vadd.f32 %v9974_v38, %v7811_v34 }
 0x570   : > { %v4206_v1 = vmul.f32 %v6537_v4, %v4190_v18  ;;  %6556 = vrcp.f32 %v4145_v21  ;;  %v5130_v47 = vmul.f32 -1.442695, %v3972_v53  ;;  %v3973_v5 = vadd.f32 %v3824_v44, %v1243_v43  ;;  %v3826_v3 = vpop.f32.mrb[111].mxu0  ;;  %v6539_v32 = vpop.eup %6538  ;;  %v9976_v43 = vld [vmem:[#allocation53_spill] sm:$0xff]  ;;  %v9308_v18 = vld [vmem:[%s9624_s6] ss:$0 sm:$0xff] }
 0x571   : > { %6558 = vpow2.f32 %v5145_v11  ;;  %v5146_v54 = vmul.f32 -1.442695, %v4084_v36  ;;  %v4085_v16 = vadd.f32 %v3826_v3, %v1245_v30  ;;  %v9287_v24 = vpop.eup %6540  ;;  %v4207_v48 = vmul.f32 %v6539_v32, %v4191_v23  ;;  %v9978_v11 = vld [vmem:[#allocation55_spill] sm:$0xff]  ;;  %v9979_v4 = vld [vmem:[#allocation56_spill] sm:$0xff] }
 0x572   : > { %v4222_v27 = vadd.f32 %v4206_v1, %v1514_v58  ;;  %6560 = vpow2.f32 %v5130_v47  ;;  %v5131_v41 = vmul.f32 -1.442695, %v3973_v5  ;;  %v9289_v45 = vpop.eup %6542  ;;  %v1253_v19 = vadd.f32 %v9976_v43, %v7811_v34  ;;  %v9980_v58 = vld [vmem:[#allocation57_spill] sm:$0xff]  ;;  %v9981_v1 = vld [vmem:[#allocation58_spill] sm:$0xff] }
 0x573   : > { %6562 = vpow2.f32 %v5146_v54  ;;  %v4223_v17 = vadd.f32 %v4207_v48, %v1517_v0  ;;  %v9303_v60 = vadd.f32 %v9978_v11, %v7811_v34  ;;  %v4192_v21 = vadd.f32 %v9308_v18, %v9243_v20  ;;  %v9982_v20 = vld [vmem:[#allocation99_spill] sm:$0xff] }
 0x574   : > { %v6545_v62 = vpop.eup %6544  ;;  %6564 = vtanh.f32 %v4222_v27  ;;  %v5147_v53 = vmul.f32 -1.442695, %v4085_v16  ;;  %v9314_v10 = vadd.f32 %v9979_v4, %v7814_v56  ;;  %v9318_v23 = vadd.f32 %v9980_v58, %v7811_v34  ;;  %v9983_v0 = vld [vmem:[#allocation59_spill] sm:$0xff]  ;;  %v9984_v16 = vld [vmem:[#allocation101_spill] sm:$0xff] }
 0x575   : > { %v6547_v15 = vpop.eup %6546  ;;  %v4034_v30 = vadd.f32 1.0, %v6545_v62  ;;  %6566 = vpow2.f32 %v5131_v41  ;;  %v9324_v47 = vadd.f32 %v9981_v1, %v7814_v56  ;;  %v1522_v5 = vadd.f32 %v9982_v20, %v9873_v37  ;;  %v9985_v62 = vld [vmem:[#allocation104_spill] sm:$0xff] }
 0x576   : > { %v6549_v42 = vpop.eup %6548  ;;  %6568 = vtanh.f32 %v4223_v17  ;;  %v4193_v32 = vadd.f32 %v9308_v18, %v9251_v46  ;;  %v9332_v54 = vadd.f32 %v9983_v0, %v7811_v34  ;;  %v1525_v27 = vadd.f32 %v9984_v16, %v9873_v37  ;;  %v9986_v46 = vld [vmem:[#allocation106_spill] sm:$0xff] }
 0x577   : > { %v6551_v49 = vpop.eup %6550  ;;  %6570 = vrcp.f32 %v4034_v30  ;;  %v4035_v36 = vadd.f32 1.0, %v6549_v42  ;;  %v4146_v48 = vadd.f32 1.0, %v6547_v15  ;;  %v1530_v38 = vadd.f32 %v9985_v62, %v9873_v37  ;;  %v9344_v30 = vpop.permute.xlu0 %4351 }
 0x578   : > { %v9320_v44 = vpop.eup %6552  ;;  %v4208_v3 = vmul.f32 %v6551_v49, %v4192_v21  ;;  %v9342_v25 = vadd.f32 %v9986_v46, %v9873_v37  ;;  %v9348_v42 = vadd.f32 %v9308_v18, %v9265_v63  ;;  %v4194_v15 = vadd.f32 %v9308_v18, %v9271_v40 }
 0x579   : > { %v6555_v22 = vpop.eup %6554  ;;  %6572 = vrcp.f32 %v4035_v36  ;;  %v4254_v11 = vsub.f32 1.0, %v9287_v24  ;;  %vm4398_vm5 = vcmp.eq.s32.totalorder %v9344_v30, 1  ;;  %v4255_v36 = vsub.f32 1.0, %v9289_v45 }
 0x57a   : > { %v9336_v41 = vpop.eup %6556  ;;  %v4224_v57 = vadd.f32 %v4208_v3, %v1522_v5  ;;  %v4209_v17 = vmul.f32 %v6555_v22, %v4193_v32  ;;  %6574 = vpow2.f32 %v5147_v53  ;;  %v9354_v53 = vpop.permute.xlu1 %4354  ;;  %v4286_v5 = vmul.f32 %v9287_v24, %v9042_v59 }
 0x57b   : > { %v6559_v43 = vpop.eup %6558  ;;  %vm4399_vm6 = vcmp.eq.s32.totalorder %v9354_v53, 1  ;;  %v4287_v16 = vmul.f32 %v9289_v45, %v9047_v2  ;;  %v9365_v45 = vpop.permute.xlu0 %4357  ;;  %v4289_v53 = vmul.f32 %v9336_v41, %v9079_v26 }
 0x57c   : > { %v6561_v21 = vpop.eup %6560  ;;  %6576 = vtanh.f32 %v4224_v57  ;;  %v4225_v49 = vadd.f32 %v4209_v17, %v1525_v27  ;;  %v4147_v4 = vadd.f32 1.0, %v6559_v43  ;;  %vm4400_vm7 = vcmp.eq.s32.totalorder %v9365_v45, 1  ;;  %v9991_v45 = vld [vmem:[#allocation62_spill] sm:$0xff] }
 0x57d   : > { %v3830_v58 = vpop.f32.mrb[112].mxu0  ;;  %v6563_v1 = vpop.eup %6562  ;;  %6578 = vrcp.f32 %v4146_v48  ;;  %v4036_v63 = vadd.f32 1.0, %v6561_v21 }
 0x57e   : > { %v3974_v20 = vadd.f32 %v3830_v58, %v1249_v51  ;;  %v3832_v40 = vpop.f32.mrb[113].mxu0  ;;  %v6565_v3 = vpop.eup %6564  ;;  %6580 = vtanh.f32 %v4225_v49  ;;  %v4148_v32 = vadd.f32 1.0, %v6563_v1 }
 0x57f   : > { %v4086_v22 = vadd.f32 %v3832_v40, %v1251_v50  ;;  %v3834_v0 = vpop.f32.mrb[114].mxu0  ;;  %v6567_v27 = vpop.eup %6566  ;;  %6582 = vrcp.f32 %v4147_v4  ;;  %v4270_v48 = vmul.f32 %v6565_v3, %v4254_v11 }
 0x580   : > { %v5132_v62 = vmul.f32 -1.442695, %v3974_v20  ;;  %v3975_v57 = vadd.f32 %v3834_v0, %v1253_v19  ;;  %v3836_v17 = vpop.f32.mrb[115].mxu0  ;;  %v6569_v43 = vpop.eup %6568  ;;  %6584 = vrcp.f32 %v4036_v63  ;;  %v4037_v51 = vadd.f32 1.0, %v6567_v27 }
 0x581   : > { %v5148_v46 = vmul.f32 -1.442695, %v4086_v22  ;;  %v4087_v24 = vadd.f32 %v3836_v17, %v9299_v55  ;;  %v6571_v21 = vpop.eup %6570  ;;  %6586 = vrcp.f32 %v4148_v32  ;;  %v4271_v58 = vmul.f32 %v6569_v43, %v4255_v36 }
 0x582   : > { %v5133_v49 = vmul.f32 -1.442695, %v3975_v57  ;;  %v9363_v50 = vpop.f32.mrb[168].mxu1  ;;  %v4302_v1 = vadd.f32 %v4286_v5, %v4270_v48  ;;  %v4210_v4 = vmul.f32 %v6571_v21, %v4194_v15  ;;  %6588 = vrcp.f32 %v4037_v51  ;;  %v6032_v51 = vld [vmem:[%s7299_s26] sm:$0xff]  }
 0x583   : > { %v4195_v19 = vadd.f32 %v9308_v18, %v9279_v12  ;;  %v9369_v11 = vpop.f32.mrb[169].mxu1  ;;  %v4256_v63 = vsub.f32 1.0, %v9320_v44  ;;  %v6573_v20 = vpop.eup %6572  ;;  %6590 = vpow2.f32 %v5132_v62  ;;  %v4303_v40 = vadd.f32 %v4287_v16, %v4271_v58 }
 0x584   : > { %v9373_v55 = vpop.f32.mrb[170].mxu1  ;;  %v4257_v36 = vsub.f32 1.0, %v9336_v41  ;;  %v4288_v15 = vmul.f32 %v9320_v44, %v9086_v39  ;;  %v6575_v5 = vpop.eup %6574  ;;  %v4226_v3 = vadd.f32 %v4210_v4, %v1530_v38  ;;  %6592 = vpow2.f32 %v5148_v46 }
 0x585   : > { %v4211_v32 = vmul.f32 %v6573_v20, %v4195_v19  ;;  %v5149_v12 = vmul.f32 -1.442695, %v4087_v24  ;;  %v3840_v22 = vpop.f32.mrb[116].mxu0  ;;  %v9378_v0 = vpop.f32.mrb[171].mxu1  ;;  %v4149_v27 = vadd.f32 1.0, %v6575_v5  ;;  %6594 = vpow2.f32 %v5133_v49 }
 0x586   : > { %v3976_v62 = vadd.f32 %v3840_v22, %v9303_v60  ;;  %v3842_v57 = vpop.f32.mrb[117].mxu0  ;;  %v4414_v16 = vsel %vm4398_vm5, %v4302_v1, %v9042_v59  ;;  %v6577_v17 = vpop.eup %6576  ;;  %6596 = vtanh.f32 %v4226_v3  ;;  %v4415_v43 = vsel %vm4399_vm6, %v4303_v40, %v9047_v2 }
 0x587   : > { %v4227_v44 = vadd.f32 %v4211_v32, %v9342_v25  ;;  %v4088_v38 = vadd.f32 %v3842_v57, %v9314_v10  ;;  %v3844_v48 = vpop.f32.mrb[118].mxu0  ;;  %v6579_v46 = vpop.eup %6578  ;;  %6598 = vrcp.f32 %v4149_v27  ;;  %v4446_v30 = vpack.c.bf16 %v4415_v43, %v4414_v16  ;;  %v9988_v32 = vld [vmem:[#allocation105_spill] sm:$0xff]  ;;  %v9989_v57 = vld [vmem:[#allocation60_spill] sm:$0xff] }
 0x588   : > { %v5134_v60 = vmul.f32 -1.442695, %v3976_v62  ;;  %v3977_v24 = vadd.f32 %v3844_v48, %v9318_v23  ;;  %v3846_v21 = vpop.f32.mrb[119].mxu0  ;;  %v6581_v59 = vpop.eup %6580  ;;  %v4272_v58 = vmul.f32 %v6577_v17, %v4256_v63  ;;  %v9987_v23 = vld [vmem:[#allocation103_spill] sm:$0xff]  ;;  %v4197_v3 = vadd.f32 %v9308_v18, %v9275_v13  ;;  %v9990_v17 = vld [vmem:[#allocation61_spill] sm:$0xff]  ;;  %v6033_v43 = vld [vmem:[%s7299_s26 + $0x8] sm:$0xff]  }
 0x589   : > { %6600 = vtanh.f32 %v4227_v44  ;;  %v5150_v49 = vmul.f32 -1.442695, %v4088_v38  ;;  %v4089_v25 = vadd.f32 %v3846_v21, %v9324_v47  ;;  %v9392_v10 = vpop.eup %6582  ;;  %4669 = vmatprep.mubr.bf16.mxu1 %v4446_v30  ;;  %v4273_v2 = vmul.f32 %v6581_v59, %v4257_v36  ;;  %v4361_v47 = vpop.permute.xlu1 %4360  ;;  %v9993_v59 = vld [vmem:[#allocation64_spill] sm:$0xff] }
 0x58a   : > { %6602 = vpow2.f32 %v5149_v12  ;;  %v5135_v1 = vmul.f32 -1.442695, %v3977_v24  ;;  %v6585_v4 = vpop.eup %6584  ;;  %v1538_v19 = vadd.f32 %v9987_v23, %v9873_v37  ;;  %4670 = vmatmul.mubr.bf16.vlgmr.msra.gmra.mrb[176].mxu1 %v6032_v51  ;;  %v4304_v40 = vadd.f32 %v4288_v15, %v4272_v58 }
 0x58b   : > { %6604 = vpow2.f32 %v5134_v60  ;;  %v5151_v20 = vmul.f32 -1.442695, %v4089_v25  ;;  %v9398_v5 = vpop.eup %6586  ;;  %v4212_v63 = vmul.f32 %v6585_v4, %v9348_v42  ;;  %v4305_v36 = vadd.f32 %v4289_v53, %v4273_v2  ;;  %v4364_v25 = vpop.permute.xlu0 %4363 }
 0x58c   : > { %6606 = vpow2.f32 %v5150_v49  ;;  %v6589_v41 = vpop.eup %6588  ;;  %v1541_v12 = vadd.f32 %v9988_v32, %v9873_v37  ;;  %vm4401_vm11 = vcmp.eq.s32.totalorder %v4361_v47, 1  ;;  %v4416_v15 = vsel %vm4400_vm7, %v4304_v40, %v9086_v39  ;;  %v9995_v47 = vld [vmem:[#allocation66_spill] sm:$0xff] }
 0x58d   : > { %6608 = vpow2.f32 %v5135_v1  ;;  %v6591_v22 = vpop.eup %6590  ;;  %v4228_v27 = vadd.f32 %v4212_v63, %v1538_v19  ;;  %v4213_v62 = vmul.f32 %v6589_v41, %v4197_v3  ;;  %v4417_v42 = vsel %vm4401_vm11, %v4305_v36, %v9079_v26  ;;  %v9992_v26 = vld [vmem:[#allocation63_spill] sm:$0xff]  ;;  %v4367_v2 = vpop.permute.xlu1 %4366 }
 0x58e   : > { %6610 = vpow2.f32 %v5151_v20  ;;  %v6593_v13 = vpop.eup %6592  ;;  %v1271_v16 = vadd.f32 %v9989_v57, %v7814_v56  ;;  %v1273_v44 = vadd.f32 %v9990_v17, %v7811_v34  ;;  %v4038_v38 = vadd.f32 1.0, %v6591_v22  ;;  %v9994_v20 = vld [vmem:[#allocation65_spill] sm:$0xff] }
 0x58f   : > { %v4447_v48 = vpack.c.bf16 %v4417_v42, %v4416_v15  ;;  %v6595_v51 = vpop.eup %6594  ;;  %v1275_v39 = vadd.f32 %v9991_v45, %v7814_v56  ;;  %6612 = vtanh.f32 %v4228_v27  ;;  %v4229_v60 = vadd.f32 %v4213_v62, %v1541_v12 }
 0x590   : > { %v4258_v24 = vsub.f32 1.0, %v6579_v46  ;;  %v6597_v21 = vpop.eup %6596  ;;  %v9418_v30 = vadd.f32 %v9992_v26, %v7811_v34  ;;  %v9422_v49 = vadd.f32 %v9993_v59, %v7814_v56  ;;  %6614 = vrcp.f32 %v4038_v38 }
 0x591   : > { %v4039_v58 = vadd.f32 1.0, %v6595_v51  ;;  %4677 = vmatprep.mubr.bf16.mxu1 %v4447_v48  ;;  %v9424_v1 = vpop.eup %6598  ;;  %6616 = vtanh.f32 %v4229_v60  ;;  %v4259_v53 = vsub.f32 1.0, %v9392_v10  ;;  %v4290_v23 = vmul.f32 %v6579_v46, %v9140_v31  ;;  %v9443_v51 = vpop.permute.xlu0 %4369 }
 0x592   : > { %v4274_v4 = vmul.f32 %v6597_v21, %v4258_v24  ;;  %v9430_v40 = vadd.f32 %v9994_v20, %v7811_v34  ;;  %v9434_v63 = vadd.f32 %v9995_v47, %v7814_v56  ;;  %vm4402_vm14 = vcmp.eq.s32.totalorder %v4364_v25, 1  ;;  %v3850_v3 = vpop.f32.mrb[120].mxu0  ;;  %4678 = vmatmul.mubr.bf16.gmra.mrb[180].mxu1 %v6033_v43  ;;  %v9996_v34 = vld [vmem:[#allocation108_spill] sm:$0xff]  ;;  %v9450_v26 = vpop.permute.xlu1 %4372 }
 0x593   : > { %v6601_v19 = vpop.eup %6600  ;;  %v4291_v36 = vmul.f32 %v9392_v10, %v9129_v28  ;;  %6618 = vrcp.f32 %v4039_v58  ;;  %v3978_v32 = vadd.f32 %v3850_v3, %v9332_v54  ;;  %v3852_v46 = vpop.f32.mrb[121].mxu0  ;;  %v1546_v27 = vadd.f32 %v9996_v34, %v9873_v37  ;;  %v6034_v3 = vld [vmem:[%s7299_s26 + $0x10] sm:$0xff]  }
 0x594   : > { %v6603_v41 = vpop.eup %6602  ;;  %v4275_v12 = vmul.f32 %v6601_v19, %v4259_v53  ;;  %v4306_v15 = vadd.f32 %v4290_v23, %v4274_v4  ;;  %vm4403_vm15 = vcmp.eq.s32.totalorder %v4367_v2, 1  ;;  %v4150_v56 = vadd.f32 1.0, %v6593_v13  ;;  %v3854_v42 = vpop.f32.mrb[122].mxu0 }
 0x595   : > { %v6605_v22 = vpop.eup %6604  ;;  %v4090_v62 = vadd.f32 %v3852_v46, %v1271_v16  ;;  %v4198_v10 = vadd.f32 %v9308_v18, %v9369_v11  ;;  %v3979_v38 = vadd.f32 %v3854_v42, %v1273_v44  ;;  %v3856_v48 = vpop.f32.mrb[123].mxu0  ;;  %v4151_v45 = vadd.f32 1.0, %v6603_v41 }
 0x596   : > { %v6607_v57 = vpop.eup %6606  ;;  %v4040_v17 = vadd.f32 1.0, %v6605_v22  ;;  %v4307_v43 = vadd.f32 %v4291_v36, %v4275_v12  ;;  %v4199_v60 = vadd.f32 %v9308_v18, %v9378_v0  ;;  %v4091_v24 = vadd.f32 %v3856_v48, %v1275_v39  ;;  %v9447_v21 = vpop.f32.mrb[172].mxu1 }
 0x597   : > { %v6609_v54 = vpop.eup %6608  ;;  %v4260_v13 = vsub.f32 1.0, %v9398_v5  ;;  %v5136_v44 = vmul.f32 -1.442695, %v3978_v32  ;;  %v9452_v59 = vpop.f32.mrb[173].mxu1  ;;  %v4292_v58 = vmul.f32 %v9398_v5, %v9155_v61  ;;  %vm4404_vm9 = vcmp.eq.s32.totalorder %v9443_v51, 1 }
 0x598   : > { %v6611_v16 = vpop.eup %6610  ;;  %6620 = vrcp.f32 %v4040_v17  ;;  %v4041_v11 = vadd.f32 1.0, %v6609_v54  ;;  %vm4405_vm10 = vcmp.eq.s32.totalorder %v9450_v26, 1  ;;  %v4152_v0 = vadd.f32 1.0, %v6607_v57  ;;  %v9458_v39 = vpop.f32.mrb[174].mxu1 }
 0x599   : > { %6622 = vrcp.f32 %v4150_v56  ;;  %v4261_v53 = vsub.f32 1.0, %v9424_v1  ;;  %v4293_v4 = vmul.f32 %v9424_v1, %v9160_v33  ;;  %v6613_v23 = vpop.eup %6612  ;;  %v5137_v19 = vmul.f32 -1.442695, %v3979_v38  ;;  %v9463_v20 = vpop.f32.mrb[175].mxu1 }
 0x59a   : > { %6624 = vrcp.f32 %v4041_v11  ;;  %v4418_v5 = vsel %vm4402_vm14, %v4306_v15, %v9140_v31  ;;  %v4419_v47 = vsel %vm4403_vm15, %v4307_v43, %v9129_v28  ;;  %v6615_v36 = vpop.eup %6614  ;;  %v4153_v41 = vadd.f32 1.0, %v6611_v16  ;;  %v3860_v32 = vpop.f32.mrb[124].mxu0  ;;  %v9998_v43 = vld [vmem:[#allocation107_spill] sm:$0xff] }
 0x59b   : > { %6626 = vrcp.f32 %v4151_v45  ;;  %v4448_v46 = vpack.c.bf16 %v4419_v47, %v4418_v5  ;;  %v4276_v12 = vmul.f32 %v6613_v23, %v4260_v13  ;;  %v6617_v22 = vpop.eup %6616  ;;  %v4214_v1 = vmul.f32 %v6615_v36, %v4198_v10  ;;  %v3862_v42 = vpop.f32.mrb[125].mxu0 }
 0x59c   : > { %6628 = vpow2.f32 %v5136_v44  ;;  %v5152_v34 = vmul.f32 -1.442695, %v4090_v62  ;;  %v3980_v56 = vadd.f32 %v3860_v32, %v9418_v30  ;;  %v4092_v31 = vadd.f32 %v3862_v42, %v9422_v49  ;;  %v3864_v25 = vpop.f32.mrb[126].mxu0  ;;  %v9997_v62 = vld [vmem:[#allocation110_spill] sm:$0xff]  ;;  %v4376_v42 = vpop.permute.xlu0 %4375 }
 0x59d   : > { %6630 = vrcp.f32 %v4152_v0  ;;  %4685 = vmatprep.mubr.bf16.mxu1 %v4448_v46  ;;  %v4277_v28 = vmul.f32 %v6617_v22, %v4261_v53  ;;  %v4308_v2 = vadd.f32 %v4292_v58, %v4276_v12  ;;  %v6619_v15 = vpop.eup %6618  ;;  %v4230_v57 = vadd.f32 %v4214_v1, %v1546_v27  ;;  %v3866_v48 = vpop.f32.mrb[127].mxu0  ;;  %v6035_v58 = vld [vmem:[%s7299_s26 + $0x18] sm:$0xff]  }
 0x59e   : > { %6632 = vpow2.f32 %v5137_v19  ;;  %v5138_v17 = vmul.f32 -1.442695, %v3980_v56  ;;  %v3981_v38 = vadd.f32 %v3864_v25, %v9430_v40  ;;  %4686 = vmatmul.mubr.bf16.gmra.mrb[184].mxu1 %v6034_v3  ;;  %v1549_v10 = vadd.f32 %v9997_v62, %v9873_v37  ;;  %v9999_v19 = vld [vmem:[#allocation109_spill] sm:$0xff] }
 0x59f   : > { %6634 = vrcp.f32 %v4153_v41  ;;  %v4215_v30 = vmul.f32 %v6619_v15, %v4199_v60  ;;  %v4093_v49 = vadd.f32 %v3866_v48, %v9434_v63  ;;  %v1554_v54 = vadd.f32 %v9998_v43, %v9873_v37  ;;  %v4379_v48 = vpop.permute.xlu1 %4378 }
 0x5a0   : > { %6636 = vtanh.f32 %v4230_v57  ;;  %v5139_v45 = vmul.f32 -1.442695, %v3981_v38  ;;  %v4309_v27 = vadd.f32 %v4293_v4, %v4277_v28  ;;  %v4200_v13 = vadd.f32 %v9308_v18, %v9363_v50 }
 0x5a1   : > { %v4231_v40 = vadd.f32 %v4215_v30, %v1549_v10  ;;  %v5153_v16 = vmul.f32 -1.442695, %v4091_v24  ;;  %6638 = vpow2.f32 %v5138_v17  ;;  %v5154_v44 = vmul.f32 -1.442695, %v4092_v31 }
 0x5a2   : > { %v6621_v11 = vpop.eup %6620  ;;  %6640 = vpow2.f32 %v5152_v34  ;;  %v4420_v60 = vsel %vm4404_vm9, %v4308_v2, %v9155_v61  ;;  %v4421_v63 = vsel %vm4405_vm10, %v4309_v27, %v9160_v33  ;;  %v4201_v50 = vadd.f32 %v9308_v18, %v9373_v55  ;;  %v4382_v27 = vpop.permute.xlu0 %4381 }
 0x5a3   : > { %v6623_v0 = vpop.eup %6622  ;;  %v4216_v53 = vmul.f32 %v6621_v11, %v4200_v13  ;;  %6642 = vtanh.f32 %v4231_v40  ;;  %v4449_v24 = vpack.c.bf16 %v4421_v63, %v4420_v60  ;;  %v1557_v5 = vadd.f32 %v9999_v19, %v9873_v37 }
 0x5a4   : > { %v6625_v4 = vpop.eup %6624  ;;  %6644 = vpow2.f32 %v5139_v45  ;;  %v5155_v55 = vmul.f32 -1.442695, %v4093_v49  ;;  %v4262_v46 = vsub.f32 1.0, %v6623_v0  ;;  %v4294_v34 = vmul.f32 %v6623_v0, %v9181_v7 }
 0x5a5   : > { %v6627_v23 = vpop.eup %6626  ;;  %v4232_v51 = vadd.f32 %v4216_v53, %v1554_v54  ;;  %v4217_v61 = vmul.f32 %v6625_v4, %v4201_v50  ;;  %6646 = vpow2.f32 %v5153_v16  ;;  %4693 = vmatprep.mubr.bf16.mxu1 %v4449_v24  ;;  %vm4406_vm8 = vcmp.eq.s32.totalorder %v4376_v42, 1  ;;  %v6036_v16 = vld [vmem:[%s7299_s26 + $0x20] sm:$0xff]  }
 0x5a6   : > { %v6629_v26 = vpop.eup %6628  ;;  %6648 = vpow2.f32 %v5154_v44  ;;  %4694 = vmatmul.mubr.bf16.gmra.mrb[188].mxu1 %v6035_v58  ;;  %v4263_v25 = vsub.f32 1.0, %v6627_v23  ;;  %v4295_v17 = vmul.f32 %v6627_v23, %v9184_v6  ;;  %vm4407_vm0 = vcmp.eq.s32.totalorder %v4379_v48, 1 }
 0x5a7   : > { %v6631_v33 = vpop.eup %6630  ;;  %6650 = vtanh.f32 %v4232_v51  ;;  %v4233_v47 = vadd.f32 %v4217_v61, %v1557_v5  ;;  %v4042_v3 = vadd.f32 1.0, %v6629_v26  ;;  %vm4408_vm1 = vcmp.eq.s32.totalorder %v4382_v27, 1  ;;  %v4385_v5 = vpop.permute.xlu1 %4384 }
 0x5a8   : > { %v6633_v36 = vpop.eup %6632  ;;  %v4264_v49 = vsub.f32 1.0, %v6631_v33  ;;  %v4296_v45 = vmul.f32 %v6631_v33, %v9200_v14  ;;  %v4202_v58 = vadd.f32 %v9308_v18, %v9452_v59  ;;  %v4203_v61 = vadd.f32 %v9308_v18, %v9463_v20  ;;  %v10001_v59 = vld [vmem:[#allocation112_spill] sm:$0xff] }
 0x5a9   : > { %v6635_v41 = vpop.eup %6634  ;;  %6652 = vtanh.f32 %v4233_v47  ;;  %v4043_v32 = vadd.f32 1.0, %v6633_v36  ;;  %v1570_v33 = vadd.f32 %v10001_v59, %v9873_v37  ;;  %v10002_v47 = vld [vmem:[#allocation115_spill] sm:$0xff]  ;;  %vm4409_vm2 = vcmp.eq.s32.totalorder %v4385_v5, 1  ;;  %v6039_v5 = vld [vmem:[%s7299_s26 + $0x38] sm:$0xff]  }
 0x5aa   : > { %v6637_v12 = vpop.eup %6636  ;;  %6654 = vrcp.f32 %v4042_v3  ;;  %v4265_v11 = vsub.f32 1.0, %v6635_v41  ;;  %v4297_v4 = vmul.f32 %v6635_v41, %v9203_v52  ;;  %v1565_v3 = vadd.f32 %v10002_v47, %v9873_v37 }
 0x5ab   : > { %v6639_v22 = vpop.eup %6638  ;;  %6656 = vpow2.f32 %v5155_v55  ;;  %v4278_v1 = vmul.f32 %v6637_v12, %v4262_v46  ;;  %v4204_v36 = vadd.f32 %v9308_v18, %v9447_v21  ;;  %v4205_v42 = vadd.f32 %v9308_v18, %v9458_v39 }
 0x5ac   : > { %v6641_v56 = vpop.eup %6640  ;;  %6658 = vrcp.f32 %v4043_v32  ;;  %v4044_v31 = vadd.f32 1.0, %v6639_v22 }
 0x5ad   : > { %v6643_v28 = vpop.eup %6642  ;;  %v4310_v2 = vadd.f32 %v4294_v34, %v4278_v1  ;;  %v4154_v54 = vadd.f32 1.0, %v6641_v56 }
 0x5ae   : > { %v6645_v15 = vpop.eup %6644  ;;  %6660 = vrcp.f32 %v4044_v31  ;;  %v4279_v57 = vmul.f32 %v6643_v28, %v4263_v25  ;;  %v6037_v31 = vld [vmem:[%s7299_s26 + $0x28] sm:$0xff]   ;;  %v10003_v28 = vld [vmem:[#allocation114_spill] sm:$0xff] }
 0x5af   : > { %v6647_v38 = vpop.eup %6646  ;;  %v4045_v62 = vadd.f32 1.0, %v6645_v15  ;;  %v4422_v13 = vsel %vm4406_vm8, %v4310_v2, %v9181_v7  ;;  %v10000_v7 = vld [vmem:[#allocation113_spill] sm:$0xff]  ;;  %v1573_v2 = vadd.f32 %v10003_v28, %v9873_v37 }
 0x5b0   : > { %v6649_v10 = vpop.eup %6648  ;;  %v4311_v30 = vadd.f32 %v4295_v17, %v4279_v57  ;;  %v4155_v63 = vadd.f32 1.0, %v6647_v38 }
 0x5b1   : > { %v6651_v43 = vpop.eup %6650  ;;  %6662 = vrcp.f32 %v4045_v62  ;;  %v4156_v50 = vadd.f32 1.0, %v6649_v10 }
 0x5b2   : > { %v4423_v40 = vsel %vm4407_vm0, %v4311_v30, %v9184_v6  ;;  %v4280_v44 = vmul.f32 %v6651_v43, %v4264_v49  ;;  %v1562_v6 = vadd.f32 %v10000_v7, %v9873_v37  ;;  %6664 = vrcp.f32 %v4154_v54  ;;  %v4388_v30 = vpop.permute.xlu0 %4387  ;;  %v4391_v49 = vpop.permute.xlu1 %4390 }
 0x5b3   : > { %v6653_v60 = vpop.eup %6652  ;;  %v4450_v0 = vpack.c.bf16 %v4423_v40, %v4422_v13  ;;  %6666 = vrcp.f32 %v4155_v63  ;;  %vm4410_vm3 = vcmp.eq.s32.totalorder %v4388_v30, 1  ;;  %vm4411_vm12 = vcmp.eq.s32.totalorder %v4391_v49, 1 }
 0x5b4   : > { %v6655_v53 = vpop.eup %6654  ;;  %v4281_v24 = vmul.f32 %v6653_v60, %v4265_v11  ;;  %v4312_v23 = vadd.f32 %v4296_v45, %v4280_v44  ;;  %6668 = vrcp.f32 %v4156_v50 }
 0x5b5   : > { %v6657_v19 = vpop.eup %6656  ;;  %v4218_v51 = vmul.f32 %v6655_v53, %v4202_v58  ;;  %4701 = vmatprep.mubr.bf16.mxu1 %v4450_v0  ;;  %v6038_v0 = vld [vmem:[%s7299_s26 + $0x30] sm:$0xff]   ;;  %s4764_s26 = sshll.u32 %s9535_s14, 4  ;;  %s9572_s26 = int_to_ptr.vmem [resolvable:$true] %s4764_s26 }
 0x5b6   : > { %v6659_v26 = vpop.eup %6658  ;;  %4702 = vmatmul.mubr.bf16.gmra.mrb[192].mxu1 %v6036_v16  ;;  %v4313_v55 = vadd.f32 %v4297_v4, %v4281_v24  ;;  %v4157_v20 = vadd.f32 1.0, %v6657_v19  ;;  %v4424_v12 = vsel %vm4408_vm1, %v4312_v23, %v9200_v14  ;;  %v4394_v50 = vpop.permute.xlu0 %4393  ;;  %s6764_s19 = scalar_lea.vmem %s9572_s26, 2048  ;;  %p6771_p9 = scmp.lt.s32.totalorder %s9572_s26, %s6769_s20 }
 0x5b7   : > { %v4234_v41 = vadd.f32 %v4218_v51, %v1562_v6  ;;  %v4219_v32 = vmul.f32 %v6659_v26, %v4203_v61  ;;  %v4397_v24 = vpop.permute.xlu1 %4396  ;;  %vm4412_vm13 = vcmp.eq.s32.totalorder %v4394_v50, 1  ;;  %v9532_v61 = vld [vmem:[%s9626_s8] ss:$0 sm:$0xff]  ;;  %p6765_p13 = scmp.ne.s32.totalorder %s9572_s26, %s6764_s19  ;;  %p6772_p10 = scmp.lt.s32.totalorder %s6770_s29, %s6764_s19 }
 0x5b8   : > { %v6661_v46 = vpop.eup %6660  ;;  %v4425_v22 = vsel %vm4409_vm2, %v4313_v55, %v9203_v52  ;;  %vm4413_vm4 = vcmp.eq.s32.totalorder %v4397_v24, 1 }
 0x5b9   : > { %v4220_v1 = vmul.f32 %v6661_v46, %v4204_v36  ;;  %6670 = vtanh.f32 %v4234_v41  ;;  %v4235_v34 = vadd.f32 %v4219_v32, %v1565_v3  ;;  %v4451_v56 = vpack.c.bf16 %v4425_v22, %v4424_v12  ;;  %p6766_p7 = pnand %p6765_p13, %p10005_p0  ;;  %p6773_p1 = por %p6772_p10, %p6771_p9 }
 0x5bb   : > { %v6663_v25 = vpop.eup %6662  ;;  %v4236_v21 = vadd.f32 %v4220_v1, %v1570_v33  ;;  %6672 = vtanh.f32 %v4235_v34  ;;  %4709 = vmatprep.mubr.bf16.mxu1 %v4451_v56  ;;  %p6767_p8 = pneg %p6766_p7 }
 0x5bc   : > { %v4221_v15 = vmul.f32 %v6663_v25, %v4205_v42  ;;  %6674 = vrcp.f32 %v4157_v20  ;;  %v6665_v52 = vpop.eup %6664 }
 0x5bd   : > { %6676 = vtanh.f32 %v4236_v21  ;;  %v6667_v57 = vpop.eup %6666  ;;  %v4266_v38 = vsub.f32 1.0, %v6665_v52  ;;  %v4298_v62 = vmul.f32 %v6665_v52, %v9215_v35  ;;  %p6774_p4 = pnand %p6773_p1, %p6767_p8 }
 0x5be   : > { %v4237_v14 = vadd.f32 %v4221_v15, %v1573_v2  ;;  %4710 = vmatmul.mubr.bf16.gmra.mrb[196].mxu1 %v6037_v31  ;;  %v6669_v17 = vpop.eup %6668  ;;  %v4267_v18 = vsub.f32 1.0, %v6667_v57  ;;  %v4299_v54 = vmul.f32 %v6667_v57, %v9218_v29 }
 0x5bf   : > { %v4268_v27 = vsub.f32 1.0, %v6669_v17  ;;  %v4300_v11 = vmul.f32 %v6669_v17, %v9224_v8 }
 0x5c0   : > { %6678 = vtanh.f32 %v4237_v14 }
 0x5c3   : > { %v6671_v48 = vpop.eup %6670 }
 0x5c4   : > { %v4282_v39 = vmul.f32 %v6671_v48, %v4266_v38 }
 0x5c5   : > { %v6673_v10 = vpop.eup %6672 }
 0x5c6   : > { %v6675_v37 = vpop.eup %6674  ;;  %v4283_v43 = vmul.f32 %v6673_v10, %v4267_v18  ;;  %v4314_v45 = vadd.f32 %v4298_v62, %v4282_v39 }
 0x5c7   : > { %v6677_v13 = vpop.eup %6676  ;;  %v4269_v44 = vsub.f32 1.0, %v6675_v37  ;;  %v4301_v19 = vmul.f32 %v6675_v37, %v9227_v9 }
 0x5c8   : > { %v4315_v40 = vadd.f32 %v4299_v54, %v4283_v43  ;;  %v4284_v16 = vmul.f32 %v6677_v13, %v4268_v27  ;;  %v4426_v63 = vsel %vm4410_vm3, %v4314_v45, %v9215_v35 }
 0x5ca   : > { %v6679_v60 = vpop.eup %6678  ;;  %v4427_v58 = vsel %vm4411_vm12, %v4315_v40, %v9218_v29  ;;  %v4316_v53 = vadd.f32 %v4300_v11, %v4284_v16 }
 0x5cb   : > { %v4452_v4 = vpack.c.bf16 %v4427_v58, %v4426_v63  ;;  %v4285_v23 = vmul.f32 %v6679_v60, %v4269_v44 }
 0x5cc   : > { %v4428_v6 = vsel %vm4412_vm13, %v4316_v53, %v9224_v8 }
 0x5cd   : > { %4717 = vmatprep.mubr.bf16.mxu1 %v4452_v4  ;;  %v4317_v7 = vadd.f32 %v4301_v19, %v4285_v23 }
 0x5ce   : > { %4718 = vmatmul.mubr.bf16.gmra.mrb[200].mxu1 %v6038_v0 }
 0x5cf   : > { %v4429_v35 = vsel %vm4413_vm4, %v4317_v7, %v9227_v9 }
 0x5d0   : > { %v4453_v29 = vpack.c.bf16 %v4429_v35, %v4428_v6 }
 0x5d2   : > { %4725 = vmatprep.mubr.bf16.mxu1 %v4453_v29 }
 0x5d6   : > { %4726 = vmatmul.mubr.bf16.gmra.mrb[204].mxu1 %v6039_v5 }
 0x65d   : > { %v5308_v51 = vpop.f32.mrb[176].mxu1 }
 0x65e   : > { %v5309_v26 = vpop.f32.mrb[177].mxu1 }
 0x65f   : > { %v5310_v59 = vadd.f32 %v5309_v26, %v5308_v51  ;;  %v5311_v33 = vpop.f32.mrb[178].mxu1 }
 0x660   : > { %v5312_v47 = vpop.f32.mrb[179].mxu1 }
 0x661   : > { %v4672_v3 = vadd.f32 %v5310_v59, %v9532_v61  ;;  %v5313_v8 = vadd.f32 %v5312_v47, %v5311_v33 }
 0x663   : > { %4734 = vst [vmem:[%s9535_s14] sm:$0xff] %v4672_v3  ;;  %v4675_v9 = vadd.f32 %v5313_v8, %v9532_v61 }
 0x665   : > { %4735 = vst [vmem:[%s9535_s14 + $0x8] sm:$0xff] %v4675_v9  ;;  %v5314_v55 = vpop.f32.mrb[180].mxu1 }
 0x666   : > { %v5315_v36 = vpop.f32.mrb[181].mxu1 }
 0x667   : > { %v5316_v41 = vadd.f32 %v5315_v36, %v5314_v55  ;;  %v5317_v32 = vpop.f32.mrb[182].mxu1 }
 0x668   : > { %v5318_v46 = vpop.f32.mrb[183].mxu1 }
 0x669   : > { %v4680_v20 = vadd.f32 %v5316_v41, %v9532_v61  ;;  %v5319_v12 = vadd.f32 %v5318_v46, %v5317_v32 }
 0x66b   : > { %4736 = vst [vmem:[%s9535_s14 + $0x10] sm:$0xff] %v4680_v20  ;;  %v4683_v22 = vadd.f32 %v5319_v12, %v9532_v61 }
 0x66d   : > { %4737 = vst [vmem:[%s9535_s14 + $0x18] sm:$0xff] %v4683_v22 }
 0x671   : > { %v5320_v1 = vpop.f32.mrb[184].mxu1 }
 0x672   : > { %v5321_v34 = vpop.f32.mrb[185].mxu1 }
 0x673   : > { %v5322_v56 = vadd.f32 %v5321_v34, %v5320_v1  ;;  %v5323_v42 = vpop.f32.mrb[186].mxu1 }
 0x674   : > { %v5324_v31 = vpop.f32.mrb[187].mxu1 }
 0x675   : > { %v4688_v25 = vadd.f32 %v5322_v56, %v9532_v61  ;;  %v5325_v21 = vadd.f32 %v5324_v31, %v5323_v42 }
 0x677   : > { %4738 = vst [vmem:[%s9535_s14 + $0x20] sm:$0xff] %v4688_v25  ;;  %v4691_v28 = vadd.f32 %v5325_v21, %v9532_v61 }
 0x679   : > { %4739 = vst [vmem:[%s9535_s14 + $0x28] sm:$0xff] %v4691_v28  ;;  %v5326_v2 = vpop.f32.mrb[188].mxu1 }
 0x67a   : > { %v5327_v15 = vpop.f32.mrb[189].mxu1 }
 0x67b   : > { %v5328_v14 = vadd.f32 %v5327_v15, %v5326_v2  ;;  %v5329_v52 = vpop.f32.mrb[190].mxu1 }
 0x67c   : > { %v5330_v57 = vpop.f32.mrb[191].mxu1 }
 0x67d   : > { %v4696_v17 = vadd.f32 %v5328_v14, %v9532_v61  ;;  %v5331_v38 = vadd.f32 %v5330_v57, %v5329_v52 }
 0x67f   : > { %4740 = vst [vmem:[%s9535_s14 + $0x30] sm:$0xff] %v4696_v17  ;;  %v4699_v48 = vadd.f32 %v5331_v38, %v9532_v61 }
 0x681   : > { %4741 = vst [vmem:[%s9535_s14 + $0x38] sm:$0xff] %v4699_v48 }
 0x689   : > { %v5332_v18 = vpop.f32.mrb[192].mxu1 }
 0x68a   : > { %v5333_v39 = vpop.f32.mrb[193].mxu1 }
 0x68b   : > { %v5334_v62 = vadd.f32 %v5333_v39, %v5332_v18  ;;  %v5335_v10 = vpop.f32.mrb[194].mxu1 }
 0x68c   : > { %v5336_v30 = vpop.f32.mrb[195].mxu1 }
 0x68d   : > { %v4704_v49 = vadd.f32 %v5334_v62, %v9532_v61  ;;  %v5337_v37 = vadd.f32 %v5336_v30, %v5335_v10 }
 0x68f   : > { %4742 = vst [vmem:[%s9535_s14 + $0x40] sm:$0xff] %v4704_v49  ;;  %v4707_v43 = vadd.f32 %v5337_v37, %v9532_v61 }
 0x691   : > { %4743 = vst [vmem:[%s9535_s14 + $0x48] sm:$0xff] %v4707_v43  ;;  %v5338_v54 = vpop.f32.mrb[196].mxu1 }
 0x692   : > { %v5339_v45 = vpop.f32.mrb[197].mxu1 }
 0x693   : > { %v5340_v27 = vadd.f32 %v5339_v45, %v5338_v54  ;;  %v5341_v13 = vpop.f32.mrb[198].mxu1 }
 0x694   : > { %v5342_v40 = vpop.f32.mrb[199].mxu1 }
 0x695   : > { %v4712_v16 = vadd.f32 %v5340_v27, %v9532_v61  ;;  %v5343_v11 = vadd.f32 %v5342_v40, %v5341_v13 }
 0x697   : > { %4744 = vst [vmem:[%s9535_s14 + $0x50] sm:$0xff] %v4712_v16  ;;  %v4715_v44 = vadd.f32 %v5343_v11, %v9532_v61 }
 0x699   : > { %4745 = vst [vmem:[%s9535_s14 + $0x58] sm:$0xff] %v4715_v44 }
 0x6a1   : > { %v5344_v60 = vpop.f32.mrb[200].mxu1 }
 0x6a2   : > { %v5345_v63 = vpop.f32.mrb[201].mxu1 }
 0x6a3   : > { %v5346_v58 = vadd.f32 %v5345_v63, %v5344_v60  ;;  %v5347_v0 = vpop.f32.mrb[202].mxu1 }
 0x6a4   : > { %v5348_v53 = vpop.f32.mrb[203].mxu1 }
 0x6a5   : > { %v4720_v50 = vadd.f32 %v5346_v58, %v9532_v61  ;;  %v5349_v24 = vadd.f32 %v5348_v53, %v5347_v0 }
 0x6a7   : > { %4746 = vst [vmem:[%s9535_s14 + $0x60] sm:$0xff] %v4720_v50  ;;  %v4723_v4 = vadd.f32 %v5349_v24, %v9532_v61 }
 0x6a9   : > { %4747 = vst [vmem:[%s9535_s14 + $0x68] sm:$0xff] %v4723_v4  ;;  %v5350_v23 = vpop.f32.mrb[204].mxu1 }
 0x6aa   : > { %v5351_v19 = vpop.f32.mrb[205].mxu1 }
 0x6ab   : > { %v5352_v7 = vadd.f32 %v5351_v19, %v5350_v23  ;;  %v5353_v6 = vpop.f32.mrb[206].mxu1 }
 0x6ac   : > { %v5354_v35 = vpop.f32.mrb[207].mxu1 }
 0x6ad   : > { %v4728_v29 = vadd.f32 %v5352_v7, %v9532_v61  ;;  %v5355_v5 = vadd.f32 %v5354_v35, %v5353_v6 }
 0x6af   : > { %4748 = vst [vmem:[%s9535_s14 + $0x70] sm:$0xff] %v4728_v29  ;;  %v4731_v51 = vadd.f32 %v5355_v5, %v9532_v61 }
 0x6b1   : > { %4749 = vst [vmem:[%s9535_s14 + $0x78] sm:$0xff] %v4731_v51 }
 0x6b2   : > { %6777 = shalt.err (!%p6774_p4)
}
 0x6b3   : > { %s6778_s17 = scalar_lea.hbm %s9570_s25, 2048  ;;  %s6782_s18 = scalar_lea.hbm %s10004_s9, 8192 }
 0x6b4   : > { %p6779_p3 = scmp.ne.s32.totalorder %s9570_s25, %s6778_s17  ;;  %p6783_p6 = scmp.lt.u32.totalorder %s9570_s25, %s10004_s9 }
 0x6b5   : > { %p6784_p11 = scmp.lt.u32.totalorder %s6782_s18, %s6778_s17  ;;  %p6786_p13 = scmp.lt.u32.totalorder %s6778_s17, %s9570_s25 }
 0x6b6   : > { %p6780_p2 = pnand %p6779_p3, %p10005_p0 }
 0x6b7   : > { %p6785_p12 = por %p6784_p11, %p6783_p6 }
 0x6b8   : > { %p6781_p5 = pneg %p6780_p2 }
 0x6b9   : > { %p6787_p7 = por %p6786_p13, %p6785_p12 }
 0x6bb   : > { %p6788_p8 = pnand %p6787_p7, %p6781_p5 }
 0x6bd   : > { %6791 = shalt.err (!%p6788_p8)
}
 0x6be   : > { %s6850_s16 = smov 128   ;;  %s6851_s30 = smov 8  }
 0x6bf   : > { %5853 = dma.vmem_to_hbm [thread:$0]  (%p10005_p0), %s9572_s26, 2048, %s9570_s25, %s4751_s13, %s6850_s16, %s6850_s16, %s6851_s30  }
 0x6c0 PF: > { %s10006_s28 = sld [smem:[#allocation15_spill]]  ;;  %s10007_s19 = sld [smem:[#allocation18_spill]] }
 0x6c1   : > { %p5870_p9 = scmp.ge.s32.totalorder %s6834_s12, 2 }
 0x6c6   : > { %s4779_s23 = sand.u32 1, %s10006_s28   ;;  %p10008_p10 = scmp.ne.s32.totalorder %s10007_s19, 0 }
 0x6c7   : > { %s4780_s20 = scalar_lea.sflag [#allocation4], %s4779_s23 }
 0x6c8   : > { %p5863_p1 = pnand %p5870_p9, %p10008_p10 }
 0x6ca   : > { %6817 = dma.done.wait (!%p5863_p1), %s4780_s20, 2048  }
 0x6cb   : > { %6819 = vsyncadd (!%p5863_p1), %s4780_s20, 4294965248  ;;  %s10009_s12 = sld [smem:[#allocation16_spill]]  ;;  %s10010_s29 = sld [smem:[#allocation17_spill]] }
 0x6cc   : > { %s10011_s30 = smov %s6826_s10  ;;  %s10012_s10 = smov %s6830_s11 }
 0x6d1   : > { %p23_p4 = scmp.ge.s32.totalorder %s10009_s12, 6   ;;  %s10013_s11 = smov %s10010_s29 }
 0x6d3   :  { %25 = sbr.rel (!%p23_p4) target bundleno = 8 (0x8), region = 120 }
 0x6da   :  { %4785 = vsyncpa [#allocation3], 1 }
 0x6db   :  { %4787 = vsyncpa [#allocation3 + $0x1], 1 }
 0x6dc   :  { %4788 = vsyncpa [#allocation6], 1 }
 0x6dd   :  { %4789 = vsyncpa [#allocation4], 1 }
 0x6de   :  { %4791 = vsyncpa [#allocation4 + $0x1], 1 }

</bundles_post_ra>
